<compile_context>
chip_gen: v5e
topology: v5e:2x2
jax: 0.10.0
libtpu: 0.0.40
codegen_flags: <defaults>
</compile_context>

<pallas_src>
import functools
import math

import jax
import jax.numpy as jnp
import numpy as np
from jax.experimental import pallas as pl
from jax.experimental.pallas import tpu as pltpu


# Module constants (fixed by the PyTorch spec: kernels 8/4/3, strides 4/2/1,
# 32/64/32 filters, 7x7 final spatial map for 84x84 inputs).
NUM_FILTERS = 32
OUTPUT_DIM = 7
KERNELS = (8, 4, 3)
STRIDES = (4, 2, 1)


# ----------------------------------------------------------------------------
# Pallas kernels
# ----------------------------------------------------------------------------
def _gemm_bias_relu_kernel(x_ref, w_ref, b_ref, o_ref):
    """out = relu(X @ W + b), everything resident in VMEM, default MXU precision."""
    acc = jnp.dot(x_ref[...], w_ref[...], preferred_element_type=jnp.float32)
    acc = acc + b_ref[...]                      # (1, C) broadcasts over rows
    o_ref[...] = jnp.maximum(acc, 0.0).astype(o_ref.dtype)


def gemm_bias_relu(x, w, b2):
    """relu(x @ w + b).  x:(M,K), w:(K,C), b2:(1,C).  One grid step, full blocks."""
    M, K = x.shape
    K2, C = w.shape
    assert K == K2
    return pl.pallas_call(
        _gemm_bias_relu_kernel,
        out_shape=jax.ShapeDtypeStruct((M, C), jnp.float32),
        grid_spec=pltpu.PrefetchScalarGridSpec(
            num_scalar_prefetch=0,
            grid=(1,),
            in_specs=[
                pl.BlockSpec((M, K), lambda i: (0, 0)),
                pl.BlockSpec((K, C), lambda i: (0, 0)),
                pl.BlockSpec((1, C), lambda i: (0, 0)),
            ],
            out_specs=pl.BlockSpec((M, C), lambda i: (0, 0)),
        ),
        compiler_params=pltpu.CompilerParams(dimension_semantics=("arbitrary",)),
    )(x, w, b2)


def _conv3_head_kernel(x_ref, w_ref, b_ref, wh_ref, bh_ref, o_ref, *,
                       batch, batch_padded, spatial):
    """conv3 GEMM (+bias+ReLU) followed by the Linear+tanh head, fully fused.

    x_ref rows are ordered (spatial position m, padded batch index i), so the
    per-position activation block y[m*bp:(m+1)*bp] is an 8-row-aligned (bp, C3)
    tile and the head is a sum of 49 small MXU matmuls against wh_ref[m] (C3, F).
    Padded batch rows are ignored by only storing the first `batch` rows.
    """
    y = jnp.dot(x_ref[...], w_ref[...], preferred_element_type=jnp.float32)
    y = jnp.maximum(y + b_ref[...], 0.0)                      # (spatial*bp, C3)

    feat = o_ref.shape[-1]
    acc = jnp.zeros((batch_padded, feat), jnp.float32)
    for m in range(spatial):                                  # static unroll (49)
        blk = y[m * batch_padded:(m + 1) * batch_padded, :]   # aligned (bp, C3)
        acc = acc + jnp.dot(blk, wh_ref[m], preferred_element_type=jnp.float32)

    out = jnp.tanh(acc[:batch, :] + bh_ref[...])              # (batch, F)
    o_ref[...] = out.astype(o_ref.dtype)


def conv3_head_fused(x3, w3, b3, wh3, bh, *, batch, batch_padded, spatial):
    M, K = x3.shape
    K2, C3 = w3.shape
    S, C3b, F = wh3.shape
    assert K == K2 and C3 == C3b and S == spatial and M == spatial * batch_padded
    kernel = functools.partial(_conv3_head_kernel, batch=batch,
                               batch_padded=batch_padded, spatial=spatial)
    return pl.pallas_call(
        kernel,
        out_shape=jax.ShapeDtypeStruct((batch, F), jnp.float32),
        grid_spec=pltpu.PrefetchScalarGridSpec(
            num_scalar_prefetch=0,
            grid=(1,),
            in_specs=[
                pl.BlockSpec((M, K), lambda i: (0, 0)),
                pl.BlockSpec((K, C3), lambda i: (0, 0)),
                pl.BlockSpec((1, C3), lambda i: (0, 0)),
                pl.BlockSpec((S, C3, F), lambda i: (0, 0, 0)),
                pl.BlockSpec((1, F), lambda i: (0, 0)),
            ],
            out_specs=pl.BlockSpec((batch, F), lambda i: (0, 0)),
        ),
        compiler_params=pltpu.CompilerParams(dimension_semantics=("arbitrary",)),
    )(x3, w3, b3, wh3, bh)


# ----------------------------------------------------------------------------
# XLA-side glue: im2col (pure data rearrangement) and parameter packing
# ----------------------------------------------------------------------------
def _im2col_nhwc(x, kh, kw, stride):
    """x:(N,H,W,C) -> (N*OH*OW, kh*kw*C); patch columns ordered (ki, kj, c)."""
    n, h, w, c = x.shape
    oh = (h - kh) // stride + 1
    ow = (w - kw) // stride + 1
    cols = []
    for i in range(kh):
        for j in range(kw):
            cols.append(x[:, i:i + stride * oh:stride, j:j + stride * ow:stride, :])
    p = jnp.stack(cols, axis=3)                         # (n, oh, ow, kh*kw, c)
    return p.reshape(n * oh * ow, kh * kw * c), oh, ow


def _im2col_spatial_major(x, kh, kw, stride):
    """Like _im2col_nhwc, but rows ordered (oy, ox, padded-batch) with the batch
    padded to a multiple of 8 (zero rows) so the fused head kernel only touches
    sublane-aligned blocks."""
    n, h, w, c = x.shape
    oh = (h - kh) // stride + 1
    ow = (w - kw) // stride + 1
    cols = []
    for i in range(kh):
        for j in range(kw):
            cols.append(x[:, i:i + stride * oh:stride, j:j + stride * ow:stride, :])
    p = jnp.stack(cols, axis=3)                         # (n, oh, ow, kh*kw, c)
    n_pad = ((n + 7) // 8) * 8
    if n_pad != n:
        p = jnp.pad(p, ((0, n_pad - n), (0, 0), (0, 0), (0, 0), (0, 0)))
    p = jnp.transpose(p, (1, 2, 0, 3, 4))               # (oh, ow, n_pad, kh*kw, c)
    return p.reshape(oh * ow * n_pad, kh * kw * c), oh, ow, n_pad


def _conv_weight_to_gemm(w_oihw):
    """PyTorch (O, I, kh, kw) conv weight -> (kh*kw*I, O) GEMM weight."""
    o, i, kh, kw = w_oihw.shape
    return jnp.transpose(w_oihw, (2, 3, 1, 0)).reshape(kh * kw * i, o)


def init_params(key, obs_shape, feature_dim):
    """PyTorch-default-style init, stored in torch layout (OIHW conv weights,
    head weight in NCHW-flatten K order)."""
    c_in = obs_shape[0] - 1
    channels = (c_in, NUM_FILTERS, NUM_FILTERS * 2, NUM_FILTERS)
    params = {"convs": []}
    keys = jax.random.split(key, len(KERNELS) + 1)
    for k_i, ci, co, ks in zip(keys[:-1], channels[:-1], channels[1:], KERNELS):
        fan_in = ci * ks * ks
        bound = 1.0 / math.sqrt(fan_in)
        kw_, kb_ = jax.random.split(k_i)
        w = jax.random.uniform(kw_, (co, ci, ks, ks), jnp.float32, -bound, bound)
        b = jax.random.uniform(kb_, (co,), jnp.float32, -bound, bound)
        params["convs"].append((w, b))
    head_in = NUM_FILTERS * OUTPUT_DIM * OUTPUT_DIM
    bound = 1.0 / math.sqrt(head_in)
    kw_, kb_ = jax.random.split(keys[-1])
    params["head_w"] = jax.random.uniform(
        kw_, (head_in, feature_dim), jnp.float32, -bound, bound)  # rows: c*49 + m
    params["head_b"] = jax.random.uniform(
        kb_, (feature_dim,), jnp.float32, -bound, bound)
    return params


def pack_params(params):
    """One-time repack into kernel-ready layouts (done outside the hot path)."""
    conv_w = [_conv_weight_to_gemm(w) for (w, _) in params["convs"]]
    conv_b = [b.reshape(1, -1) for (_, b) in params["convs"]]
    c3 = params["convs"][-1][0].shape[0]                  # conv3 out channels (32)
    s = OUTPUT_DIM * OUTPUT_DIM                           # 49
    f = params["head_w"].shape[1]
    # head_w[k, f] with k = c*49 + m  ->  wh3[m, c, f]  (NHWC / spatial-major order)
    head_w3 = jnp.transpose(params["head_w"].reshape(c3, s, f), (1, 0, 2))
    return {"conv_w": conv_w, "conv_b": conv_b,
            "head_w3": head_w3, "head_b": params["head_b"].reshape(1, -1)}


# ----------------------------------------------------------------------------
# Forward pass (Pallas hot path: 3 pallas_calls)
# ----------------------------------------------------------------------------
def encoder_forward(obs_nchw, packed):
    """Equivalent of EncoderDictObs.forward(obs) (output_logits=False)."""
    n = obs_nchw.shape[0]
    x = jnp.transpose(obs_nchw, (0, 2, 3, 1)).astype(jnp.float32)   # NCHW -> NHWC

    # conv1, conv2: fused im2col-GEMM + bias + ReLU (rows ordered (n, oy, ox)).
    for layer in range(2):
        ks, stride = KERNELS[layer], STRIDES[layer]
        w, b = packed["conv_w"][layer], packed["conv_b"][layer]
        cols, oh, ow = _im2col_nhwc(x, ks, ks, stride)
        y = gemm_bias_relu(cols, w, b)
        x = y.reshape(n, oh, ow, w.shape[1])

    # conv3 + Linear + tanh head fused in a single kernel.
    ks, stride = KERNELS[2], STRIDES[2]
    w3, b3 = packed["conv_w"][2], packed["conv_b"][2]
    cols3, oh3, ow3, n_pad = _im2col_spatial_major(x, ks, ks, stride)
    out = conv3_head_fused(cols3, w3, b3, packed["head_w3"], packed["head_b"],
                           batch=n, batch_padded=n_pad, spatial=oh3 * ow3)
    return out


# ----------------------------------------------------------------------------
# Pure-JAX reference (sanity check only; full f32 precision)
# ----------------------------------------------------------------------------
def encoder_forward_ref(obs_nchw, params):
    x = obs_nchw.astype(jnp.float32)
    for (w, b), stride in zip(params["convs"], STRIDES):
        x = jax.lax.conv_general_dilated(
            x, w, window_strides=(stride, stride), padding="VALID",
            dimension_numbers=("NCHW", "OIHW", "NCHW"),
            precision=jax.lax.Precision.HIGHEST,
        ) + b.reshape(1, -1, 1, 1)
        x = jnp.maximum(x, 0.0)
    h = x.reshape(x.shape[0], -1)                         # NCHW flatten (torch .view)
    return jnp.tanh(h @ params["head_w"] + params["head_b"])


# ----------------------------------------------------------------------------
if __name__ == "__main__":
    # obs_shape = (5, 84, 84)  =>  conv input channels = 4, final spatial 7x7
    obs_shape = (5, 84, 84)
    feature_dim = 32
    batch = 2

    key = jax.random.PRNGKey(0)
    k_params, k_obs = jax.random.split(key)
    params = init_params(k_params, obs_shape, feature_dim)
    packed = pack_params(params)

    obs = jax.random.uniform(
        k_obs, (batch, obs_shape[0] - 1, obs_shape[1], obs_shape[2]), jnp.float32
    )

    fwd = jax.jit(encoder_forward)
    out = jax.block_until_ready(fwd(obs, packed))
    assert out.shape == (batch, feature_dim), out.shape

    # Loose tolerance: the kernel runs the MXU at default (bf16-class) precision,
    # the reference at full f32 (HIGHEST); tanh outputs live in [-1, 1].
    ref = jax.block_until_ready(encoder_forward_ref(obs, params))
    np.testing.assert_allclose(np.asarray(out), np.asarray(ref), atol=5e-2, rtol=5e-2)

    print("KERNEL_OK")
</pallas_src>

<mosaic_0001>
module attributes {stable_mosaic.version = 11 : i64} {
  func.func @_gemm_bias_relu_kernel(%arg0: i32, %arg1: memref<800x256xf32, #tpu.memory_space<vmem>>, %arg2: memref<256x32xf32, #tpu.memory_space<vmem>>, %arg3: memref<1x32xf32, #tpu.memory_space<vmem>>, %arg4: memref<800x32xf32, #tpu.memory_space<vmem>>) attributes {dimension_semantics = [#tpu.dimension_semantics<arbitrary>], iteration_bounds = array<i64: 1>, scalar_prefetch = 0 : i64, scratch_operands = 0 : i64, tpu.core_type = #tpu.core_type<tc>, window_params = [{pipeline_mode = #tpu.pipeline_mode<synchronous>, transform_indices = @transform_0, window_bounds = array<i64: 800, 256>}, {pipeline_mode = #tpu.pipeline_mode<synchronous>, transform_indices = @transform_1, window_bounds = array<i64: 256, 32>}, {pipeline_mode = #tpu.pipeline_mode<synchronous>, transform_indices = @transform_2, window_bounds = array<i64: 1, 32>}, {pipeline_mode = #tpu.pipeline_mode<synchronous>, transform_indices = @transform_3, window_bounds = array<i64: 800, 32>}]} {
    %c0 = arith.constant 0 : index
    %c0_0 = arith.constant 0 : index
    %0 = vector.load %arg1[%c0, %c0_0] : memref<800x256xf32, #tpu.memory_space<vmem>>, vector<800x256xf32>
    %c0_1 = arith.constant 0 : index
    %c0_2 = arith.constant 0 : index
    %1 = vector.load %arg2[%c0_1, %c0_2] : memref<256x32xf32, #tpu.memory_space<vmem>>, vector<256x32xf32>
    %cst = arith.constant dense<0.000000e+00> : vector<800x32xf32>
    %2 = tpu.matmul %0, %1, %cst {dimension_numbers = #tpu.dot_dimension_numbers<[1], [0], [0], [1], [0, 0, 1, 1], [], []>} : vector<800x256xf32>, vector<256x32xf32>, vector<800x32xf32> -> vector<800x32xf32>
    %c0_3 = arith.constant 0 : index
    %c0_4 = arith.constant 0 : index
    %3 = vector.load %arg3[%c0_3, %c0_4] : memref<1x32xf32, #tpu.memory_space<vmem>>, vector<1x32xf32>
    %4 = vector.broadcast %3 : vector<1x32xf32> to vector<800x32xf32>
    %5 = arith.addf %2, %4 : vector<800x32xf32>
    %cst_5 = arith.constant 0.000000e+00 : f32
    %6 = vector.broadcast %cst_5 : f32 to vector<800x32xf32>
    %7 = arith.maximumf %5, %6 : vector<800x32xf32>
    %c0_6 = arith.constant 0 : index
    %c0_7 = arith.constant 0 : index
    %8 = vector.load %arg4[%c0_6, %c0_7] : memref<800x32xf32, #tpu.memory_space<vmem>>, vector<800x32xf32>
    tpu.vector_store %arg4[%c0_6, %c0_7], %7 {strides = array<i32>} : memref<800x32xf32, #tpu.memory_space<vmem>>, vector<800x32xf32>,
    return
  }
  func.func @transform_0(%arg0: i32) -> (i32, i32) {
    %c0_i32 = arith.constant 0 : i32
    %c0_i32_0 = arith.constant 0 : i32
    %c0_i32_1 = arith.constant 0 : i32
    return %c0_i32, %c0_i32_0 : i32, i32
  }
  func.func @transform_1(%arg0: i32) -> (i32, i32) {
    %c0_i32 = arith.constant 0 : i32
    %c0_i32_0 = arith.constant 0 : i32
    %c0_i32_1 = arith.constant 0 : i32
    return %c0_i32, %c0_i32_0 : i32, i32
  }
  func.func @transform_2(%arg0: i32) -> (i32, i32) {
    %c0_i32 = arith.constant 0 : i32
    %c0_i32_0 = arith.constant 0 : i32
    %c0_i32_1 = arith.constant 0 : i32
    return %c0_i32, %c0_i32_0 : i32, i32
  }
  func.func @transform_3(%arg0: i32) -> (i32, i32) {
    %c0_i32 = arith.constant 0 : i32
    %c0_i32_0 = arith.constant 0 : i32
    %c0_i32_1 = arith.constant 0 : i32
    return %c0_i32, %c0_i32_0 : i32, i32
  }
}

module attributes {stable_mosaic.version = 11 : i64} {
  func.func @_gemm_bias_relu_kernel(%arg0: i32, %arg1: memref<162x512xf32, #tpu.memory_space<vmem>>, %arg2: memref<512x64xf32, #tpu.memory_space<vmem>>, %arg3: memref<1x64xf32, #tpu.memory_space<vmem>>, %arg4: memref<162x64xf32, #tpu.memory_space<vmem>>) attributes {dimension_semantics = [#tpu.dimension_semantics<arbitrary>], iteration_bounds = array<i64: 1>, scalar_prefetch = 0 : i64, scratch_operands = 0 : i64, tpu.core_type = #tpu.core_type<tc>, window_params = [{pipeline_mode = #tpu.pipeline_mode<synchronous>, transform_indices = @transform_0, window_bounds = array<i64: 162, 512>}, {pipeline_mode = #tpu.pipeline_mode<synchronous>, transform_indices = @transform_1, window_bounds = array<i64: 512, 64>}, {pipeline_mode = #tpu.pipeline_mode<synchronous>, transform_indices = @transform_2, window_bounds = array<i64: 1, 64>}, {pipeline_mode = #tpu.pipeline_mode<synchronous>, transform_indices = @transform_3, window_bounds = array<i64: 162, 64>}]} {
    %c0 = arith.constant 0 : index
    %c0_0 = arith.constant 0 : index
    %0 = vector.load %arg1[%c0, %c0_0] : memref<162x512xf32, #tpu.memory_space<vmem>>, vector<162x512xf32>
    %c0_1 = arith.constant 0 : index
    %c0_2 = arith.constant 0 : index
    %1 = vector.load %arg2[%c0_1, %c0_2] : memref<512x64xf32, #tpu.memory_space<vmem>>, vector<512x64xf32>
    %cst = arith.constant dense<0.000000e+00> : vector<162x64xf32>
    %2 = tpu.matmul %0, %1, %cst {dimension_numbers = #tpu.dot_dimension_numbers<[1], [0], [0], [1], [0, 0, 1, 1], [], []>} : vector<162x512xf32>, vector<512x64xf32>, vector<162x64xf32> -> vector<162x64xf32>
    %c0_3 = arith.constant 0 : index
    %c0_4 = arith.constant 0 : index
    %3 = vector.load %arg3[%c0_3, %c0_4] : memref<1x64xf32, #tpu.memory_space<vmem>>, vector<1x64xf32>
    %4 = vector.broadcast %3 : vector<1x64xf32> to vector<162x64xf32>
    %5 = arith.addf %2, %4 : vector<162x64xf32>
    %cst_5 = arith.constant 0.000000e+00 : f32
    %6 = vector.broadcast %cst_5 : f32 to vector<162x64xf32>
    %7 = arith.maximumf %5, %6 : vector<162x64xf32>
    %c0_6 = arith.constant 0 : index
    %c0_7 = arith.constant 0 : index
    %8 = vector.load %arg4[%c0_6, %c0_7] : memref<162x64xf32, #tpu.memory_space<vmem>>, vector<162x64xf32>
    tpu.vector_store %arg4[%c0_6, %c0_7], %7 {strides = array<i32>} : memref<162x64xf32, #tpu.memory_space<vmem>>, vector<162x64xf32>,
    return
  }
  func.func @transform_0(%arg0: i32) -> (i32, i32) {
    %c0_i32 = arith.constant 0 : i32
    %c0_i32_0 = arith.constant 0 : i32
    %c0_i32_1 = arith.constant 0 : i32
    return %c0_i32, %c0_i32_0 : i32, i32
  }
  func.func @transform_1(%arg0: i32) -> (i32, i32) {
    %c0_i32 = arith.constant 0 : i32
    %c0_i32_0 = arith.constant 0 : i32
    %c0_i32_1 = arith.constant 0 : i32
    return %c0_i32, %c0_i32_0 : i32, i32
  }
  func.func @transform_2(%arg0: i32) -> (i32, i32) {
    %c0_i32 = arith.constant 0 : i32
    %c0_i32_0 = arith.constant 0 : i32
    %c0_i32_1 = arith.constant 0 : i32
    return %c0_i32, %c0_i32_0 : i32, i32
  }
  func.func @transform_3(%arg0: i32) -> (i32, i32) {
    %c0_i32 = arith.constant 0 : i32
    %c0_i32_0 = arith.constant 0 : i32
    %c0_i32_1 = arith.constant 0 : i32
    return %c0_i32, %c0_i32_0 : i32, i32
  }
}

module attributes {stable_mosaic.version = 11 : i64} {
  func.func @_conv3_head_kernel(%arg0: i32, %arg1: memref<392x576xf32, #tpu.memory_space<vmem>>, %arg2: memref<576x32xf32, #tpu.memory_space<vmem>>, %arg3: memref<1x32xf32, #tpu.memory_space<vmem>>, %arg4: memref<49x32x32xf32, #tpu.memory_space<vmem>>, %arg5: memref<1x32xf32, #tpu.memory_space<vmem>>, %arg6: memref<2x32xf32, #tpu.memory_space<vmem>>) attributes {dimension_semantics = [#tpu.dimension_semantics<arbitrary>], iteration_bounds = array<i64: 1>, scalar_prefetch = 0 : i64, scratch_operands = 0 : i64, tpu.core_type = #tpu.core_type<tc>, window_params = [{pipeline_mode = #tpu.pipeline_mode<synchronous>, transform_indices = @transform_0, window_bounds = array<i64: 392, 576>}, {pipeline_mode = #tpu.pipeline_mode<synchronous>, transform_indices = @transform_1, window_bounds = array<i64: 576, 32>}, {pipeline_mode = #tpu.pipeline_mode<synchronous>, transform_indices = @transform_2, window_bounds = array<i64: 1, 32>}, {pipeline_mode = #tpu.pipeline_mode<synchronous>, transform_indices = @transform_3, window_bounds = array<i64: 49, 32, 32>}, {pipeline_mode = #tpu.pipeline_mode<synchronous>, transform_indices = @transform_4, window_bounds = array<i64: 1, 32>}, {pipeline_mode = #tpu.pipeline_mode<synchronous>, transform_indices = @transform_5, window_bounds = array<i64: 2, 32>}]} {
    %c0 = arith.constant 0 : index
    %c0_0 = arith.constant 0 : index
    %0 = vector.load %arg1[%c0, %c0_0] : memref<392x576xf32, #tpu.memory_space<vmem>>, vector<392x576xf32>
    %c0_1 = arith.constant 0 : index
    %c0_2 = arith.constant 0 : index
    %1 = vector.load %arg2[%c0_1, %c0_2] : memref<576x32xf32, #tpu.memory_space<vmem>>, vector<576x32xf32>
    %cst = arith.constant dense<0.000000e+00> : vector<392x32xf32>
    %2 = tpu.matmul %0, %1, %cst {dimension_numbers = #tpu.dot_dimension_numbers<[1], [0], [0], [1], [0, 0, 1, 1], [], []>} : vector<392x576xf32>, vector<576x32xf32>, vector<392x32xf32> -> vector<392x32xf32>
    %c0_3 = arith.constant 0 : index
    %c0_4 = arith.constant 0 : index
    %3 = vector.load %arg3[%c0_3, %c0_4] : memref<1x32xf32, #tpu.memory_space<vmem>>, vector<1x32xf32>
    %4 = vector.broadcast %3 : vector<1x32xf32> to vector<392x32xf32>
    %5 = arith.addf %2, %4 : vector<392x32xf32>
    %cst_5 = arith.constant 0.000000e+00 : f32
    %6 = vector.broadcast %cst_5 : f32 to vector<392x32xf32>
    %7 = arith.maximumf %5, %6 : vector<392x32xf32>
    %cst_6 = arith.constant 0.000000e+00 : f32
    %8 = vector.broadcast %cst_6 : f32 to vector<8x32xf32>
    %9 = vector.extract_strided_slice %7 {offsets = [0, 0], sizes = [8, 32], strides = [1, 1]} : vector<392x32xf32> to vector<8x32xf32>
    %c0_7 = arith.constant 0 : index
    %c0_8 = arith.constant 0 : index
    %c0_9 = arith.constant 0 : index
    %10 = vector.load %arg4[%c0_7, %c0_8, %c0_9] : memref<49x32x32xf32, #tpu.memory_space<vmem>>, vector<1x32x32xf32>
    %11 = vector.shape_cast %10 : vector<1x32x32xf32> to vector<32x32xf32>
    %cst_10 = arith.constant dense<0.000000e+00> : vector<8x32xf32>
    %12 = tpu.matmul %9, %11, %cst_10 {dimension_numbers = #tpu.dot_dimension_numbers<[1], [0], [0], [1], [0, 0, 1, 1], [], []>} : vector<8x32xf32>, vector<32x32xf32>, vector<8x32xf32> -> vector<8x32xf32>
    %13 = arith.addf %8, %12 : vector<8x32xf32>
    %14 = vector.extract_strided_slice %7 {offsets = [8, 0], sizes = [8, 32], strides = [1, 1]} : vector<392x32xf32> to vector<8x32xf32>
    %c1 = arith.constant 1 : index
    %c0_11 = arith.constant 0 : index
    %c0_12 = arith.constant 0 : index
    %15 = vector.load %arg4[%c1, %c0_11, %c0_12] : memref<49x32x32xf32, #tpu.memory_space<vmem>>, vector<1x32x32xf32>
    %16 = vector.shape_cast %15 : vector<1x32x32xf32> to vector<32x32xf32>
    %cst_13 = arith.constant dense<0.000000e+00> : vector<8x32xf32>
    %17 = tpu.matmul %14, %16, %cst_13 {dimension_numbers = #tpu.dot_dimension_numbers<[1], [0], [0], [1], [0, 0, 1, 1], [], []>} : vector<8x32xf32>, vector<32x32xf32>, vector<8x32xf32> -> vector<8x32xf32>
    %18 = arith.addf %13, %17 : vector<8x32xf32>
    %19 = vector.extract_strided_slice %7 {offsets = [16, 0], sizes = [8, 32], strides = [1, 1]} : vector<392x32xf32> to vector<8x32xf32>
    %c2 = arith.constant 2 : index
    %c0_14 = arith.constant 0 : index
    %c0_15 = arith.constant 0 : index
    %20 = vector.load %arg4[%c2, %c0_14, %c0_15] : memref<49x32x32xf32, #tpu.memory_space<vmem>>, vector<1x32x32xf32>
    %21 = vector.shape_cast %20 : vector<1x32x32xf32> to vector<32x32xf32>
    %cst_16 = arith.constant dense<0.000000e+00> : vector<8x32xf32>
    %22 = tpu.matmul %19, %21, %cst_16 {dimension_numbers = #tpu.dot_dimension_numbers<[1], [0], [0], [1], [0, 0, 1, 1], [], []>} : vector<8x32xf32>, vector<32x32xf32>, vector<8x32xf32> -> vector<8x32xf32>
    %23 = arith.addf %18, %22 : vector<8x32xf32>
    %24 = vector.extract_strided_slice %7 {offsets = [24, 0], sizes = [8, 32], strides = [1, 1]} : vector<392x32xf32> to vector<8x32xf32>
    %c3 = arith.constant 3 : index
    %c0_17 = arith.constant 0 : index
    %c0_18 = arith.constant 0 : index
    %25 = vector.load %arg4[%c3, %c0_17, %c0_18] : memref<49x32x32xf32, #tpu.memory_space<vmem>>, vector<1x32x32xf32>
    %26 = vector.shape_cast %25 : vector<1x32x32xf32> to vector<32x32xf32>
    %cst_19 = arith.constant dense<0.000000e+00> : vector<8x32xf32>
    %27 = tpu.matmul %24, %26, %cst_19 {dimension_numbers = #tpu.dot_dimension_numbers<[1], [0], [0], [1], [0, 0, 1, 1], [], []>} : vector<8x32xf32>, vector<32x32xf32>, vector<8x32xf32> -> vector<8x32xf32>
    %28 = arith.addf %23, %27 : vector<8x32xf32>
    %29 = vector.extract_strided_slice %7 {offsets = [32, 0], sizes = [8, 32], strides = [1, 1]} : vector<392x32xf32> to vector<8x32xf32>
    %c4 = arith.constant 4 : index
    %c0_20 = arith.constant 0 : index
    %c0_21 = arith.constant 0 : index
    %30 = vector.load %arg4[%c4, %c0_20, %c0_21] : memref<49x32x32xf32, #tpu.memory_space<vmem>>, vector<1x32x32xf32>
    %31 = vector.shape_cast %30 : vector<1x32x32xf32> to vector<32x32xf32>
    %cst_22 = arith.constant dense<0.000000e+00> : vector<8x32xf32>
    %32 = tpu.matmul %29, %31, %cst_22 {dimension_numbers = #tpu.dot_dimension_numbers<[1], [0], [0], [1], [0, 0, 1, 1], [], []>} : vector<8x32xf32>, vector<32x32xf32>, vector<8x32xf32> -> vector<8x32xf32>
    %33 = arith.addf %28, %32 : vector<8x32xf32>
    %34 = vector.extract_strided_slice %7 {offsets = [40, 0], sizes = [8, 32], strides = [1, 1]} : vector<392x32xf32> to vector<8x32xf32>
    %c5 = arith.constant 5 : index
    %c0_23 = arith.constant 0 : index
    %c0_24 = arith.constant 0 : index
    %35 = vector.load %arg4[%c5, %c0_23, %c0_24] : memref<49x32x32xf32, #tpu.memory_space<vmem>>, vector<1x32x32xf32>
    %36 = vector.shape_cast %35 : vector<1x32x32xf32> to vector<32x32xf32>
    %cst_25 = arith.constant dense<0.000000e+00> : vector<8x32xf32>
    %37 = tpu.matmul %34, %36, %cst_25 {dimension_numbers = #tpu.dot_dimension_numbers<[1], [0], [0], [1], [0, 0, 1, 1], [], []>} : vector<8x32xf32>, vector<32x32xf32>, vector<8x32xf32> -> vector<8x32xf32>
    %38 = arith.addf %33, %37 : vector<8x32xf32>
    %39 = vector.extract_strided_slice %7 {offsets = [48, 0], sizes = [8, 32], strides = [1, 1]} : vector<392x32xf32> to vector<8x32xf32>
    %c6 = arith.constant 6 : index
    %c0_26 = arith.constant 0 : index
    %c0_27 = arith.constant 0 : index
    %40 = vector.load %arg4[%c6, %c0_26, %c0_27] : memref<49x32x32xf32, #tpu.memory_space<vmem>>, vector<1x32x32xf32>
    %41 = vector.shape_cast %40 : vector<1x32x32xf32> to vector<32x32xf32>
    %cst_28 = arith.constant dense<0.000000e+00> : vector<8x32xf32>
    %42 = tpu.matmul %39, %41, %cst_28 {dimension_numbers = #tpu.dot_dimension_numbers<[1], [0], [0], [1], [0, 0, 1, 1], [], []>} : vector<8x32xf32>, vector<32x32xf32>, vector<8x32xf32> -> vector<8x32xf32>
    %43 = arith.addf %38, %42 : vector<8x32xf32>
    %44 = vector.extract_strided_slice %7 {offsets = [56, 0], sizes = [8, 32], strides = [1, 1]} : vector<392x32xf32> to vector<8x32xf32>
    %c7 = arith.constant 7 : index
    %c0_29 = arith.constant 0 : index
    %c0_30 = arith.constant 0 : index
    %45 = vector.load %arg4[%c7, %c0_29, %c0_30] : memref<49x32x32xf32, #tpu.memory_space<vmem>>, vector<1x32x32xf32>
    %46 = vector.shape_cast %45 : vector<1x32x32xf32> to vector<32x32xf32>
    %cst_31 = arith.constant dense<0.000000e+00> : vector<8x32xf32>
    %47 = tpu.matmul %44, %46, %cst_31 {dimension_numbers = #tpu.dot_dimension_numbers<[1], [0], [0], [1], [0, 0, 1, 1], [], []>} : vector<8x32xf32>, vector<32x32xf32>, vector<8x32xf32> -> vector<8x32xf32>
    %48 = arith.addf %43, %47 : vector<8x32xf32>
    %49 = vector.extract_strided_slice %7 {offsets = [64, 0], sizes = [8, 32], strides = [1, 1]} : vector<392x32xf32> to vector<8x32xf32>
    %c8 = arith.constant 8 : index
    %c0_32 = arith.constant 0 : index
    %c0_33 = arith.constant 0 : index
    %50 = vector.load %arg4[%c8, %c0_32, %c0_33] : memref<49x32x32xf32, #tpu.memory_space<vmem>>, vector<1x32x32xf32>
    %51 = vector.shape_cast %50 : vector<1x32x32xf32> to vector<32x32xf32>
    %cst_34 = arith.constant dense<0.000000e+00> : vector<8x32xf32>
    %52 = tpu.matmul %49, %51, %cst_34 {dimension_numbers = #tpu.dot_dimension_numbers<[1], [0], [0], [1], [0, 0, 1, 1], [], []>} : vector<8x32xf32>, vector<32x32xf32>, vector<8x32xf32> -> vector<8x32xf32>
    %53 = arith.addf %48, %52 : vector<8x32xf32>
    %54 = vector.extract_strided_slice %7 {offsets = [72, 0], sizes = [8, 32], strides = [1, 1]} : vector<392x32xf32> to vector<8x32xf32>
    %c9 = arith.constant 9 : index
    %c0_35 = arith.constant 0 : index
    %c0_36 = arith.constant 0 : index
    %55 = vector.load %arg4[%c9, %c0_35, %c0_36] : memref<49x32x32xf32, #tpu.memory_space<vmem>>, vector<1x32x32xf32>
    %56 = vector.shape_cast %55 : vector<1x32x32xf32> to vector<32x32xf32>
    %cst_37 = arith.constant dense<0.000000e+00> : vector<8x32xf32>
    %57 = tpu.matmul %54, %56, %cst_37 {dimension_numbers = #tpu.dot_dimension_numbers<[1], [0], [0], [1], [0, 0, 1, 1], [], []>} : vector<8x32xf32>, vector<32x32xf32>, vector<8x32xf32> -> vector<8x32xf32>
    %58 = arith.addf %53, %57 : vector<8x32xf32>
    %59 = vector.extract_strided_slice %7 {offsets = [80, 0], sizes = [8, 32], strides = [1, 1]} : vector<392x32xf32> to vector<8x32xf32>
    %c10 = arith.constant 10 : index
    %c0_38 = arith.constant 0 : index
    %c0_39 = arith.constant 0 : index
    %60 = vector.load %arg4[%c10, %c0_38, %c0_39] : memref<49x32x32xf32, #tpu.memory_space<vmem>>, vector<1x32x32xf32>
    %61 = vector.shape_cast %60 : vector<1x32x32xf32> to vector<32x32xf32>
    %cst_40 = arith.constant dense<0.000000e+00> : vector<8x32xf32>
    %62 = tpu.matmul %59, %61, %cst_40 {dimension_numbers = #tpu.dot_dimension_numbers<[1], [0], [0], [1], [0, 0, 1, 1], [], []>} : vector<8x32xf32>, vector<32x32xf32>, vector<8x32xf32> -> vector<8x32xf32>
    %63 = arith.addf %58, %62 : vector<8x32xf32>
    %64 = vector.extract_strided_slice %7 {offsets = [88, 0], sizes = [8, 32], strides = [1, 1]} : vector<392x32xf32> to vector<8x32xf32>
    %c11 = arith.constant 11 : index
    %c0_41 = arith.constant 0 : index
    %c0_42 = arith.constant 0 : index
    %65 = vector.load %arg4[%c11, %c0_41, %c0_42] : memref<49x32x32xf32, #tpu.memory_space<vmem>>, vector<1x32x32xf32>
    %66 = vector.shape_cast %65 : vector<1x32x32xf32> to vector<32x32xf32>
    %cst_43 = arith.constant dense<0.000000e+00> : vector<8x32xf32>
    %67 = tpu.matmul %64, %66, %cst_43 {dimension_numbers = #tpu.dot_dimension_numbers<[1], [0], [0], [1], [0, 0, 1, 1], [], []>} : vector<8x32xf32>, vector<32x32xf32>, vector<8x32xf32> -> vector<8x32xf32>
    %68 = arith.addf %63, %67 : vector<8x32xf32>
    %69 = vector.extract_strided_slice %7 {offsets = [96, 0], sizes = [8, 32], strides = [1, 1]} : vector<392x32xf32> to vector<8x32xf32>
    %c12 = arith.constant 12 : index
    %c0_44 = arith.constant 0 : index
    %c0_45 = arith.constant 0 : index
    %70 = vector.load %arg4[%c12, %c0_44, %c0_45] : memref<49x32x32xf32, #tpu.memory_space<vmem>>, vector<1x32x32xf32>
    %71 = vector.shape_cast %70 : vector<1x32x32xf32> to vector<32x32xf32>
    %cst_46 = arith.constant dense<0.000000e+00> : vector<8x32xf32>
    %72 = tpu.matmul %69, %71, %cst_46 {dimension_numbers = #tpu.dot_dimension_numbers<[1], [0], [0], [1], [0, 0, 1, 1], [], []>} : vector<8x32xf32>, vector<32x32xf32>, vector<8x32xf32> -> vector<8x32xf32>
    %73 = arith.addf %68, %72 : vector<8x32xf32>
    %74 = vector.extract_strided_slice %7 {offsets = [104, 0], sizes = [8, 32], strides = [1, 1]} : vector<392x32xf32> to vector<8x32xf32>
    %c13 = arith.constant 13 : index
    %c0_47 = arith.constant 0 : index
    %c0_48 = arith.constant 0 : index
    %75 = vector.load %arg4[%c13, %c0_47, %c0_48] : memref<49x32x32xf32, #tpu.memory_space<vmem>>, vector<1x32x32xf32>
    %76 = vector.shape_cast %75 : vector<1x32x32xf32> to vector<32x32xf32>
    %cst_49 = arith.constant dense<0.000000e+00> : vector<8x32xf32>
    %77 = tpu.matmul %74, %76, %cst_49 {dimension_numbers = #tpu.dot_dimension_numbers<[1], [0], [0], [1], [0, 0, 1, 1], [], []>} : vector<8x32xf32>, vector<32x32xf32>, vector<8x32xf32> -> vector<8x32xf32>
    %78 = arith.addf %73, %77 : vector<8x32xf32>
    %79 = vector.extract_strided_slice %7 {offsets = [112, 0], sizes = [8, 32], strides = [1, 1]} : vector<392x32xf32> to vector<8x32xf32>
    %c14 = arith.constant 14 : index
    %c0_50 = arith.constant 0 : index
    %c0_51 = arith.constant 0 : index
    %80 = vector.load %arg4[%c14, %c0_50, %c0_51] : memref<49x32x32xf32, #tpu.memory_space<vmem>>, vector<1x32x32xf32>
    %81 = vector.shape_cast %80 : vector<1x32x32xf32> to vector<32x32xf32>
    %cst_52 = arith.constant dense<0.000000e+00> : vector<8x32xf32>
    %82 = tpu.matmul %79, %81, %cst_52 {dimension_numbers = #tpu.dot_dimension_numbers<[1], [0], [0], [1], [0, 0, 1, 1], [], []>} : vector<8x32xf32>, vector<32x32xf32>, vector<8x32xf32> -> vector<8x32xf32>
    %83 = arith.addf %78, %82 : vector<8x32xf32>
    %84 = vector.extract_strided_slice %7 {offsets = [120, 0], sizes = [8, 32], strides = [1, 1]} : vector<392x32xf32> to vector<8x32xf32>
    %c15 = arith.constant 15 : index
    %c0_53 = arith.constant 0 : index
    %c0_54 = arith.constant 0 : index
    %85 = vector.load %arg4[%c15, %c0_53, %c0_54] : memref<49x32x32xf32, #tpu.memory_space<vmem>>, vector<1x32x32xf32>
    %86 = vector.shape_cast %85 : vector<1x32x32xf32> to vector<32x32xf32>
    %cst_55 = arith.constant dense<0.000000e+00> : vector<8x32xf32>
    %87 = tpu.matmul %84, %86, %cst_55 {dimension_numbers = #tpu.dot_dimension_numbers<[1], [0], [0], [1], [0, 0, 1, 1], [], []>} : vector<8x32xf32>, vector<32x32xf32>, vector<8x32xf32> -> vector<8x32xf32>
    %88 = arith.addf %83, %87 : vector<8x32xf32>
    %89 = vector.extract_strided_slice %7 {offsets = [128, 0], sizes = [8, 32], strides = [1, 1]} : vector<392x32xf32> to vector<8x32xf32>
    %c16 = arith.constant 16 : index
    %c0_56 = arith.constant 0 : index
    %c0_57 = arith.constant 0 : index
    %90 = vector.load %arg4[%c16, %c0_56, %c0_57] : memref<49x32x32xf32, #tpu.memory_space<vmem>>, vector<1x32x32xf32>
    %91 = vector.shape_cast %90 : vector<1x32x32xf32> to vector<32x32xf32>
    %cst_58 = arith.constant dense<0.000000e+00> : vector<8x32xf32>
    %92 = tpu.matmul %89, %91, %cst_58 {dimension_numbers = #tpu.dot_dimension_numbers<[1], [0], [0], [1], [0, 0, 1, 1], [], []>} : vector<8x32xf32>, vector<32x32xf32>, vector<8x32xf32> -> vector<8x32xf32>
    %93 = arith.addf %88, %92 : vector<8x32xf32>
    %94 = vector.extract_strided_slice %7 {offsets = [136, 0], sizes = [8, 32], strides = [1, 1]} : vector<392x32xf32> to vector<8x32xf32>
    %c17 = arith.constant 17 : index
    %c0_59 = arith.constant 0 : index
    %c0_60 = arith.constant 0 : index
    %95 = vector.load %arg4[%c17, %c0_59, %c0_60] : memref<49x32x32xf32, #tpu.memory_space<vmem>>, vector<1x32x32xf32>
    %96 = vector.shape_cast %95 : vector<1x32x32xf32> to vector<32x32xf32>
    %cst_61 = arith.constant dense<0.000000e+00> : vector<8x32xf32>
    %97 = tpu.matmul %94, %96, %cst_61 {dimension_numbers = #tpu.dot_dimension_numbers<[1], [0], [0], [1], [0, 0, 1, 1], [], []>} : vector<8x32xf32>, vector<32x32xf32>, vector<8x32xf32> -> vector<8x32xf32>
    %98 = arith.addf %93, %97 : vector<8x32xf32>
    %99 = vector.extract_strided_slice %7 {offsets = [144, 0], sizes = [8, 32], strides = [1, 1]} : vector<392x32xf32> to vector<8x32xf32>
    %c18 = arith.constant 18 : index
    %c0_62 = arith.constant 0 : index
    %c0_63 = arith.constant 0 : index
    %100 = vector.load %arg4[%c18, %c0_62, %c0_63] : memref<49x32x32xf32, #tpu.memory_space<vmem>>, vector<1x32x32xf32>
    %101 = vector.shape_cast %100 : vector<1x32x32xf32> to vector<32x32xf32>
    %cst_64 = arith.constant dense<0.000000e+00> : vector<8x32xf32>
    %102 = tpu.matmul %99, %101, %cst_64 {dimension_numbers = #tpu.dot_dimension_numbers<[1], [0], [0], [1], [0, 0, 1, 1], [], []>} : vector<8x32xf32>, vector<32x32xf32>, vector<8x32xf32> -> vector<8x32xf32>
    %103 = arith.addf %98, %102 : vector<8x32xf32>
    %104 = vector.extract_strided_slice %7 {offsets = [152, 0], sizes = [8, 32], strides = [1, 1]} : vector<392x32xf32> to vector<8x32xf32>
    %c19 = arith.constant 19 : index
    %c0_65 = arith.constant 0 : index
    %c0_66 = arith.constant 0 : index
    %105 = vector.load %arg4[%c19, %c0_65, %c0_66] : memref<49x32x32xf32, #tpu.memory_space<vmem>>, vector<1x32x32xf32>
    %106 = vector.shape_cast %105 : vector<1x32x32xf32> to vector<32x32xf32>
    %cst_67 = arith.constant dense<0.000000e+00> : vector<8x32xf32>
    %107 = tpu.matmul %104, %106, %cst_67 {dimension_numbers = #tpu.dot_dimension_numbers<[1], [0], [0], [1], [0, 0, 1, 1], [], []>} : vector<8x32xf32>, vector<32x32xf32>, vector<8x32xf32> -> vector<8x32xf32>
    %108 = arith.addf %103, %107 : vector<8x32xf32>
    %109 = vector.extract_strided_slice %7 {offsets = [160, 0], sizes = [8, 32], strides = [1, 1]} : vector<392x32xf32> to vector<8x32xf32>
    %c20 = arith.constant 20 : index
    %c0_68 = arith.constant 0 : index
    %c0_69 = arith.constant 0 : index
    %110 = vector.load %arg4[%c20, %c0_68, %c0_69] : memref<49x32x32xf32, #tpu.memory_space<vmem>>, vector<1x32x32xf32>
    %111 = vector.shape_cast %110 : vector<1x32x32xf32> to vector<32x32xf32>
    %cst_70 = arith.constant dense<0.000000e+00> : vector<8x32xf32>
    %112 = tpu.matmul %109, %111, %cst_70 {dimension_numbers = #tpu.dot_dimension_numbers<[1], [0], [0], [1], [0, 0, 1, 1], [], []>} : vector<8x32xf32>, vector<32x32xf32>, vector<8x32xf32> -> vector<8x32xf32>
    %113 = arith.addf %108, %112 : vector<8x32xf32>
    %114 = vector.extract_strided_slice %7 {offsets = [168, 0], sizes = [8, 32], strides = [1, 1]} : vector<392x32xf32> to vector<8x32xf32>
    %c21 = arith.constant 21 : index
    %c0_71 = arith.constant 0 : index
    %c0_72 = arith.constant 0 : index
    %115 = vector.load %arg4[%c21, %c0_71, %c0_72] : memref<49x32x32xf32, #tpu.memory_space<vmem>>, vector<1x32x32xf32>
    %116 = vector.shape_cast %115 : vector<1x32x32xf32> to vector<32x32xf32>
    %cst_73 = arith.constant dense<0.000000e+00> : vector<8x32xf32>
    %117 = tpu.matmul %114, %116, %cst_73 {dimension_numbers = #tpu.dot_dimension_numbers<[1], [0], [0], [1], [0, 0, 1, 1], [], []>} : vector<8x32xf32>, vector<32x32xf32>, vector<8x32xf32> -> vector<8x32xf32>
    %118 = arith.addf %113, %117 : vector<8x32xf32>
    %119 = vector.extract_strided_slice %7 {offsets = [176, 0], sizes = [8, 32], strides = [1, 1]} : vector<392x32xf32> to vector<8x32xf32>
    %c22 = arith.constant 22 : index
    %c0_74 = arith.constant 0 : index
    %c0_75 = arith.constant 0 : index
    %120 = vector.load %arg4[%c22, %c0_74, %c0_75] : memref<49x32x32xf32, #tpu.memory_space<vmem>>, vector<1x32x32xf32>
    %121 = vector.shape_cast %120 : vector<1x32x32xf32> to vector<32x32xf32>
    %cst_76 = arith.constant dense<0.000000e+00> : vector<8x32xf32>
    %122 = tpu.matmul %119, %121, %cst_76 {dimension_numbers = #tpu.dot_dimension_numbers<[1], [0], [0], [1], [0, 0, 1, 1], [], []>} : vector<8x32xf32>, vector<32x32xf32>, vector<8x32xf32> -> vector<8x32xf32>
    %123 = arith.addf %118, %122 : vector<8x32xf32>
    %124 = vector.extract_strided_slice %7 {offsets = [184, 0], sizes = [8, 32], strides = [1, 1]} : vector<392x32xf32> to vector<8x32xf32>
    %c23 = arith.constant 23 : index
    %c0_77 = arith.constant 0 : index
    %c0_78 = arith.constant 0 : index
    %125 = vector.load %arg4[%c23, %c0_77, %c0_78] : memref<49x32x32xf32, #tpu.memory_space<vmem>>, vector<1x32x32xf32>
    %126 = vector.shape_cast %125 : vector<1x32x32xf32> to vector<32x32xf32>
    %cst_79 = arith.constant dense<0.000000e+00> : vector<8x32xf32>
    %127 = tpu.matmul %124, %126, %cst_79 {dimension_numbers = #tpu.dot_dimension_numbers<[1], [0], [0], [1], [0, 0, 1, 1], [], []>} : vector<8x32xf32>, vector<32x32xf32>, vector<8x32xf32> -> vector<8x32xf32>
    %128 = arith.addf %123, %127 : vector<8x32xf32>
    %129 = vector.extract_strided_slice %7 {offsets = [192, 0], sizes = [8, 32], strides = [1, 1]} : vector<392x32xf32> to vector<8x32xf32>
    %c24 = arith.constant 24 : index
    %c0_80 = arith.constant 0 : index
    %c0_81 = arith.constant 0 : index
    %130 = vector.load %arg4[%c24, %c0_80, %c0_81] : memref<49x32x32xf32, #tpu.memory_space<vmem>>, vector<1x32x32xf32>
    %131 = vector.shape_cast %130 : vector<1x32x32xf32> to vector<32x32xf32>
    %cst_82 = arith.constant dense<0.000000e+00> : vector<8x32xf32>
    %132 = tpu.matmul %129, %131, %cst_82 {dimension_numbers = #tpu.dot_dimension_numbers<[1], [0], [0], [1], [0, 0, 1, 1], [], []>} : vector<8x32xf32>, vector<32x32xf32>, vector<8x32xf32> -> vector<8x32xf32>
    %133 = arith.addf %128, %132 : vector<8x32xf32>
    %134 = vector.extract_strided_slice %7 {offsets = [200, 0], sizes = [8, 32], strides = [1, 1]} : vector<392x32xf32> to vector<8x32xf32>
    %c25 = arith.constant 25 : index
    %c0_83 = arith.constant 0 : index
    %c0_84 = arith.constant 0 : index
    %135 = vector.load %arg4[%c25, %c0_83, %c0_84] : memref<49x32x32xf32, #tpu.memory_space<vmem>>, vector<1x32x32xf32>
    %136 = vector.shape_cast %135 : vector<1x32x32xf32> to vector<32x32xf32>
    %cst_85 = arith.constant dense<0.000000e+00> : vector<8x32xf32>
    %137 = tpu.matmul %134, %136, %cst_85 {dimension_numbers = #tpu.dot_dimension_numbers<[1], [0], [0], [1], [0, 0, 1, 1], [], []>} : vector<8x32xf32>, vector<32x32xf32>, vector<8x32xf32> -> vector<8x32xf32>
    %138 = arith.addf %133, %137 : vector<8x32xf32>
    %139 = vector.extract_strided_slice %7 {offsets = [208, 0], sizes = [8, 32], strides = [1, 1]} : vector<392x32xf32> to vector<8x32xf32>
    %c26 = arith.constant 26 : index
    %c0_86 = arith.constant 0 : index
    %c0_87 = arith.constant 0 : index
    %140 = vector.load %arg4[%c26, %c0_86, %c0_87] : memref<49x32x32xf32, #tpu.memory_space<vmem>>, vector<1x32x32xf32>
    %141 = vector.shape_cast %140 : vector<1x32x32xf32> to vector<32x32xf32>
    %cst_88 = arith.constant dense<0.000000e+00> : vector<8x32xf32>
    %142 = tpu.matmul %139, %141, %cst_88 {dimension_numbers = #tpu.dot_dimension_numbers<[1], [0], [0], [1], [0, 0, 1, 1], [], []>} : vector<8x32xf32>, vector<32x32xf32>, vector<8x32xf32> -> vector<8x32xf32>
    %143 = arith.addf %138, %142 : vector<8x32xf32>
    %144 = vector.extract_strided_slice %7 {offsets = [216, 0], sizes = [8, 32], strides = [1, 1]} : vector<392x32xf32> to vector<8x32xf32>
    %c27 = arith.constant 27 : index
    %c0_89 = arith.constant 0 : index
    %c0_90 = arith.constant 0 : index
    %145 = vector.load %arg4[%c27, %c0_89, %c0_90] : memref<49x32x32xf32, #tpu.memory_space<vmem>>, vector<1x32x32xf32>
    %146 = vector.shape_cast %145 : vector<1x32x32xf32> to vector<32x32xf32>
    %cst_91 = arith.constant dense<0.000000e+00> : vector<8x32xf32>
    %147 = tpu.matmul %144, %146, %cst_91 {dimension_numbers = #tpu.dot_dimension_numbers<[1], [0], [0], [1], [0, 0, 1, 1], [], []>} : vector<8x32xf32>, vector<32x32xf32>, vector<8x32xf32> -> vector<8x32xf32>
    %148 = arith.addf %143, %147 : vector<8x32xf32>
    %149 = vector.extract_strided_slice %7 {offsets = [224, 0], sizes = [8, 32], strides = [1, 1]} : vector<392x32xf32> to vector<8x32xf32>
    %c28 = arith.constant 28 : index
    %c0_92 = arith.constant 0 : index
    %c0_93 = arith.constant 0 : index
    %150 = vector.load %arg4[%c28, %c0_92, %c0_93] : memref<49x32x32xf32, #tpu.memory_space<vmem>>, vector<1x32x32xf32>
    %151 = vector.shape_cast %150 : vector<1x32x32xf32> to vector<32x32xf32>
    %cst_94 = arith.constant dense<0.000000e+00> : vector<8x32xf32>
    %152 = tpu.matmul %149, %151, %cst_94 {dimension_numbers = #tpu.dot_dimension_numbers<[1], [0], [0], [1], [0, 0, 1, 1], [], []>} : vector<8x32xf32>, vector<32x32xf32>, vector<8x32xf32> -> vector<8x32xf32>
    %153 = arith.addf %148, %152 : vector<8x32xf32>
    %154 = vector.extract_strided_slice %7 {offsets = [232, 0], sizes = [8, 32], strides = [1, 1]} : vector<392x32xf32> to vector<8x32xf32>
    %c29 = arith.constant 29 : index
    %c0_95 = arith.constant 0 : index
    %c0_96 = arith.constant 0 : index
    %155 = vector.load %arg4[%c29, %c0_95, %c0_96] : memref<49x32x32xf32, #tpu.memory_space<vmem>>, vector<1x32x32xf32>
    %156 = vector.shape_cast %155 : vector<1x32x32xf32> to vector<32x32xf32>
    %cst_97 = arith.constant dense<0.000000e+00> : vector<8x32xf32>
    %157 = tpu.matmul %154, %156, %cst_97 {dimension_numbers = #tpu.dot_dimension_numbers<[1], [0], [0], [1], [0, 0, 1, 1], [], []>} : vector<8x32xf32>, vector<32x32xf32>, vector<8x32xf32> -> vector<8x32xf32>
    %158 = arith.addf %153, %157 : vector<8x32xf32>
    %159 = vector.extract_strided_slice %7 {offsets = [240, 0], sizes = [8, 32], strides = [1, 1]} : vector<392x32xf32> to vector<8x32xf32>
    %c30 = arith.constant 30 : index
    %c0_98 = arith.constant 0 : index
    %c0_99 = arith.constant 0 : index
    %160 = vector.load %arg4[%c30, %c0_98, %c0_99] : memref<49x32x32xf32, #tpu.memory_space<vmem>>, vector<1x32x32xf32>
    %161 = vector.shape_cast %160 : vector<1x32x32xf32> to vector<32x32xf32>
    %cst_100 = arith.constant dense<0.000000e+00> : vector<8x32xf32>
    %162 = tpu.matmul %159, %161, %cst_100 {dimension_numbers = #tpu.dot_dimension_numbers<[1], [0], [0], [1], [0, 0, 1, 1], [], []>} : vector<8x32xf32>, vector<32x32xf32>, vector<8x32xf32> -> vector<8x32xf32>
    %163 = arith.addf %158, %162 : vector<8x32xf32>
    %164 = vector.extract_strided_slice %7 {offsets = [248, 0], sizes = [8, 32], strides = [1, 1]} : vector<392x32xf32> to vector<8x32xf32>
    %c31 = arith.constant 31 : index
    %c0_101 = arith.constant 0 : index
    %c0_102 = arith.constant 0 : index
    %165 = vector.load %arg4[%c31, %c0_101, %c0_102] : memref<49x32x32xf32, #tpu.memory_space<vmem>>, vector<1x32x32xf32>
    %166 = vector.shape_cast %165 : vector<1x32x32xf32> to vector<32x32xf32>
    %cst_103 = arith.constant dense<0.000000e+00> : vector<8x32xf32>
    %167 = tpu.matmul %164, %166, %cst_103 {dimension_numbers = #tpu.dot_dimension_numbers<[1], [0], [0], [1], [0, 0, 1, 1], [], []>} : vector<8x32xf32>, vector<32x32xf32>, vector<8x32xf32> -> vector<8x32xf32>
    %168 = arith.addf %163, %167 : vector<8x32xf32>
    %169 = vector.extract_strided_slice %7 {offsets = [256, 0], sizes = [8, 32], strides = [1, 1]} : vector<392x32xf32> to vector<8x32xf32>
    %c32 = arith.constant 32 : index
    %c0_104 = arith.constant 0 : index
    %c0_105 = arith.constant 0 : index
    %170 = vector.load %arg4[%c32, %c0_104, %c0_105] : memref<49x32x32xf32, #tpu.memory_space<vmem>>, vector<1x32x32xf32>
    %171 = vector.shape_cast %170 : vector<1x32x32xf32> to vector<32x32xf32>
    %cst_106 = arith.constant dense<0.000000e+00> : vector<8x32xf32>
    %172 = tpu.matmul %169, %171, %cst_106 {dimension_numbers = #tpu.dot_dimension_numbers<[1], [0], [0], [1], [0, 0, 1, 1], [], []>} : vector<8x32xf32>, vector<32x32xf32>, vector<8x32xf32> -> vector<8x32xf32>
    %173 = arith.addf %168, %172 : vector<8x32xf32>
    %174 = vector.extract_strided_slice %7 {offsets = [264, 0], sizes = [8, 32], strides = [1, 1]} : vector<392x32xf32> to vector<8x32xf32>
    %c33 = arith.constant 33 : index
    %c0_107 = arith.constant 0 : index
    %c0_108 = arith.constant 0 : index
    %175 = vector.load %arg4[%c33, %c0_107, %c0_108] : memref<49x32x32xf32, #tpu.memory_space<vmem>>, vector<1x32x32xf32>
    %176 = vector.shape_cast %175 : vector<1x32x32xf32> to vector<32x32xf32>
    %cst_109 = arith.constant dense<0.000000e+00> : vector<8x32xf32>
    %177 = tpu.matmul %174, %176, %cst_109 {dimension_numbers = #tpu.dot_dimension_numbers<[1], [0], [0], [1], [0, 0, 1, 1], [], []>} : vector<8x32xf32>, vector<32x32xf32>, vector<8x32xf32> -> vector<8x32xf32>
    %178 = arith.addf %173, %177 : vector<8x32xf32>
    %179 = vector.extract_strided_slice %7 {offsets = [272, 0], sizes = [8, 32], strides = [1, 1]} : vector<392x32xf32> to vector<8x32xf32>
    %c34 = arith.constant 34 : index
    %c0_110 = arith.constant 0 : index
    %c0_111 = arith.constant 0 : index
    %180 = vector.load %arg4[%c34, %c0_110, %c0_111] : memref<49x32x32xf32, #tpu.memory_space<vmem>>, vector<1x32x32xf32>
    %181 = vector.shape_cast %180 : vector<1x32x32xf32> to vector<32x32xf32>
    %cst_112 = arith.constant dense<0.000000e+00> : vector<8x32xf32>
    %182 = tpu.matmul %179, %181, %cst_112 {dimension_numbers = #tpu.dot_dimension_numbers<[1], [0], [0], [1], [0, 0, 1, 1], [], []>} : vector<8x32xf32>, vector<32x32xf32>, vector<8x32xf32> -> vector<8x32xf32>
    %183 = arith.addf %178, %182 : vector<8x32xf32>
    %184 = vector.extract_strided_slice %7 {offsets = [280, 0], sizes = [8, 32], strides = [1, 1]} : vector<392x32xf32> to vector<8x32xf32>
    %c35 = arith.constant 35 : index
    %c0_113 = arith.constant 0 : index
    %c0_114 = arith.constant 0 : index
    %185 = vector.load %arg4[%c35, %c0_113, %c0_114] : memref<49x32x32xf32, #tpu.memory_space<vmem>>, vector<1x32x32xf32>
    %186 = vector.shape_cast %185 : vector<1x32x32xf32> to vector<32x32xf32>
    %cst_115 = arith.constant dense<0.000000e+00> : vector<8x32xf32>
    %187 = tpu.matmul %184, %186, %cst_115 {dimension_numbers = #tpu.dot_dimension_numbers<[1], [0], [0], [1], [0, 0, 1, 1], [], []>} : vector<8x32xf32>, vector<32x32xf32>, vector<8x32xf32> -> vector<8x32xf32>
    %188 = arith.addf %183, %187 : vector<8x32xf32>
    %189 = vector.extract_strided_slice %7 {offsets = [288, 0], sizes = [8, 32], strides = [1, 1]} : vector<392x32xf32> to vector<8x32xf32>
    %c36 = arith.constant 36 : index
    %c0_116 = arith.constant 0 : index
    %c0_117 = arith.constant 0 : index
    %190 = vector.load %arg4[%c36, %c0_116, %c0_117] : memref<49x32x32xf32, #tpu.memory_space<vmem>>, vector<1x32x32xf32>
    %191 = vector.shape_cast %190 : vector<1x32x32xf32> to vector<32x32xf32>
    %cst_118 = arith.constant dense<0.000000e+00> : vector<8x32xf32>
    %192 = tpu.matmul %189, %191, %cst_118 {dimension_numbers = #tpu.dot_dimension_numbers<[1], [0], [0], [1], [0, 0, 1, 1], [], []>} : vector<8x32xf32>, vector<32x32xf32>, vector<8x32xf32> -> vector<8x32xf32>
    %193 = arith.addf %188, %192 : vector<8x32xf32>
    %194 = vector.extract_strided_slice %7 {offsets = [296, 0], sizes = [8, 32], strides = [1, 1]} : vector<392x32xf32> to vector<8x32xf32>
    %c37 = arith.constant 37 : index
    %c0_119 = arith.constant 0 : index
    %c0_120 = arith.constant 0 : index
    %195 = vector.load %arg4[%c37, %c0_119, %c0_120] : memref<49x32x32xf32, #tpu.memory_space<vmem>>, vector<1x32x32xf32>
    %196 = vector.shape_cast %195 : vector<1x32x32xf32> to vector<32x32xf32>
    %cst_121 = arith.constant dense<0.000000e+00> : vector<8x32xf32>
    %197 = tpu.matmul %194, %196, %cst_121 {dimension_numbers = #tpu.dot_dimension_numbers<[1], [0], [0], [1], [0, 0, 1, 1], [], []>} : vector<8x32xf32>, vector<32x32xf32>, vector<8x32xf32> -> vector<8x32xf32>
    %198 = arith.addf %193, %197 : vector<8x32xf32>
    %199 = vector.extract_strided_slice %7 {offsets = [304, 0], sizes = [8, 32], strides = [1, 1]} : vector<392x32xf32> to vector<8x32xf32>
    %c38 = arith.constant 38 : index
    %c0_122 = arith.constant 0 : index
    %c0_123 = arith.constant 0 : index
    %200 = vector.load %arg4[%c38, %c0_122, %c0_123] : memref<49x32x32xf32, #tpu.memory_space<vmem>>, vector<1x32x32xf32>
    %201 = vector.shape_cast %200 : vector<1x32x32xf32> to vector<32x32xf32>
    %cst_124 = arith.constant dense<0.000000e+00> : vector<8x32xf32>
    %202 = tpu.matmul %199, %201, %cst_124 {dimension_numbers = #tpu.dot_dimension_numbers<[1], [0], [0], [1], [0, 0, 1, 1], [], []>} : vector<8x32xf32>, vector<32x32xf32>, vector<8x32xf32> -> vector<8x32xf32>
    %203 = arith.addf %198, %202 : vector<8x32xf32>
    %204 = vector.extract_strided_slice %7 {offsets = [312, 0], sizes = [8, 32], strides = [1, 1]} : vector<392x32xf32> to vector<8x32xf32>
    %c39 = arith.constant 39 : index
    %c0_125 = arith.constant 0 : index
    %c0_126 = arith.constant 0 : index
    %205 = vector.load %arg4[%c39, %c0_125, %c0_126] : memref<49x32x32xf32, #tpu.memory_space<vmem>>, vector<1x32x32xf32>
    %206 = vector.shape_cast %205 : vector<1x32x32xf32> to vector<32x32xf32>
    %cst_127 = arith.constant dense<0.000000e+00> : vector<8x32xf32>
    %207 = tpu.matmul %204, %206, %cst_127 {dimension_numbers = #tpu.dot_dimension_numbers<[1], [0], [0], [1], [0, 0, 1, 1], [], []>} : vector<8x32xf32>, vector<32x32xf32>, vector<8x32xf32> -> vector<8x32xf32>
    %208 = arith.addf %203, %207 : vector<8x32xf32>
    %209 = vector.extract_strided_slice %7 {offsets = [320, 0], sizes = [8, 32], strides = [1, 1]} : vector<392x32xf32> to vector<8x32xf32>
    %c40 = arith.constant 40 : index
    %c0_128 = arith.constant 0 : index
    %c0_129 = arith.constant 0 : index
    %210 = vector.load %arg4[%c40, %c0_128, %c0_129] : memref<49x32x32xf32, #tpu.memory_space<vmem>>, vector<1x32x32xf32>
    %211 = vector.shape_cast %210 : vector<1x32x32xf32> to vector<32x32xf32>
    %cst_130 = arith.constant dense<0.000000e+00> : vector<8x32xf32>
    %212 = tpu.matmul %209, %211, %cst_130 {dimension_numbers = #tpu.dot_dimension_numbers<[1], [0], [0], [1], [0, 0, 1, 1], [], []>} : vector<8x32xf32>, vector<32x32xf32>, vector<8x32xf32> -> vector<8x32xf32>
    %213 = arith.addf %208, %212 : vector<8x32xf32>
    %214 = vector.extract_strided_slice %7 {offsets = [328, 0], sizes = [8, 32], strides = [1, 1]} : vector<392x32xf32> to vector<8x32xf32>
    %c41 = arith.constant 41 : index
    %c0_131 = arith.constant 0 : index
    %c0_132 = arith.constant 0 : index
    %215 = vector.load %arg4[%c41, %c0_131, %c0_132] : memref<49x32x32xf32, #tpu.memory_space<vmem>>, vector<1x32x32xf32>
    %216 = vector.shape_cast %215 : vector<1x32x32xf32> to vector<32x32xf32>
    %cst_133 = arith.constant dense<0.000000e+00> : vector<8x32xf32>
    %217 = tpu.matmul %214, %216, %cst_133 {dimension_numbers = #tpu.dot_dimension_numbers<[1], [0], [0], [1], [0, 0, 1, 1], [], []>} : vector<8x32xf32>, vector<32x32xf32>, vector<8x32xf32> -> vector<8x32xf32>
    %218 = arith.addf %213, %217 : vector<8x32xf32>
    %219 = vector.extract_strided_slice %7 {offsets = [336, 0], sizes = [8, 32], strides = [1, 1]} : vector<392x32xf32> to vector<8x32xf32>
    %c42 = arith.constant 42 : index
    %c0_134 = arith.constant 0 : index
    %c0_135 = arith.constant 0 : index
    %220 = vector.load %arg4[%c42, %c0_134, %c0_135] : memref<49x32x32xf32, #tpu.memory_space<vmem>>, vector<1x32x32xf32>
    %221 = vector.shape_cast %220 : vector<1x32x32xf32> to vector<32x32xf32>
    %cst_136 = arith.constant dense<0.000000e+00> : vector<8x32xf32>
    %222 = tpu.matmul %219, %221, %cst_136 {dimension_numbers = #tpu.dot_dimension_numbers<[1], [0], [0], [1], [0, 0, 1, 1], [], []>} : vector<8x32xf32>, vector<32x32xf32>, vector<8x32xf32> -> vector<8x32xf32>
    %223 = arith.addf %218, %222 : vector<8x32xf32>
    %224 = vector.extract_strided_slice %7 {offsets = [344, 0], sizes = [8, 32], strides = [1, 1]} : vector<392x32xf32> to vector<8x32xf32>
    %c43 = arith.constant 43 : index
    %c0_137 = arith.constant 0 : index
    %c0_138 = arith.constant 0 : index
    %225 = vector.load %arg4[%c43, %c0_137, %c0_138] : memref<49x32x32xf32, #tpu.memory_space<vmem>>, vector<1x32x32xf32>
    %226 = vector.shape_cast %225 : vector<1x32x32xf32> to vector<32x32xf32>
    %cst_139 = arith.constant dense<0.000000e+00> : vector<8x32xf32>
    %227 = tpu.matmul %224, %226, %cst_139 {dimension_numbers = #tpu.dot_dimension_numbers<[1], [0], [0], [1], [0, 0, 1, 1], [], []>} : vector<8x32xf32>, vector<32x32xf32>, vector<8x32xf32> -> vector<8x32xf32>
    %228 = arith.addf %223, %227 : vector<8x32xf32>
    %229 = vector.extract_strided_slice %7 {offsets = [352, 0], sizes = [8, 32], strides = [1, 1]} : vector<392x32xf32> to vector<8x32xf32>
    %c44 = arith.constant 44 : index
    %c0_140 = arith.constant 0 : index
    %c0_141 = arith.constant 0 : index
    %230 = vector.load %arg4[%c44, %c0_140, %c0_141] : memref<49x32x32xf32, #tpu.memory_space<vmem>>, vector<1x32x32xf32>
    %231 = vector.shape_cast %230 : vector<1x32x32xf32> to vector<32x32xf32>
    %cst_142 = arith.constant dense<0.000000e+00> : vector<8x32xf32>
    %232 = tpu.matmul %229, %231, %cst_142 {dimension_numbers = #tpu.dot_dimension_numbers<[1], [0], [0], [1], [0, 0, 1, 1], [], []>} : vector<8x32xf32>, vector<32x32xf32>, vector<8x32xf32> -> vector<8x32xf32>
    %233 = arith.addf %228, %232 : vector<8x32xf32>
    %234 = vector.extract_strided_slice %7 {offsets = [360, 0], sizes = [8, 32], strides = [1, 1]} : vector<392x32xf32> to vector<8x32xf32>
    %c45 = arith.constant 45 : index
    %c0_143 = arith.constant 0 : index
    %c0_144 = arith.constant 0 : index
    %235 = vector.load %arg4[%c45, %c0_143, %c0_144] : memref<49x32x32xf32, #tpu.memory_space<vmem>>, vector<1x32x32xf32>
    %236 = vector.shape_cast %235 : vector<1x32x32xf32> to vector<32x32xf32>
    %cst_145 = arith.constant dense<0.000000e+00> : vector<8x32xf32>
    %237 = tpu.matmul %234, %236, %cst_145 {dimension_numbers = #tpu.dot_dimension_numbers<[1], [0], [0], [1], [0, 0, 1, 1], [], []>} : vector<8x32xf32>, vector<32x32xf32>, vector<8x32xf32> -> vector<8x32xf32>
    %238 = arith.addf %233, %237 : vector<8x32xf32>
    %239 = vector.extract_strided_slice %7 {offsets = [368, 0], sizes = [8, 32], strides = [1, 1]} : vector<392x32xf32> to vector<8x32xf32>
    %c46 = arith.constant 46 : index
    %c0_146 = arith.constant 0 : index
    %c0_147 = arith.constant 0 : index
    %240 = vector.load %arg4[%c46, %c0_146, %c0_147] : memref<49x32x32xf32, #tpu.memory_space<vmem>>, vector<1x32x32xf32>
    %241 = vector.shape_cast %240 : vector<1x32x32xf32> to vector<32x32xf32>
    %cst_148 = arith.constant dense<0.000000e+00> : vector<8x32xf32>
    %242 = tpu.matmul %239, %241, %cst_148 {dimension_numbers = #tpu.dot_dimension_numbers<[1], [0], [0], [1], [0, 0, 1, 1], [], []>} : vector<8x32xf32>, vector<32x32xf32>, vector<8x32xf32> -> vector<8x32xf32>
    %243 = arith.addf %238, %242 : vector<8x32xf32>
    %244 = vector.extract_strided_slice %7 {offsets = [376, 0], sizes = [8, 32], strides = [1, 1]} : vector<392x32xf32> to vector<8x32xf32>
    %c47 = arith.constant 47 : index
    %c0_149 = arith.constant 0 : index
    %c0_150 = arith.constant 0 : index
    %245 = vector.load %arg4[%c47, %c0_149, %c0_150] : memref<49x32x32xf32, #tpu.memory_space<vmem>>, vector<1x32x32xf32>
    %246 = vector.shape_cast %245 : vector<1x32x32xf32> to vector<32x32xf32>
    %cst_151 = arith.constant dense<0.000000e+00> : vector<8x32xf32>
    %247 = tpu.matmul %244, %246, %cst_151 {dimension_numbers = #tpu.dot_dimension_numbers<[1], [0], [0], [1], [0, 0, 1, 1], [], []>} : vector<8x32xf32>, vector<32x32xf32>, vector<8x32xf32> -> vector<8x32xf32>
    %248 = arith.addf %243, %247 : vector<8x32xf32>
    %249 = vector.extract_strided_slice %7 {offsets = [384, 0], sizes = [8, 32], strides = [1, 1]} : vector<392x32xf32> to vector<8x32xf32>
    %c48 = arith.constant 48 : index
    %c0_152 = arith.constant 0 : index
    %c0_153 = arith.constant 0 : index
    %250 = vector.load %arg4[%c48, %c0_152, %c0_153] : memref<49x32x32xf32, #tpu.memory_space<vmem>>, vector<1x32x32xf32>
    %251 = vector.shape_cast %250 : vector<1x32x32xf32> to vector<32x32xf32>
    %cst_154 = arith.constant dense<0.000000e+00> : vector<8x32xf32>
    %252 = tpu.matmul %249, %251, %cst_154 {dimension_numbers = #tpu.dot_dimension_numbers<[1], [0], [0], [1], [0, 0, 1, 1], [], []>} : vector<8x32xf32>, vector<32x32xf32>, vector<8x32xf32> -> vector<8x32xf32>
    %253 = arith.addf %248, %252 : vector<8x32xf32>
    %254 = vector.extract_strided_slice %253 {offsets = [0, 0], sizes = [2, 32], strides = [1, 1]} : vector<8x32xf32> to vector<2x32xf32>
    %c0_155 = arith.constant 0 : index
    %c0_156 = arith.constant 0 : index
    %255 = vector.load %arg5[%c0_155, %c0_156] : memref<1x32xf32, #tpu.memory_space<vmem>>, vector<1x32xf32>
    %256 = vector.broadcast %255 : vector<1x32xf32> to vector<2x32xf32>
    %257 = arith.addf %254, %256 : vector<2x32xf32>
    %258 = math.tanh %257 : vector<2x32xf32>
    %c0_157 = arith.constant 0 : index
    %c0_158 = arith.constant 0 : index
    %259 = vector.load %arg6[%c0_157, %c0_158] : memref<2x32xf32, #tpu.memory_space<vmem>>, vector<2x32xf32>
    tpu.vector_store %arg6[%c0_157, %c0_158], %258 {strides = array<i32>} : memref<2x32xf32, #tpu.memory_space<vmem>>, vector<2x32xf32>,
    return
  }
  func.func @transform_0(%arg0: i32) -> (i32, i32) {
    %c0_i32 = arith.constant 0 : i32
    %c0_i32_0 = arith.constant 0 : i32
    %c0_i32_1 = arith.constant 0 : i32
    return %c0_i32, %c0_i32_0 : i32, i32
  }
  func.func @transform_1(%arg0: i32) -> (i32, i32) {
    %c0_i32 = arith.constant 0 : i32
    %c0_i32_0 = arith.constant 0 : i32
    %c0_i32_1 = arith.constant 0 : i32
    return %c0_i32, %c0_i32_0 : i32, i32
  }
  func.func @transform_2(%arg0: i32) -> (i32, i32) {
    %c0_i32 = arith.constant 0 : i32
    %c0_i32_0 = arith.constant 0 : i32
    %c0_i32_1 = arith.constant 0 : i32
    return %c0_i32, %c0_i32_0 : i32, i32
  }
  func.func @transform_3(%arg0: i32) -> (i32, i32, i32) {
    %c0_i32 = arith.constant 0 : i32
    %c0_i32_0 = arith.constant 0 : i32
    %c0_i32_1 = arith.constant 0 : i32
    %c0_i32_2 = arith.constant 0 : i32
    return %c0_i32, %c0_i32_0, %c0_i32_1 : i32, i32, i32
  }
  func.func @transform_4(%arg0: i32) -> (i32, i32) {
    %c0_i32 = arith.constant 0 : i32
    %c0_i32_0 = arith.constant 0 : i32
    %c0_i32_1 = arith.constant 0 : i32
    return %c0_i32, %c0_i32_0 : i32, i32
  }
  func.func @transform_5(%arg0: i32) -> (i32, i32) {
    %c0_i32 = arith.constant 0 : i32
    %c0_i32_0 = arith.constant 0 : i32
    %c0_i32_1 = arith.constant 0 : i32
    return %c0_i32, %c0_i32_0 : i32, i32
  }
}

</mosaic_0001>

<bundles_post_ra>
// kernel: encoder_forward.3
= control target key start
LH: loop header
LB: loop body
LE: loop exit
PB: predicated region body
PF: predicated region fallthrough
CT: control target
= control target key end

     0   :  { %vm984_vm0 = vcmask 261120   ;;  %s2349_s1 = inlined_call_operand.vmem [shape: f32[256,32], index: 1, kind: input, shape index: {}]   ;;  %s2350_s0 = inlined_call_operand.vmem [shape: f32[800,256], index: 0, kind: input, shape index: {}]   ;;  %s2351_s2 = inlined_call_operand.vmem [shape: f32[1,32], index: 2, kind: input, shape index: {}]   ;;  %s2352_s3 = inlined_call_operand.vmem [shape: f32[800,32], index: 3, kind: output, shape index: {}]  }
   0x1   :  { %v229_v0 = vld [vmem:[%s2349_s1 + $0x78] sm:$0xff]  ;;  %v228_v1 = vld [vmem:[%s2349_s1 + $0x70] sm:$0xff]  ;;  %v227_v4 = vld [vmem:[%s2349_s1 + $0x68] sm:$0xff] }
   0x2   :  { %v245_v2 = vld [vmem:[%s2349_s1 + $0xf8] sm:$0xff]  ;;  %1089 = vmatpush.msra.mxu2 %v229_v0  ;;  %v244_v3 = vld [vmem:[%s2349_s1 + $0xf0] sm:$0xff]  ;;  %250 = vmatpush.msra.mxu0 %v229_v0  ;;  %v243_v5 = vld [vmem:[%s2349_s1 + $0xe8] sm:$0xff] }
   0x3   :  { %1105 = vmatpush.msra.mxu3 %v245_v2  ;;  %567 = vmatpush.msra.mxu1 %v245_v2  ;;  %v226_v6 = vld [vmem:[%s2349_s1 + $0x60] sm:$0xff]  ;;  %v225_v8 = vld [vmem:[%s2349_s1 + $0x58] sm:$0xff]  ;;  %v224_v10 = vld [vmem:[%s2349_s1 + $0x50] sm:$0xff] }
   0x4   :  { %1090 = vmatpush.msra.mxu2 %v228_v1  ;;  %251 = vmatpush.msra.mxu0 %v228_v1  ;;  %v242_v7 = vld [vmem:[%s2349_s1 + $0xe0] sm:$0xff]  ;;  %v241_v9 = vld [vmem:[%s2349_s1 + $0xd8] sm:$0xff]  ;;  %v240_v11 = vld [vmem:[%s2349_s1 + $0xd0] sm:$0xff] }
   0x5   :  { %1106 = vmatpush.msra.mxu3 %v244_v3  ;;  %568 = vmatpush.msra.mxu1 %v244_v3  ;;  %v223_v12 = vld [vmem:[%s2349_s1 + $0x48] sm:$0xff]  ;;  %v222_v14 = vld [vmem:[%s2349_s1 + $0x40] sm:$0xff]  ;;  %v221_v16 = vld [vmem:[%s2349_s1 + $0x38] sm:$0xff] }
   0x6   :  { %1091 = vmatpush.msra.mxu2 %v227_v4  ;;  %252 = vmatpush.msra.mxu0 %v227_v4  ;;  %v239_v13 = vld [vmem:[%s2349_s1 + $0xc8] sm:$0xff]  ;;  %v238_v15 = vld [vmem:[%s2349_s1 + $0xc0] sm:$0xff]  ;;  %v237_v17 = vld [vmem:[%s2349_s1 + $0xb8] sm:$0xff] }
   0x7   :  { %1107 = vmatpush.msra.mxu3 %v243_v5  ;;  %569 = vmatpush.msra.mxu1 %v243_v5  ;;  %v220_v18 = vld [vmem:[%s2349_s1 + $0x30] sm:$0xff]  ;;  %v219_v20 = vld [vmem:[%s2349_s1 + $0x28] sm:$0xff]  ;;  %v218_v22 = vld [vmem:[%s2349_s1 + $0x20] sm:$0xff] }
   0x8   :  { %1092 = vmatpush.msra.mxu2 %v226_v6  ;;  %253 = vmatpush.msra.mxu0 %v226_v6  ;;  %v236_v19 = vld [vmem:[%s2349_s1 + $0xb0] sm:$0xff]  ;;  %v235_v21 = vld [vmem:[%s2349_s1 + $0xa8] sm:$0xff]  ;;  %v234_v23 = vld [vmem:[%s2349_s1 + $0xa0] sm:$0xff] }
   0x9   :  { %1108 = vmatpush.msra.mxu3 %v242_v7  ;;  %570 = vmatpush.msra.mxu1 %v242_v7  ;;  %v217_v24 = vld [vmem:[%s2349_s1 + $0x18] sm:$0xff]  ;;  %v216_v26 = vld [vmem:[%s2349_s1 + $0x10] sm:$0xff]  ;;  %v215_v28 = vld [vmem:[%s2349_s1 + $0x8] sm:$0xff] }
   0xa   :  { %1093 = vmatpush.msra.mxu2 %v225_v8  ;;  %254 = vmatpush.msra.mxu0 %v225_v8  ;;  %v233_v25 = vld [vmem:[%s2349_s1 + $0x98] sm:$0xff]  ;;  %v232_v27 = vld [vmem:[%s2349_s1 + $0x90] sm:$0xff]  ;;  %v231_v29 = vld [vmem:[%s2349_s1 + $0x88] sm:$0xff] }
   0xb   :  { %1109 = vmatpush.msra.mxu3 %v241_v9  ;;  %571 = vmatpush.msra.mxu1 %v241_v9  ;;  %v214_v30 = vld [vmem:[%s2349_s1] sm:$0xff]  ;;  %v115_v33 = vld [vmem:[%s2350_s0 + $0x328] sm:$0xff]  ;;  %v116_v36 = vld [vmem:[%s2350_s0 + $0x330] sm:$0xff] }
   0xc   :  { %1094 = vmatpush.msra.mxu2 %v224_v10  ;;  %255 = vmatpush.msra.mxu0 %v224_v10  ;;  %v230_v31 = vld [vmem:[%s2349_s1 + $0x80] sm:$0xff]  ;;  %v15_v35 = vld [vmem:[%s2350_s0 + $0x8] sm:$0xff]  ;;  %v117_v37 = vld [vmem:[%s2350_s0 + $0x338] sm:$0xff] }
   0xd   :  { %1110 = vmatpush.msra.mxu3 %v240_v11  ;;  %572 = vmatpush.msra.mxu1 %v240_v11  ;;  %v114_v32 = vld [vmem:[%s2350_s0 + $0x320] sm:$0xff]  ;;  %v16_v38 = vld [vmem:[%s2350_s0 + $0x10] sm:$0xff]  ;;  %v17_v39 = vld [vmem:[%s2350_s0 + $0x18] sm:$0xff] }
   0xe   :  { %1095 = vmatpush.msra.mxu2 %v223_v12  ;;  %256 = vmatpush.msra.mxu0 %v223_v12  ;;  %v14_v34 = vld [vmem:[%s2350_s0] sm:$0xff]  ;;  %v119_v41 = vld [vmem:[%s2350_s0 + $0x348] sm:$0xff]  ;;  %v120_v44 = vld [vmem:[%s2350_s0 + $0x350] sm:$0xff] }
   0xf   :  { %1111 = vmatpush.msra.mxu3 %v239_v13  ;;  %573 = vmatpush.msra.mxu1 %v239_v13  ;;  %v118_v40 = vld [vmem:[%s2350_s0 + $0x340] sm:$0xff]  ;;  %v19_v43 = vld [vmem:[%s2350_s0 + $0x28] sm:$0xff]  ;;  %v121_v45 = vld [vmem:[%s2350_s0 + $0x358] sm:$0xff] }
  0x10   :  { %1096 = vmatpush.msra.mxu2 %v222_v14  ;;  %257 = vmatpush.msra.mxu0 %v222_v14  ;;  %v18_v42 = vld [vmem:[%s2350_s0 + $0x20] sm:$0xff]  ;;  %v20_v46 = vld [vmem:[%s2350_s0 + $0x30] sm:$0xff]  ;;  %v21_v47 = vld [vmem:[%s2350_s0 + $0x38] sm:$0xff] }
  0x11   :  { %1112 = vmatpush.msra.mxu3 %v238_v15  ;;  %574 = vmatpush.msra.mxu1 %v238_v15  ;;  %v122_v48 = vld [vmem:[%s2350_s0 + $0x360] sm:$0xff]  ;;  %v123_v49 = vld [vmem:[%s2350_s0 + $0x368] sm:$0xff]  ;;  %v124_v52 = vld [vmem:[%s2350_s0 + $0x370] sm:$0xff] }
  0x12   :  { %1097 = vmatpush.msra.mxu2 %v221_v16  ;;  %258 = vmatpush.msra.mxu0 %v221_v16  ;;  %v22_v50 = vld [vmem:[%s2350_s0 + $0x40] sm:$0xff]  ;;  %v23_v51 = vld [vmem:[%s2350_s0 + $0x48] sm:$0xff]  ;;  %v125_v53 = vld [vmem:[%s2350_s0 + $0x378] sm:$0xff] }
  0x13   :  { %1113 = vmatpush.msra.mxu3 %v237_v17  ;;  %575 = vmatpush.msra.mxu1 %v237_v17  ;;  %v24_v54 = vld [vmem:[%s2350_s0 + $0x50] sm:$0xff]  ;;  %v25_v55 = vld [vmem:[%s2350_s0 + $0x58] sm:$0xff]  ;;  %v126_v56 = vld [vmem:[%s2350_s0 + $0x380] sm:$0xff] }
  0x14   :  { %1098 = vmatpush.msra.mxu2 %v220_v18  ;;  %259 = vmatpush.msra.mxu0 %v220_v18  ;;  %v127_v57 = vld [vmem:[%s2350_s0 + $0x388] sm:$0xff]  ;;  %v26_v58 = vld [vmem:[%s2350_s0 + $0x60] sm:$0xff]  ;;  %v128_v60 = vld [vmem:[%s2350_s0 + $0x390] sm:$0xff] }
  0x15   :  { %1114 = vmatpush.msra.mxu3 %v236_v19  ;;  %576 = vmatpush.msra.mxu1 %v236_v19  ;;  %v27_v59 = vld [vmem:[%s2350_s0 + $0x68] sm:$0xff]  ;;  %v129_v61 = vld [vmem:[%s2350_s0 + $0x398] sm:$0xff]  ;;  %v28_v62 = vld [vmem:[%s2350_s0 + $0x70] sm:$0xff] }
  0x16   :  { %1099 = vmatpush.msra.mxu2 %v219_v20  ;;  %260 = vmatpush.msra.mxu0 %v219_v20  ;;  %v29_v63 = vld [vmem:[%s2350_s0 + $0x78] sm:$0xff]  ;;  %v130_v0 = vld [vmem:[%s2350_s0 + $0x3a0] sm:$0xff]  ;;  %v131_v1 = vld [vmem:[%s2350_s0 + $0x3a8] sm:$0xff] }
  0x17   :  { %1115 = vmatpush.msra.mxu3 %v235_v21  ;;  %577 = vmatpush.msra.mxu1 %v235_v21  ;;  %v30_v2 = vld [vmem:[%s2350_s0 + $0x80] sm:$0xff]  ;;  %v31_v3 = vld [vmem:[%s2350_s0 + $0x88] sm:$0xff]  ;;  %v132_v4 = vld [vmem:[%s2350_s0 + $0x3b0] sm:$0xff] }
  0x18   :  { %1100 = vmatpush.msra.mxu2 %v218_v22  ;;  %261 = vmatpush.msra.mxu0 %v218_v22  ;;  %v133_v5 = vld [vmem:[%s2350_s0 + $0x3b8] sm:$0xff]  ;;  %v32_v6 = vld [vmem:[%s2350_s0 + $0x90] sm:$0xff]  ;;  %v134_v8 = vld [vmem:[%s2350_s0 + $0x3c0] sm:$0xff] }
  0x19   :  { %1116 = vmatpush.msra.mxu3 %v234_v23  ;;  %578 = vmatpush.msra.mxu1 %v234_v23  ;;  %v33_v7 = vld [vmem:[%s2350_s0 + $0x98] sm:$0xff]  ;;  %v135_v9 = vld [vmem:[%s2350_s0 + $0x3c8] sm:$0xff]  ;;  %v34_v10 = vld [vmem:[%s2350_s0 + $0xa0] sm:$0xff] }
  0x1a   :  { %1101 = vmatpush.msra.mxu2 %v217_v24  ;;  %262 = vmatpush.msra.mxu0 %v217_v24  ;;  %v35_v11 = vld [vmem:[%s2350_s0 + $0xa8] sm:$0xff]  ;;  %v136_v12 = vld [vmem:[%s2350_s0 + $0x3d0] sm:$0xff]  ;;  %v137_v13 = vld [vmem:[%s2350_s0 + $0x3d8] sm:$0xff] }
  0x1b   :  { %1117 = vmatpush.msra.mxu3 %v233_v25  ;;  %579 = vmatpush.msra.mxu1 %v233_v25  ;;  %v36_v14 = vld [vmem:[%s2350_s0 + $0xb0] sm:$0xff]  ;;  %v37_v15 = vld [vmem:[%s2350_s0 + $0xb8] sm:$0xff]  ;;  %v138_v16 = vld [vmem:[%s2350_s0 + $0x3e0] sm:$0xff] }
  0x1c   :  { %1102 = vmatpush.msra.mxu2 %v216_v26  ;;  %263 = vmatpush.msra.mxu0 %v216_v26  ;;  %v139_v17 = vld [vmem:[%s2350_s0 + $0x3e8] sm:$0xff]  ;;  %v38_v18 = vld [vmem:[%s2350_s0 + $0xc0] sm:$0xff]  ;;  %v140_v20 = vld [vmem:[%s2350_s0 + $0x3f0] sm:$0xff] }
  0x1d   :  { %1118 = vmatpush.msra.mxu3 %v232_v27  ;;  %580 = vmatpush.msra.mxu1 %v232_v27  ;;  %v39_v19 = vld [vmem:[%s2350_s0 + $0xc8] sm:$0xff]  ;;  %v141_v21 = vld [vmem:[%s2350_s0 + $0x3f8] sm:$0xff]  ;;  %v40_v22 = vld [vmem:[%s2350_s0 + $0xd0] sm:$0xff] }
  0x1e   :  { %1103 = vmatpush.msra.mxu2 %v215_v28  ;;  %264 = vmatpush.msra.mxu0 %v215_v28  ;;  %v41_v23 = vld [vmem:[%s2350_s0 + $0xd8] sm:$0xff]  ;;  %v142_v24 = vld [vmem:[%s2350_s0 + $0x400] sm:$0xff]  ;;  %v143_v25 = vld [vmem:[%s2350_s0 + $0x408] sm:$0xff] }
  0x1f   :  { %1119 = vmatpush.msra.mxu3 %v231_v29  ;;  %581 = vmatpush.msra.mxu1 %v231_v29  ;;  %v42_v26 = vld [vmem:[%s2350_s0 + $0xe0] sm:$0xff]  ;;  %v43_v27 = vld [vmem:[%s2350_s0 + $0xe8] sm:$0xff]  ;;  %v144_v28 = vld [vmem:[%s2350_s0 + $0x410] sm:$0xff] }
  0x20   :  { %1104 = vmatpush.msra.mxu2 %v214_v30  ;;  %265 = vmatpush.msra.mxu0 %v214_v30  ;;  %v145_v29 = vld [vmem:[%s2350_s0 + $0x418] sm:$0xff]  ;;  %v44_v30 = vld [vmem:[%s2350_s0 + $0xf0] sm:$0xff] }
  0x21   :  { %1120 = vmatpush.msra.mxu3 %v230_v31  ;;  %416 = vmatmul.f32.vlgmr.msra.gmra.mxu2 %v114_v32  ;;  %v1434_v32 = vld [vmem:[%s2351_s2] ss:$0 sm:$0xff] }
  0x22   :  { %733 = vmatmul.f32.vlgmr.msra.gmra.mxu3 %v115_v33  ;;  %582 = vmatpush.msra.mxu1 %v230_v31  ;;  %v45_v31 = vld [vmem:[%s2350_s0 + $0xf8] sm:$0xff]  ;;  %v146_v33 = vld [vmem:[%s2350_s0 + $0x420] sm:$0xff] }
  0x23   :  { %266 = vmatmul.f32.vlgmr.msra.gmra.mxu0 %v14_v34  ;;  %583 = vmatmul.f32.vlgmr.msra.gmra.mxu1 %v15_v35  ;;  %v147_v34 = vld [vmem:[%s2350_s0 + $0x428] sm:$0xff] }
  0x29   :  { %419 = vmatmul.f32.gmra.mxu2 %v116_v36 }
  0x2a   :  { %736 = vmatmul.f32.gmra.mxu3 %v117_v37  ;;  %v46_v37 = vld [vmem:[%s2350_s0 + $0x100] sm:$0xff] }
  0x2b   :  { %269 = vmatmul.f32.gmra.mxu0 %v16_v38  ;;  %586 = vmatmul.f32.gmra.mxu1 %v17_v39  ;;  %v47_v38 = vld [vmem:[%s2350_s0 + $0x108] sm:$0xff] }
  0x31   :  { %422 = vmatmul.f32.gmra.mxu2 %v118_v40 }
  0x32   :  { %739 = vmatmul.f32.gmra.mxu3 %v119_v41 }
  0x33   :  { %272 = vmatmul.f32.gmra.mxu0 %v18_v42  ;;  %589 = vmatmul.f32.gmra.mxu1 %v19_v43 }
  0x39   :  { %425 = vmatmul.f32.gmra.mxu2 %v120_v44 }
  0x3a   :  { %742 = vmatmul.f32.gmra.mxu3 %v121_v45  ;;  %v148_v45 = vld [vmem:[%s2350_s0 + $0x430] sm:$0xff] }
  0x3b   :  { %275 = vmatmul.f32.gmra.mxu0 %v20_v46  ;;  %592 = vmatmul.f32.gmra.mxu1 %v21_v47  ;;  %v149_v46 = vld [vmem:[%s2350_s0 + $0x438] sm:$0xff] }
  0x41   :  { %428 = vmatmul.f32.gmra.mxu2 %v122_v48 }
  0x42   :  { %745 = vmatmul.f32.gmra.mxu3 %v123_v49 }
  0x43   :  { %278 = vmatmul.f32.gmra.mxu0 %v22_v50  ;;  %595 = vmatmul.f32.gmra.mxu1 %v23_v51  ;;  %v48_v50 = vld [vmem:[%s2350_s0 + $0x110] sm:$0xff]  ;;  %v49_v51 = vld [vmem:[%s2350_s0 + $0x118] sm:$0xff] }
  0x49   :  { %431 = vmatmul.f32.gmra.mxu2 %v124_v52 }
  0x4a   :  { %748 = vmatmul.f32.gmra.mxu3 %v125_v53 }
  0x4b   :  { %281 = vmatmul.f32.gmra.mxu0 %v24_v54  ;;  %598 = vmatmul.f32.gmra.mxu1 %v25_v55 }
  0x51   :  { %434 = vmatmul.f32.gmra.mxu2 %v126_v56 }
  0x52   :  { %751 = vmatmul.f32.gmra.mxu3 %v127_v57 }
  0x53   :  { %284 = vmatmul.f32.gmra.mxu0 %v26_v58  ;;  %601 = vmatmul.f32.gmra.mxu1 %v27_v59  ;;  %v150_v59 = vld [vmem:[%s2350_s0 + $0x440] sm:$0xff] }
  0x59   :  { %437 = vmatmul.f32.gmra.mxu2 %v128_v60  ;;  %v151_v60 = vld [vmem:[%s2350_s0 + $0x448] sm:$0xff] }
  0x5a   :  { %754 = vmatmul.f32.gmra.mxu3 %v129_v61 }
  0x5b   :  { %287 = vmatmul.f32.gmra.mxu0 %v28_v62  ;;  %604 = vmatmul.f32.gmra.mxu1 %v29_v63 }
  0x61   :  { %440 = vmatmul.f32.gmra.mxu2 %v130_v0  ;;  %v50_v0 = vld [vmem:[%s2350_s0 + $0x120] sm:$0xff] }
  0x62   :  { %757 = vmatmul.f32.gmra.mxu3 %v131_v1  ;;  %v51_v1 = vld [vmem:[%s2350_s0 + $0x128] sm:$0xff] }
  0x63   :  { %290 = vmatmul.f32.gmra.mxu0 %v30_v2  ;;  %607 = vmatmul.f32.gmra.mxu1 %v31_v3 }
  0x69   :  { %443 = vmatmul.f32.gmra.mxu2 %v132_v4 }
  0x6a   :  { %760 = vmatmul.f32.gmra.mxu3 %v133_v5 }
  0x6b   :  { %293 = vmatmul.f32.gmra.mxu0 %v32_v6  ;;  %610 = vmatmul.f32.gmra.mxu1 %v33_v7 }
  0x71   :  { %446 = vmatmul.f32.gmra.mxu2 %v134_v8 }
  0x72   :  { %763 = vmatmul.f32.gmra.mxu3 %v135_v9  ;;  %v152_v9 = vld [vmem:[%s2350_s0 + $0x450] sm:$0xff] }
  0x73   :  { %296 = vmatmul.f32.gmra.mxu0 %v34_v10  ;;  %613 = vmatmul.f32.gmra.mxu1 %v35_v11  ;;  %v153_v10 = vld [vmem:[%s2350_s0 + $0x458] sm:$0xff] }
  0x79   :  { %449 = vmatmul.f32.gmra.mxu2 %v136_v12 }
  0x7a   :  { %766 = vmatmul.f32.gmra.mxu3 %v137_v13 }
  0x7b   :  { %299 = vmatmul.f32.gmra.mxu0 %v36_v14  ;;  %616 = vmatmul.f32.gmra.mxu1 %v37_v15  ;;  %v52_v14 = vld [vmem:[%s2350_s0 + $0x130] sm:$0xff]  ;;  %v53_v15 = vld [vmem:[%s2350_s0 + $0x138] sm:$0xff] }
  0x81   :  { %452 = vmatmul.f32.gmra.mxu2 %v138_v16 }
  0x82   :  { %769 = vmatmul.f32.gmra.mxu3 %v139_v17 }
  0x83   :  { %302 = vmatmul.f32.gmra.mxu0 %v38_v18  ;;  %619 = vmatmul.f32.gmra.mxu1 %v39_v19 }
  0x89   :  { %455 = vmatmul.f32.gmra.mxu2 %v140_v20 }
  0x8a   :  { %772 = vmatmul.f32.gmra.mxu3 %v141_v21 }
  0x8b   :  { %305 = vmatmul.f32.gmra.mxu0 %v40_v22  ;;  %622 = vmatmul.f32.gmra.mxu1 %v41_v23  ;;  %v154_v23 = vld [vmem:[%s2350_s0 + $0x460] sm:$0xff] }
  0x91   :  { %458 = vmatmul.f32.gmra.mxu2 %v142_v24  ;;  %v155_v24 = vld [vmem:[%s2350_s0 + $0x468] sm:$0xff] }
  0x92   :  { %775 = vmatmul.f32.gmra.mxu3 %v143_v25 }
  0x93   :  { %308 = vmatmul.f32.gmra.mxu0 %v42_v26  ;;  %625 = vmatmul.f32.gmra.mxu1 %v43_v27 }
  0x99   :  { %461 = vmatmul.f32.gmra.mxu2 %v144_v28  ;;  %v54_v28 = vld [vmem:[%s2350_s0 + $0x140] sm:$0xff] }
  0x9a   :  { %778 = vmatmul.f32.gmra.mxu3 %v145_v29  ;;  %v55_v29 = vld [vmem:[%s2350_s0 + $0x148] sm:$0xff] }
  0x9b   :  { %311 = vmatmul.f32.gmra.mxu0 %v44_v30  ;;  %628 = vmatmul.f32.gmra.mxu1 %v45_v31 }
  0xa0   :  { %v267_v35 = vpop.f32.mrf.mxu0  ;;  %v584_v36 = vpop.f32.mrf.mxu1 }
  0xa1   :  { %464 = vmatmul.f32.gmra.mxu2 %v146_v33  ;;  %v268_v39 = vadd.f32 %v1434_v32, %v267_v35 }
  0xa2   :  { %781 = vmatmul.f32.gmra.mxu3 %v147_v34 }
  0xa3   :  { %v585_v40 = vadd.f32 %v584_v36, %v268_v39  ;;  %314 = vmatmul.f32.gmra.mxu0 %v46_v37  ;;  %631 = vmatmul.f32.gmra.mxu1 %v47_v38  ;;  %v156_v38 = vld [vmem:[%s2350_s0 + $0x470] sm:$0xff]  ;;  %v157_v39 = vld [vmem:[%s2350_s0 + $0x478] sm:$0xff] }
  0xa4   :  { %v417_v41 = vpop.f32.mrf.mxu2 }
  0xa5   :  { %v734_v42 = vpop.f32.mrf.mxu3  ;;  %v418_v43 = vadd.f32 %v1434_v32, %v417_v41  ;;  %v884_v44 = vmax.f32 %v585_v40, 0.0 }
  0xa7   :  { %985 = vst.msk [vmem:[%s2352_s3] sm:$0xff] %vm984_vm0, %v884_v44  ;;  %v735_v47 = vadd.f32 %v734_v42, %v418_v43  ;;  %v56_v43 = vld [vmem:[%s2350_s0 + $0x150] sm:$0xff]  ;;  %v57_v44 = vld [vmem:[%s2350_s0 + $0x158] sm:$0xff] }
  0xa8   :  { %v270_v48 = vpop.f32.mrf.mxu0  ;;  %v587_v49 = vpop.f32.mrf.mxu1 }
  0xa9   :  { %v934_v52 = vmax.f32 %v735_v47, 0.0  ;;  %467 = vmatmul.f32.gmra.mxu2 %v148_v45  ;;  %v271_v53 = vadd.f32 %v1434_v32, %v270_v48 }
  0xaa   :  { %784 = vmatmul.f32.gmra.mxu3 %v149_v46 }
  0xab   :  { %1035 = vst.msk [vmem:[%s2352_s3 + $0x190] sm:$0xff] %vm984_vm0, %v934_v52  ;;  %v588_v54 = vadd.f32 %v587_v49, %v271_v53  ;;  %317 = vmatmul.f32.gmra.mxu0 %v48_v50  ;;  %634 = vmatmul.f32.gmra.mxu1 %v49_v51  ;;  %v158_v52 = vld [vmem:[%s2350_s0 + $0x480] sm:$0xff]  ;;  %v159_v53 = vld [vmem:[%s2350_s0 + $0x488] sm:$0xff] }
  0xac   :  { %v420_v55 = vpop.f32.mrf.mxu2 }
  0xad   :  { %v737_v56 = vpop.f32.mrf.mxu3  ;;  %v421_v57 = vadd.f32 %v1434_v32, %v420_v55  ;;  %v885_v58 = vmax.f32 %v588_v54, 0.0 }
  0xaf   :  { %986 = vst.msk [vmem:[%s2352_s3 + $0x8] sm:$0xff] %vm984_vm0, %v885_v58  ;;  %v738_v61 = vadd.f32 %v737_v56, %v421_v57  ;;  %v58_v57 = vld [vmem:[%s2350_s0 + $0x160] sm:$0xff]  ;;  %v59_v58 = vld [vmem:[%s2350_s0 + $0x168] sm:$0xff] }
  0xb0   :  { %v273_v62 = vpop.f32.mrf.mxu0  ;;  %v590_v63 = vpop.f32.mrf.mxu1 }
  0xb1   :  { %v935_v2 = vmax.f32 %v738_v61, 0.0  ;;  %470 = vmatmul.f32.gmra.mxu2 %v150_v59  ;;  %v274_v3 = vadd.f32 %v1434_v32, %v273_v62 }
  0xb2   :  { %787 = vmatmul.f32.gmra.mxu3 %v151_v60 }
  0xb3   :  { %1036 = vst.msk [vmem:[%s2352_s3 + $0x198] sm:$0xff] %vm984_vm0, %v935_v2  ;;  %v591_v4 = vadd.f32 %v590_v63, %v274_v3  ;;  %320 = vmatmul.f32.gmra.mxu0 %v50_v0  ;;  %637 = vmatmul.f32.gmra.mxu1 %v51_v1  ;;  %v160_v2 = vld [vmem:[%s2350_s0 + $0x490] sm:$0xff]  ;;  %v161_v3 = vld [vmem:[%s2350_s0 + $0x498] sm:$0xff] }
  0xb4   :  { %v423_v5 = vpop.f32.mrf.mxu2 }
  0xb5   :  { %v740_v6 = vpop.f32.mrf.mxu3  ;;  %v424_v7 = vadd.f32 %v1434_v32, %v423_v5  ;;  %v886_v8 = vmax.f32 %v591_v4, 0.0 }
  0xb7   :  { %987 = vst.msk [vmem:[%s2352_s3 + $0x10] sm:$0xff] %vm984_vm0, %v886_v8  ;;  %v741_v11 = vadd.f32 %v740_v6, %v424_v7  ;;  %v60_v7 = vld [vmem:[%s2350_s0 + $0x170] sm:$0xff]  ;;  %v61_v8 = vld [vmem:[%s2350_s0 + $0x178] sm:$0xff] }
  0xb8   :  { %v276_v12 = vpop.f32.mrf.mxu0  ;;  %v593_v13 = vpop.f32.mrf.mxu1 }
  0xb9   :  { %v936_v16 = vmax.f32 %v741_v11, 0.0  ;;  %473 = vmatmul.f32.gmra.mxu2 %v152_v9  ;;  %v277_v17 = vadd.f32 %v1434_v32, %v276_v12 }
  0xba   :  { %790 = vmatmul.f32.gmra.mxu3 %v153_v10 }
  0xbb   :  { %1037 = vst.msk [vmem:[%s2352_s3 + $0x1a0] sm:$0xff] %vm984_vm0, %v936_v16  ;;  %v594_v18 = vadd.f32 %v593_v13, %v277_v17  ;;  %323 = vmatmul.f32.gmra.mxu0 %v52_v14  ;;  %640 = vmatmul.f32.gmra.mxu1 %v53_v15  ;;  %v162_v16 = vld [vmem:[%s2350_s0 + $0x4a0] sm:$0xff]  ;;  %v163_v17 = vld [vmem:[%s2350_s0 + $0x4a8] sm:$0xff] }
  0xbc   :  { %v426_v19 = vpop.f32.mrf.mxu2 }
  0xbd   :  { %v743_v20 = vpop.f32.mrf.mxu3  ;;  %v427_v21 = vadd.f32 %v1434_v32, %v426_v19  ;;  %v887_v22 = vmax.f32 %v594_v18, 0.0 }
  0xbf   :  { %988 = vst.msk [vmem:[%s2352_s3 + $0x18] sm:$0xff] %vm984_vm0, %v887_v22  ;;  %v744_v25 = vadd.f32 %v743_v20, %v427_v21  ;;  %v62_v21 = vld [vmem:[%s2350_s0 + $0x180] sm:$0xff]  ;;  %v63_v22 = vld [vmem:[%s2350_s0 + $0x188] sm:$0xff] }
  0xc0   :  { %v279_v26 = vpop.f32.mrf.mxu0  ;;  %v596_v27 = vpop.f32.mrf.mxu1 }
  0xc1   :  { %v937_v30 = vmax.f32 %v744_v25, 0.0  ;;  %476 = vmatmul.f32.gmra.mxu2 %v154_v23  ;;  %v280_v31 = vadd.f32 %v1434_v32, %v279_v26 }
  0xc2   :  { %793 = vmatmul.f32.gmra.mxu3 %v155_v24 }
  0xc3   :  { %1038 = vst.msk [vmem:[%s2352_s3 + $0x1a8] sm:$0xff] %vm984_vm0, %v937_v30  ;;  %v597_v33 = vadd.f32 %v596_v27, %v280_v31  ;;  %326 = vmatmul.f32.gmra.mxu0 %v54_v28  ;;  %643 = vmatmul.f32.gmra.mxu1 %v55_v29  ;;  %v164_v30 = vld [vmem:[%s2350_s0 + $0x4b0] sm:$0xff]  ;;  %v165_v31 = vld [vmem:[%s2350_s0 + $0x4b8] sm:$0xff] }
  0xc4   :  { %v429_v34 = vpop.f32.mrf.mxu2 }
  0xc5   :  { %v746_v35 = vpop.f32.mrf.mxu3  ;;  %v430_v36 = vadd.f32 %v1434_v32, %v429_v34  ;;  %v888_v37 = vmax.f32 %v597_v33, 0.0 }
  0xc7   :  { %989 = vst.msk [vmem:[%s2352_s3 + $0x20] sm:$0xff] %vm984_vm0, %v888_v37  ;;  %v747_v40 = vadd.f32 %v746_v35, %v430_v36  ;;  %v64_v36 = vld [vmem:[%s2350_s0 + $0x190] sm:$0xff]  ;;  %v65_v37 = vld [vmem:[%s2350_s0 + $0x198] sm:$0xff] }
  0xc8   :  { %v282_v41 = vpop.f32.mrf.mxu0  ;;  %v599_v42 = vpop.f32.mrf.mxu1 }
  0xc9   :  { %v938_v45 = vmax.f32 %v747_v40, 0.0  ;;  %479 = vmatmul.f32.gmra.mxu2 %v156_v38  ;;  %v283_v46 = vadd.f32 %v1434_v32, %v282_v41 }
  0xca   :  { %796 = vmatmul.f32.gmra.mxu3 %v157_v39 }
  0xcb   :  { %1039 = vst.msk [vmem:[%s2352_s3 + $0x1b0] sm:$0xff] %vm984_vm0, %v938_v45  ;;  %v600_v47 = vadd.f32 %v599_v42, %v283_v46  ;;  %329 = vmatmul.f32.gmra.mxu0 %v56_v43  ;;  %646 = vmatmul.f32.gmra.mxu1 %v57_v44  ;;  %v166_v45 = vld [vmem:[%s2350_s0 + $0x4c0] sm:$0xff]  ;;  %v167_v46 = vld [vmem:[%s2350_s0 + $0x4c8] sm:$0xff] }
  0xcc   :  { %v432_v48 = vpop.f32.mrf.mxu2 }
  0xcd   :  { %v749_v49 = vpop.f32.mrf.mxu3  ;;  %v433_v50 = vadd.f32 %v1434_v32, %v432_v48  ;;  %v889_v51 = vmax.f32 %v600_v47, 0.0 }
  0xcf   :  { %990 = vst.msk [vmem:[%s2352_s3 + $0x28] sm:$0xff] %vm984_vm0, %v889_v51  ;;  %v750_v54 = vadd.f32 %v749_v49, %v433_v50  ;;  %v66_v50 = vld [vmem:[%s2350_s0 + $0x1a0] sm:$0xff]  ;;  %v67_v51 = vld [vmem:[%s2350_s0 + $0x1a8] sm:$0xff] }
  0xd0   :  { %v285_v55 = vpop.f32.mrf.mxu0  ;;  %v602_v56 = vpop.f32.mrf.mxu1 }
  0xd1   :  { %v939_v59 = vmax.f32 %v750_v54, 0.0  ;;  %482 = vmatmul.f32.gmra.mxu2 %v158_v52  ;;  %v286_v60 = vadd.f32 %v1434_v32, %v285_v55 }
  0xd2   :  { %799 = vmatmul.f32.gmra.mxu3 %v159_v53 }
  0xd3   :  { %1040 = vst.msk [vmem:[%s2352_s3 + $0x1b8] sm:$0xff] %vm984_vm0, %v939_v59  ;;  %v603_v61 = vadd.f32 %v602_v56, %v286_v60  ;;  %332 = vmatmul.f32.gmra.mxu0 %v58_v57  ;;  %649 = vmatmul.f32.gmra.mxu1 %v59_v58  ;;  %v168_v59 = vld [vmem:[%s2350_s0 + $0x4d0] sm:$0xff]  ;;  %v169_v60 = vld [vmem:[%s2350_s0 + $0x4d8] sm:$0xff] }
  0xd4   :  { %v435_v62 = vpop.f32.mrf.mxu2 }
  0xd5   :  { %v752_v63 = vpop.f32.mrf.mxu3  ;;  %v436_v0 = vadd.f32 %v1434_v32, %v435_v62  ;;  %v890_v1 = vmax.f32 %v603_v61, 0.0 }
  0xd7   :  { %991 = vst.msk [vmem:[%s2352_s3 + $0x30] sm:$0xff] %vm984_vm0, %v890_v1  ;;  %v753_v4 = vadd.f32 %v752_v63, %v436_v0  ;;  %v68_v0 = vld [vmem:[%s2350_s0 + $0x1b0] sm:$0xff]  ;;  %v69_v1 = vld [vmem:[%s2350_s0 + $0x1b8] sm:$0xff] }
  0xd8   :  { %v288_v5 = vpop.f32.mrf.mxu0  ;;  %v605_v6 = vpop.f32.mrf.mxu1 }
  0xd9   :  { %v940_v9 = vmax.f32 %v753_v4, 0.0  ;;  %485 = vmatmul.f32.gmra.mxu2 %v160_v2  ;;  %v289_v10 = vadd.f32 %v1434_v32, %v288_v5 }
  0xda   :  { %802 = vmatmul.f32.gmra.mxu3 %v161_v3 }
  0xdb   :  { %1041 = vst.msk [vmem:[%s2352_s3 + $0x1c0] sm:$0xff] %vm984_vm0, %v940_v9  ;;  %v606_v11 = vadd.f32 %v605_v6, %v289_v10  ;;  %335 = vmatmul.f32.gmra.mxu0 %v60_v7  ;;  %652 = vmatmul.f32.gmra.mxu1 %v61_v8  ;;  %v170_v9 = vld [vmem:[%s2350_s0 + $0x4e0] sm:$0xff]  ;;  %v171_v10 = vld [vmem:[%s2350_s0 + $0x4e8] sm:$0xff] }
  0xdc   :  { %v438_v12 = vpop.f32.mrf.mxu2 }
  0xdd   :  { %v755_v13 = vpop.f32.mrf.mxu3  ;;  %v439_v14 = vadd.f32 %v1434_v32, %v438_v12  ;;  %v891_v15 = vmax.f32 %v606_v11, 0.0 }
  0xdf   :  { %992 = vst.msk [vmem:[%s2352_s3 + $0x38] sm:$0xff] %vm984_vm0, %v891_v15  ;;  %v756_v18 = vadd.f32 %v755_v13, %v439_v14  ;;  %v70_v14 = vld [vmem:[%s2350_s0 + $0x1c0] sm:$0xff]  ;;  %v71_v15 = vld [vmem:[%s2350_s0 + $0x1c8] sm:$0xff] }
  0xe0   :  { %v291_v19 = vpop.f32.mrf.mxu0  ;;  %v608_v20 = vpop.f32.mrf.mxu1 }
  0xe1   :  { %v941_v23 = vmax.f32 %v756_v18, 0.0  ;;  %488 = vmatmul.f32.gmra.mxu2 %v162_v16  ;;  %v292_v24 = vadd.f32 %v1434_v32, %v291_v19 }
  0xe2   :  { %805 = vmatmul.f32.gmra.mxu3 %v163_v17 }
  0xe3   :  { %1042 = vst.msk [vmem:[%s2352_s3 + $0x1c8] sm:$0xff] %vm984_vm0, %v941_v23  ;;  %v609_v25 = vadd.f32 %v608_v20, %v292_v24  ;;  %338 = vmatmul.f32.gmra.mxu0 %v62_v21  ;;  %655 = vmatmul.f32.gmra.mxu1 %v63_v22  ;;  %v172_v23 = vld [vmem:[%s2350_s0 + $0x4f0] sm:$0xff]  ;;  %v173_v24 = vld [vmem:[%s2350_s0 + $0x4f8] sm:$0xff] }
  0xe4   :  { %v441_v26 = vpop.f32.mrf.mxu2 }
  0xe5   :  { %v758_v27 = vpop.f32.mrf.mxu3  ;;  %v442_v28 = vadd.f32 %v1434_v32, %v441_v26  ;;  %v892_v29 = vmax.f32 %v609_v25, 0.0 }
  0xe7   :  { %993 = vst.msk [vmem:[%s2352_s3 + $0x40] sm:$0xff] %vm984_vm0, %v892_v29  ;;  %v759_v33 = vadd.f32 %v758_v27, %v442_v28  ;;  %v72_v28 = vld [vmem:[%s2350_s0 + $0x1d0] sm:$0xff]  ;;  %v73_v29 = vld [vmem:[%s2350_s0 + $0x1d8] sm:$0xff] }
  0xe8   :  { %v294_v34 = vpop.f32.mrf.mxu0  ;;  %v611_v35 = vpop.f32.mrf.mxu1 }
  0xe9   :  { %v942_v38 = vmax.f32 %v759_v33, 0.0  ;;  %491 = vmatmul.f32.gmra.mxu2 %v164_v30  ;;  %v295_v39 = vadd.f32 %v1434_v32, %v294_v34 }
  0xea   :  { %808 = vmatmul.f32.gmra.mxu3 %v165_v31 }
  0xeb   :  { %1043 = vst.msk [vmem:[%s2352_s3 + $0x1d0] sm:$0xff] %vm984_vm0, %v942_v38  ;;  %v612_v40 = vadd.f32 %v611_v35, %v295_v39  ;;  %341 = vmatmul.f32.gmra.mxu0 %v64_v36  ;;  %658 = vmatmul.f32.gmra.mxu1 %v65_v37  ;;  %v174_v38 = vld [vmem:[%s2350_s0 + $0x500] sm:$0xff]  ;;  %v175_v39 = vld [vmem:[%s2350_s0 + $0x508] sm:$0xff] }
  0xec   :  { %v444_v41 = vpop.f32.mrf.mxu2 }
  0xed   :  { %v761_v42 = vpop.f32.mrf.mxu3  ;;  %v445_v43 = vadd.f32 %v1434_v32, %v444_v41  ;;  %v893_v44 = vmax.f32 %v612_v40, 0.0 }
  0xef   :  { %994 = vst.msk [vmem:[%s2352_s3 + $0x48] sm:$0xff] %vm984_vm0, %v893_v44  ;;  %v762_v47 = vadd.f32 %v761_v42, %v445_v43  ;;  %v74_v43 = vld [vmem:[%s2350_s0 + $0x1e0] sm:$0xff]  ;;  %v75_v44 = vld [vmem:[%s2350_s0 + $0x1e8] sm:$0xff] }
  0xf0   :  { %v297_v48 = vpop.f32.mrf.mxu0  ;;  %v614_v49 = vpop.f32.mrf.mxu1 }
  0xf1   :  { %v943_v52 = vmax.f32 %v762_v47, 0.0  ;;  %494 = vmatmul.f32.gmra.mxu2 %v166_v45  ;;  %v298_v53 = vadd.f32 %v1434_v32, %v297_v48 }
  0xf2   :  { %811 = vmatmul.f32.gmra.mxu3 %v167_v46 }
  0xf3   :  { %1044 = vst.msk [vmem:[%s2352_s3 + $0x1d8] sm:$0xff] %vm984_vm0, %v943_v52  ;;  %v615_v54 = vadd.f32 %v614_v49, %v298_v53  ;;  %344 = vmatmul.f32.gmra.mxu0 %v66_v50  ;;  %661 = vmatmul.f32.gmra.mxu1 %v67_v51  ;;  %v176_v52 = vld [vmem:[%s2350_s0 + $0x510] sm:$0xff]  ;;  %v177_v53 = vld [vmem:[%s2350_s0 + $0x518] sm:$0xff] }
  0xf4   :  { %v447_v55 = vpop.f32.mrf.mxu2 }
  0xf5   :  { %v764_v56 = vpop.f32.mrf.mxu3  ;;  %v448_v57 = vadd.f32 %v1434_v32, %v447_v55  ;;  %v894_v58 = vmax.f32 %v615_v54, 0.0 }
  0xf7   :  { %995 = vst.msk [vmem:[%s2352_s3 + $0x50] sm:$0xff] %vm984_vm0, %v894_v58  ;;  %v765_v61 = vadd.f32 %v764_v56, %v448_v57  ;;  %v76_v57 = vld [vmem:[%s2350_s0 + $0x1f0] sm:$0xff]  ;;  %v77_v58 = vld [vmem:[%s2350_s0 + $0x1f8] sm:$0xff] }
  0xf8   :  { %v300_v62 = vpop.f32.mrf.mxu0  ;;  %v617_v63 = vpop.f32.mrf.mxu1 }
  0xf9   :  { %v944_v2 = vmax.f32 %v765_v61, 0.0  ;;  %497 = vmatmul.f32.gmra.mxu2 %v168_v59  ;;  %v301_v3 = vadd.f32 %v1434_v32, %v300_v62 }
  0xfa   :  { %814 = vmatmul.f32.gmra.mxu3 %v169_v60 }
  0xfb   :  { %1045 = vst.msk [vmem:[%s2352_s3 + $0x1e0] sm:$0xff] %vm984_vm0, %v944_v2  ;;  %v618_v4 = vadd.f32 %v617_v63, %v301_v3  ;;  %347 = vmatmul.f32.gmra.mxu0 %v68_v0  ;;  %664 = vmatmul.f32.gmra.mxu1 %v69_v1  ;;  %v178_v2 = vld [vmem:[%s2350_s0 + $0x520] sm:$0xff]  ;;  %v179_v3 = vld [vmem:[%s2350_s0 + $0x528] sm:$0xff] }
  0xfc   :  { %v450_v5 = vpop.f32.mrf.mxu2 }
  0xfd   :  { %v767_v6 = vpop.f32.mrf.mxu3  ;;  %v451_v7 = vadd.f32 %v1434_v32, %v450_v5  ;;  %v895_v8 = vmax.f32 %v618_v4, 0.0 }
  0xff   :  { %996 = vst.msk [vmem:[%s2352_s3 + $0x58] sm:$0xff] %vm984_vm0, %v895_v8  ;;  %v768_v11 = vadd.f32 %v767_v6, %v451_v7  ;;  %v78_v7 = vld [vmem:[%s2350_s0 + $0x200] sm:$0xff]  ;;  %v79_v8 = vld [vmem:[%s2350_s0 + $0x208] sm:$0xff] }
 0x100   :  { %v303_v12 = vpop.f32.mrf.mxu0  ;;  %v620_v13 = vpop.f32.mrf.mxu1 }
 0x101   :  { %v945_v16 = vmax.f32 %v768_v11, 0.0  ;;  %500 = vmatmul.f32.gmra.mxu2 %v170_v9  ;;  %v304_v17 = vadd.f32 %v1434_v32, %v303_v12 }
 0x102   :  { %817 = vmatmul.f32.gmra.mxu3 %v171_v10 }
 0x103   :  { %1046 = vst.msk [vmem:[%s2352_s3 + $0x1e8] sm:$0xff] %vm984_vm0, %v945_v16  ;;  %v621_v18 = vadd.f32 %v620_v13, %v304_v17  ;;  %350 = vmatmul.f32.gmra.mxu0 %v70_v14  ;;  %667 = vmatmul.f32.gmra.mxu1 %v71_v15  ;;  %v180_v16 = vld [vmem:[%s2350_s0 + $0x530] sm:$0xff]  ;;  %v181_v17 = vld [vmem:[%s2350_s0 + $0x538] sm:$0xff] }
 0x104   :  { %v453_v19 = vpop.f32.mrf.mxu2 }
 0x105   :  { %v770_v20 = vpop.f32.mrf.mxu3  ;;  %v454_v21 = vadd.f32 %v1434_v32, %v453_v19  ;;  %v896_v22 = vmax.f32 %v621_v18, 0.0 }
 0x107   :  { %997 = vst.msk [vmem:[%s2352_s3 + $0x60] sm:$0xff] %vm984_vm0, %v896_v22  ;;  %v771_v25 = vadd.f32 %v770_v20, %v454_v21  ;;  %v80_v21 = vld [vmem:[%s2350_s0 + $0x210] sm:$0xff]  ;;  %v81_v22 = vld [vmem:[%s2350_s0 + $0x218] sm:$0xff] }
 0x108   :  { %v306_v26 = vpop.f32.mrf.mxu0  ;;  %v623_v27 = vpop.f32.mrf.mxu1 }
 0x109   :  { %v946_v30 = vmax.f32 %v771_v25, 0.0  ;;  %503 = vmatmul.f32.gmra.mxu2 %v172_v23  ;;  %v307_v31 = vadd.f32 %v1434_v32, %v306_v26 }
 0x10a   :  { %820 = vmatmul.f32.gmra.mxu3 %v173_v24 }
 0x10b   :  { %1047 = vst.msk [vmem:[%s2352_s3 + $0x1f0] sm:$0xff] %vm984_vm0, %v946_v30  ;;  %v624_v33 = vadd.f32 %v623_v27, %v307_v31  ;;  %353 = vmatmul.f32.gmra.mxu0 %v72_v28  ;;  %670 = vmatmul.f32.gmra.mxu1 %v73_v29  ;;  %v182_v30 = vld [vmem:[%s2350_s0 + $0x540] sm:$0xff]  ;;  %v183_v31 = vld [vmem:[%s2350_s0 + $0x548] sm:$0xff] }
 0x10c   :  { %v456_v34 = vpop.f32.mrf.mxu2 }
 0x10d   :  { %v773_v35 = vpop.f32.mrf.mxu3  ;;  %v457_v36 = vadd.f32 %v1434_v32, %v456_v34  ;;  %v897_v37 = vmax.f32 %v624_v33, 0.0 }
 0x10f   :  { %998 = vst.msk [vmem:[%s2352_s3 + $0x68] sm:$0xff] %vm984_vm0, %v897_v37  ;;  %v774_v40 = vadd.f32 %v773_v35, %v457_v36  ;;  %v82_v36 = vld [vmem:[%s2350_s0 + $0x220] sm:$0xff]  ;;  %v83_v37 = vld [vmem:[%s2350_s0 + $0x228] sm:$0xff] }
 0x110   :  { %v309_v41 = vpop.f32.mrf.mxu0  ;;  %v626_v42 = vpop.f32.mrf.mxu1 }
 0x111   :  { %v947_v45 = vmax.f32 %v774_v40, 0.0  ;;  %506 = vmatmul.f32.gmra.mxu2 %v174_v38  ;;  %v310_v46 = vadd.f32 %v1434_v32, %v309_v41 }
 0x112   :  { %823 = vmatmul.f32.gmra.mxu3 %v175_v39 }
 0x113   :  { %1048 = vst.msk [vmem:[%s2352_s3 + $0x1f8] sm:$0xff] %vm984_vm0, %v947_v45  ;;  %v627_v47 = vadd.f32 %v626_v42, %v310_v46  ;;  %356 = vmatmul.f32.gmra.mxu0 %v74_v43  ;;  %673 = vmatmul.f32.gmra.mxu1 %v75_v44  ;;  %v184_v45 = vld [vmem:[%s2350_s0 + $0x550] sm:$0xff]  ;;  %v185_v46 = vld [vmem:[%s2350_s0 + $0x558] sm:$0xff] }
 0x114   :  { %v459_v48 = vpop.f32.mrf.mxu2 }
 0x115   :  { %v776_v49 = vpop.f32.mrf.mxu3  ;;  %v460_v50 = vadd.f32 %v1434_v32, %v459_v48  ;;  %v898_v51 = vmax.f32 %v627_v47, 0.0 }
 0x117   :  { %999 = vst.msk [vmem:[%s2352_s3 + $0x70] sm:$0xff] %vm984_vm0, %v898_v51  ;;  %v777_v54 = vadd.f32 %v776_v49, %v460_v50  ;;  %v84_v50 = vld [vmem:[%s2350_s0 + $0x230] sm:$0xff]  ;;  %v85_v51 = vld [vmem:[%s2350_s0 + $0x238] sm:$0xff] }
 0x118   :  { %v312_v55 = vpop.f32.mrf.mxu0  ;;  %v629_v56 = vpop.f32.mrf.mxu1 }
 0x119   :  { %v948_v59 = vmax.f32 %v777_v54, 0.0  ;;  %509 = vmatmul.f32.gmra.mxu2 %v176_v52  ;;  %v313_v60 = vadd.f32 %v1434_v32, %v312_v55 }
 0x11a   :  { %826 = vmatmul.f32.gmra.mxu3 %v177_v53 }
 0x11b   :  { %1049 = vst.msk [vmem:[%s2352_s3 + $0x200] sm:$0xff] %vm984_vm0, %v948_v59  ;;  %v630_v61 = vadd.f32 %v629_v56, %v313_v60  ;;  %359 = vmatmul.f32.gmra.mxu0 %v76_v57  ;;  %676 = vmatmul.f32.gmra.mxu1 %v77_v58  ;;  %v186_v59 = vld [vmem:[%s2350_s0 + $0x560] sm:$0xff]  ;;  %v187_v60 = vld [vmem:[%s2350_s0 + $0x568] sm:$0xff] }
 0x11c   :  { %v462_v62 = vpop.f32.mrf.mxu2 }
 0x11d   :  { %v779_v63 = vpop.f32.mrf.mxu3  ;;  %v463_v0 = vadd.f32 %v1434_v32, %v462_v62  ;;  %v899_v1 = vmax.f32 %v630_v61, 0.0 }
 0x11f   :  { %1000 = vst.msk [vmem:[%s2352_s3 + $0x78] sm:$0xff] %vm984_vm0, %v899_v1  ;;  %v780_v4 = vadd.f32 %v779_v63, %v463_v0  ;;  %v86_v0 = vld [vmem:[%s2350_s0 + $0x240] sm:$0xff]  ;;  %v87_v1 = vld [vmem:[%s2350_s0 + $0x248] sm:$0xff] }
 0x120   :  { %v315_v5 = vpop.f32.mrf.mxu0  ;;  %v632_v6 = vpop.f32.mrf.mxu1 }
 0x121   :  { %v949_v9 = vmax.f32 %v780_v4, 0.0  ;;  %512 = vmatmul.f32.gmra.mxu2 %v178_v2  ;;  %v316_v10 = vadd.f32 %v1434_v32, %v315_v5 }
 0x122   :  { %829 = vmatmul.f32.gmra.mxu3 %v179_v3 }
 0x123   :  { %1050 = vst.msk [vmem:[%s2352_s3 + $0x208] sm:$0xff] %vm984_vm0, %v949_v9  ;;  %v633_v11 = vadd.f32 %v632_v6, %v316_v10  ;;  %362 = vmatmul.f32.gmra.mxu0 %v78_v7  ;;  %679 = vmatmul.f32.gmra.mxu1 %v79_v8  ;;  %v188_v9 = vld [vmem:[%s2350_s0 + $0x570] sm:$0xff]  ;;  %v189_v10 = vld [vmem:[%s2350_s0 + $0x578] sm:$0xff] }
 0x124   :  { %v465_v12 = vpop.f32.mrf.mxu2 }
 0x125   :  { %v782_v13 = vpop.f32.mrf.mxu3  ;;  %v466_v14 = vadd.f32 %v1434_v32, %v465_v12  ;;  %v900_v15 = vmax.f32 %v633_v11, 0.0 }
 0x127   :  { %1001 = vst.msk [vmem:[%s2352_s3 + $0x80] sm:$0xff] %vm984_vm0, %v900_v15  ;;  %v783_v18 = vadd.f32 %v782_v13, %v466_v14  ;;  %v88_v14 = vld [vmem:[%s2350_s0 + $0x250] sm:$0xff]  ;;  %v89_v15 = vld [vmem:[%s2350_s0 + $0x258] sm:$0xff] }
 0x128   :  { %v318_v19 = vpop.f32.mrf.mxu0  ;;  %v635_v20 = vpop.f32.mrf.mxu1 }
 0x129   :  { %v950_v23 = vmax.f32 %v783_v18, 0.0  ;;  %515 = vmatmul.f32.gmra.mxu2 %v180_v16  ;;  %v319_v24 = vadd.f32 %v1434_v32, %v318_v19 }
 0x12a   :  { %832 = vmatmul.f32.gmra.mxu3 %v181_v17 }
 0x12b   :  { %1051 = vst.msk [vmem:[%s2352_s3 + $0x210] sm:$0xff] %vm984_vm0, %v950_v23  ;;  %v636_v25 = vadd.f32 %v635_v20, %v319_v24  ;;  %365 = vmatmul.f32.gmra.mxu0 %v80_v21  ;;  %682 = vmatmul.f32.gmra.mxu1 %v81_v22  ;;  %v190_v23 = vld [vmem:[%s2350_s0 + $0x580] sm:$0xff]  ;;  %v191_v24 = vld [vmem:[%s2350_s0 + $0x588] sm:$0xff] }
 0x12c   :  { %v468_v26 = vpop.f32.mrf.mxu2 }
 0x12d   :  { %v785_v27 = vpop.f32.mrf.mxu3  ;;  %v469_v28 = vadd.f32 %v1434_v32, %v468_v26  ;;  %v901_v29 = vmax.f32 %v636_v25, 0.0 }
 0x12f   :  { %1002 = vst.msk [vmem:[%s2352_s3 + $0x88] sm:$0xff] %vm984_vm0, %v901_v29  ;;  %v786_v33 = vadd.f32 %v785_v27, %v469_v28  ;;  %v90_v28 = vld [vmem:[%s2350_s0 + $0x260] sm:$0xff]  ;;  %v91_v29 = vld [vmem:[%s2350_s0 + $0x268] sm:$0xff] }
 0x130   :  { %v321_v34 = vpop.f32.mrf.mxu0  ;;  %v638_v35 = vpop.f32.mrf.mxu1 }
 0x131   :  { %v951_v38 = vmax.f32 %v786_v33, 0.0  ;;  %518 = vmatmul.f32.gmra.mxu2 %v182_v30  ;;  %v322_v39 = vadd.f32 %v1434_v32, %v321_v34 }
 0x132   :  { %835 = vmatmul.f32.gmra.mxu3 %v183_v31 }
 0x133   :  { %1052 = vst.msk [vmem:[%s2352_s3 + $0x218] sm:$0xff] %vm984_vm0, %v951_v38  ;;  %v639_v40 = vadd.f32 %v638_v35, %v322_v39  ;;  %368 = vmatmul.f32.gmra.mxu0 %v82_v36  ;;  %685 = vmatmul.f32.gmra.mxu1 %v83_v37  ;;  %v192_v38 = vld [vmem:[%s2350_s0 + $0x590] sm:$0xff]  ;;  %v193_v39 = vld [vmem:[%s2350_s0 + $0x598] sm:$0xff] }
 0x134   :  { %v471_v41 = vpop.f32.mrf.mxu2 }
 0x135   :  { %v788_v42 = vpop.f32.mrf.mxu3  ;;  %v472_v43 = vadd.f32 %v1434_v32, %v471_v41  ;;  %v902_v44 = vmax.f32 %v639_v40, 0.0 }
 0x137   :  { %1003 = vst.msk [vmem:[%s2352_s3 + $0x90] sm:$0xff] %vm984_vm0, %v902_v44  ;;  %v789_v47 = vadd.f32 %v788_v42, %v472_v43  ;;  %v92_v43 = vld [vmem:[%s2350_s0 + $0x270] sm:$0xff]  ;;  %v93_v44 = vld [vmem:[%s2350_s0 + $0x278] sm:$0xff] }
 0x138   :  { %v324_v48 = vpop.f32.mrf.mxu0  ;;  %v641_v49 = vpop.f32.mrf.mxu1 }
 0x139   :  { %v952_v52 = vmax.f32 %v789_v47, 0.0  ;;  %521 = vmatmul.f32.gmra.mxu2 %v184_v45  ;;  %v325_v53 = vadd.f32 %v1434_v32, %v324_v48 }
 0x13a   :  { %838 = vmatmul.f32.gmra.mxu3 %v185_v46 }
 0x13b   :  { %1053 = vst.msk [vmem:[%s2352_s3 + $0x220] sm:$0xff] %vm984_vm0, %v952_v52  ;;  %v642_v54 = vadd.f32 %v641_v49, %v325_v53  ;;  %371 = vmatmul.f32.gmra.mxu0 %v84_v50  ;;  %688 = vmatmul.f32.gmra.mxu1 %v85_v51  ;;  %v194_v52 = vld [vmem:[%s2350_s0 + $0x5a0] sm:$0xff]  ;;  %v195_v53 = vld [vmem:[%s2350_s0 + $0x5a8] sm:$0xff] }
 0x13c   :  { %v474_v55 = vpop.f32.mrf.mxu2 }
 0x13d   :  { %v791_v56 = vpop.f32.mrf.mxu3  ;;  %v475_v57 = vadd.f32 %v1434_v32, %v474_v55  ;;  %v903_v58 = vmax.f32 %v642_v54, 0.0 }
 0x13f   :  { %1004 = vst.msk [vmem:[%s2352_s3 + $0x98] sm:$0xff] %vm984_vm0, %v903_v58  ;;  %v792_v61 = vadd.f32 %v791_v56, %v475_v57  ;;  %v94_v57 = vld [vmem:[%s2350_s0 + $0x280] sm:$0xff]  ;;  %v95_v58 = vld [vmem:[%s2350_s0 + $0x288] sm:$0xff] }
 0x140   :  { %v327_v62 = vpop.f32.mrf.mxu0  ;;  %v644_v63 = vpop.f32.mrf.mxu1 }
 0x141   :  { %v953_v2 = vmax.f32 %v792_v61, 0.0  ;;  %524 = vmatmul.f32.gmra.mxu2 %v186_v59  ;;  %v328_v3 = vadd.f32 %v1434_v32, %v327_v62 }
 0x142   :  { %841 = vmatmul.f32.gmra.mxu3 %v187_v60 }
 0x143   :  { %1054 = vst.msk [vmem:[%s2352_s3 + $0x228] sm:$0xff] %vm984_vm0, %v953_v2  ;;  %v645_v4 = vadd.f32 %v644_v63, %v328_v3  ;;  %374 = vmatmul.f32.gmra.mxu0 %v86_v0  ;;  %691 = vmatmul.f32.gmra.mxu1 %v87_v1  ;;  %v196_v2 = vld [vmem:[%s2350_s0 + $0x5b0] sm:$0xff]  ;;  %v197_v3 = vld [vmem:[%s2350_s0 + $0x5b8] sm:$0xff] }
 0x144   :  { %v477_v5 = vpop.f32.mrf.mxu2 }
 0x145   :  { %v794_v6 = vpop.f32.mrf.mxu3  ;;  %v478_v7 = vadd.f32 %v1434_v32, %v477_v5  ;;  %v904_v8 = vmax.f32 %v645_v4, 0.0 }
 0x147   :  { %1005 = vst.msk [vmem:[%s2352_s3 + $0xa0] sm:$0xff] %vm984_vm0, %v904_v8  ;;  %v795_v11 = vadd.f32 %v794_v6, %v478_v7  ;;  %v96_v7 = vld [vmem:[%s2350_s0 + $0x290] sm:$0xff]  ;;  %v97_v8 = vld [vmem:[%s2350_s0 + $0x298] sm:$0xff] }
 0x148   :  { %v330_v12 = vpop.f32.mrf.mxu0  ;;  %v647_v13 = vpop.f32.mrf.mxu1 }
 0x149   :  { %v954_v16 = vmax.f32 %v795_v11, 0.0  ;;  %527 = vmatmul.f32.gmra.mxu2 %v188_v9  ;;  %v331_v17 = vadd.f32 %v1434_v32, %v330_v12 }
 0x14a   :  { %844 = vmatmul.f32.gmra.mxu3 %v189_v10 }
 0x14b   :  { %1055 = vst.msk [vmem:[%s2352_s3 + $0x230] sm:$0xff] %vm984_vm0, %v954_v16  ;;  %v648_v18 = vadd.f32 %v647_v13, %v331_v17  ;;  %377 = vmatmul.f32.gmra.mxu0 %v88_v14  ;;  %694 = vmatmul.f32.gmra.mxu1 %v89_v15  ;;  %v2002_v14 = vld [vmem:[%s2351_s2] ss:$0 sm:$0xff]  ;;  %v199_v17 = vld [vmem:[%s2350_s0 + $0x5c8] sm:$0xff] }
 0x14c   :  { %v480_v19 = vpop.f32.mrf.mxu2 }
 0x14d   :  { %v797_v20 = vpop.f32.mrf.mxu3  ;;  %v481_v21 = vadd.f32 %v1434_v32, %v480_v19  ;;  %v905_v22 = vmax.f32 %v648_v18, 0.0 }
 0x14f   :  { %1006 = vst.msk [vmem:[%s2352_s3 + $0xa8] sm:$0xff] %vm984_vm0, %v905_v22  ;;  %v798_v25 = vadd.f32 %v797_v20, %v481_v21  ;;  %v98_v21 = vld [vmem:[%s2350_s0 + $0x2a0] sm:$0xff]  ;;  %v99_v22 = vld [vmem:[%s2350_s0 + $0x2a8] sm:$0xff] }
 0x150   :  { %v333_v26 = vpop.f32.mrf.mxu0  ;;  %v650_v27 = vpop.f32.mrf.mxu1 }
 0x151   :  { %v955_v30 = vmax.f32 %v798_v25, 0.0  ;;  %530 = vmatmul.f32.gmra.mxu2 %v190_v23  ;;  %v334_v31 = vadd.f32 %v1434_v32, %v333_v26 }
 0x152   :  { %847 = vmatmul.f32.gmra.mxu3 %v191_v24 }
 0x153   :  { %1056 = vst.msk [vmem:[%s2352_s3 + $0x238] sm:$0xff] %vm984_vm0, %v955_v30  ;;  %v651_v33 = vadd.f32 %v650_v27, %v334_v31  ;;  %380 = vmatmul.f32.gmra.mxu0 %v90_v28  ;;  %697 = vmatmul.f32.gmra.mxu1 %v91_v29  ;;  %v200_v30 = vld [vmem:[%s2350_s0 + $0x5d0] sm:$0xff]  ;;  %v201_v31 = vld [vmem:[%s2350_s0 + $0x5d8] sm:$0xff] }
 0x154   :  { %v483_v34 = vpop.f32.mrf.mxu2 }
 0x155   :  { %v800_v35 = vpop.f32.mrf.mxu3  ;;  %v484_v36 = vadd.f32 %v1434_v32, %v483_v34  ;;  %v906_v37 = vmax.f32 %v651_v33, 0.0 }
 0x157   :  { %1007 = vst.msk [vmem:[%s2352_s3 + $0xb0] sm:$0xff] %vm984_vm0, %v906_v37  ;;  %v801_v40 = vadd.f32 %v800_v35, %v484_v36  ;;  %v100_v36 = vld [vmem:[%s2350_s0 + $0x2b0] sm:$0xff]  ;;  %v101_v37 = vld [vmem:[%s2350_s0 + $0x2b8] sm:$0xff] }
 0x158   :  { %v336_v41 = vpop.f32.mrf.mxu0  ;;  %v653_v42 = vpop.f32.mrf.mxu1 }
 0x159   :  { %v956_v45 = vmax.f32 %v801_v40, 0.0  ;;  %533 = vmatmul.f32.gmra.mxu2 %v192_v38  ;;  %v337_v46 = vadd.f32 %v1434_v32, %v336_v41 }
 0x15a   :  { %850 = vmatmul.f32.gmra.mxu3 %v193_v39 }
 0x15b   :  { %1057 = vst.msk [vmem:[%s2352_s3 + $0x240] sm:$0xff] %vm984_vm0, %v956_v45  ;;  %v654_v47 = vadd.f32 %v653_v42, %v337_v46  ;;  %383 = vmatmul.f32.gmra.mxu0 %v92_v43  ;;  %700 = vmatmul.f32.gmra.mxu1 %v93_v44  ;;  %v202_v45 = vld [vmem:[%s2350_s0 + $0x5e0] sm:$0xff]  ;;  %v203_v46 = vld [vmem:[%s2350_s0 + $0x5e8] sm:$0xff] }
 0x15c   :  { %v486_v48 = vpop.f32.mrf.mxu2 }
 0x15d   :  { %v803_v49 = vpop.f32.mrf.mxu3  ;;  %v487_v50 = vadd.f32 %v1434_v32, %v486_v48  ;;  %v907_v51 = vmax.f32 %v654_v47, 0.0 }
 0x15f   :  { %1008 = vst.msk [vmem:[%s2352_s3 + $0xb8] sm:$0xff] %vm984_vm0, %v907_v51  ;;  %v804_v54 = vadd.f32 %v803_v49, %v487_v50  ;;  %v102_v50 = vld [vmem:[%s2350_s0 + $0x2c0] sm:$0xff]  ;;  %v103_v51 = vld [vmem:[%s2350_s0 + $0x2c8] sm:$0xff] }
 0x160   :  { %v339_v55 = vpop.f32.mrf.mxu0  ;;  %v656_v56 = vpop.f32.mrf.mxu1 }
 0x161   :  { %v957_v59 = vmax.f32 %v804_v54, 0.0  ;;  %536 = vmatmul.f32.gmra.mxu2 %v194_v52  ;;  %v340_v60 = vadd.f32 %v1434_v32, %v339_v55 }
 0x162   :  { %853 = vmatmul.f32.gmra.mxu3 %v195_v53 }
 0x163   :  { %1058 = vst.msk [vmem:[%s2352_s3 + $0x248] sm:$0xff] %vm984_vm0, %v957_v59  ;;  %v657_v61 = vadd.f32 %v656_v56, %v340_v60  ;;  %386 = vmatmul.f32.gmra.mxu0 %v94_v57  ;;  %703 = vmatmul.f32.gmra.mxu1 %v95_v58  ;;  %v204_v59 = vld [vmem:[%s2350_s0 + $0x5f0] sm:$0xff]  ;;  %v205_v60 = vld [vmem:[%s2350_s0 + $0x5f8] sm:$0xff] }
 0x164   :  { %v489_v62 = vpop.f32.mrf.mxu2 }
 0x165   :  { %v806_v63 = vpop.f32.mrf.mxu3  ;;  %v490_v0 = vadd.f32 %v1434_v32, %v489_v62  ;;  %v908_v1 = vmax.f32 %v657_v61, 0.0 }
 0x167   :  { %1009 = vst.msk [vmem:[%s2352_s3 + $0xc0] sm:$0xff] %vm984_vm0, %v908_v1  ;;  %v807_v4 = vadd.f32 %v806_v63, %v490_v0  ;;  %v104_v0 = vld [vmem:[%s2350_s0 + $0x2d0] sm:$0xff]  ;;  %v105_v1 = vld [vmem:[%s2350_s0 + $0x2d8] sm:$0xff] }
 0x168   :  { %v342_v5 = vpop.f32.mrf.mxu0  ;;  %v659_v6 = vpop.f32.mrf.mxu1 }
 0x169   :  { %v958_v9 = vmax.f32 %v807_v4, 0.0  ;;  %539 = vmatmul.f32.gmra.mxu2 %v196_v2  ;;  %v343_v10 = vadd.f32 %v1434_v32, %v342_v5  ;;  %v198_v32 = vld [vmem:[%s2350_s0 + $0x5c0] sm:$0xff] }
 0x16a   :  { %856 = vmatmul.f32.gmra.mxu3 %v197_v3 }
 0x16b   :  { %1059 = vst.msk [vmem:[%s2352_s3 + $0x250] sm:$0xff] %vm984_vm0, %v958_v9  ;;  %v660_v11 = vadd.f32 %v659_v6, %v343_v10  ;;  %389 = vmatmul.f32.gmra.mxu0 %v96_v7  ;;  %706 = vmatmul.f32.gmra.mxu1 %v97_v8  ;;  %v206_v9 = vld [vmem:[%s2350_s0 + $0x600] sm:$0xff]  ;;  %v207_v10 = vld [vmem:[%s2350_s0 + $0x608] sm:$0xff] }
 0x16c   :  { %v492_v12 = vpop.f32.mrf.mxu2 }
 0x16d   :  { %v809_v13 = vpop.f32.mrf.mxu3  ;;  %v493_v15 = vadd.f32 %v2002_v14, %v492_v12  ;;  %v909_v16 = vmax.f32 %v660_v11, 0.0 }
 0x16f   :  { %1010 = vst.msk [vmem:[%s2352_s3 + $0xc8] sm:$0xff] %vm984_vm0, %v909_v16  ;;  %v810_v18 = vadd.f32 %v809_v13, %v493_v15  ;;  %v106_v15 = vld [vmem:[%s2350_s0 + $0x2e0] sm:$0xff]  ;;  %v107_v16 = vld [vmem:[%s2350_s0 + $0x2e8] sm:$0xff] }
 0x170   :  { %v345_v19 = vpop.f32.mrf.mxu0  ;;  %v662_v20 = vpop.f32.mrf.mxu1 }
 0x171   :  { %v959_v23 = vmax.f32 %v810_v18, 0.0  ;;  %542 = vmatmul.f32.gmra.mxu2 %v198_v32  ;;  %v346_v24 = vadd.f32 %v2002_v14, %v345_v19 }
 0x172   :  { %859 = vmatmul.f32.gmra.mxu3 %v199_v17 }
 0x173   :  { %1060 = vst.msk [vmem:[%s2352_s3 + $0x258] sm:$0xff] %vm984_vm0, %v959_v23  ;;  %v663_v25 = vadd.f32 %v662_v20, %v346_v24  ;;  %392 = vmatmul.f32.gmra.mxu0 %v98_v21  ;;  %709 = vmatmul.f32.gmra.mxu1 %v99_v22  ;;  %v208_v23 = vld [vmem:[%s2350_s0 + $0x610] sm:$0xff]  ;;  %v209_v24 = vld [vmem:[%s2350_s0 + $0x618] sm:$0xff] }
 0x174   :  { %v495_v26 = vpop.f32.mrf.mxu2 }
 0x175   :  { %v812_v27 = vpop.f32.mrf.mxu3  ;;  %v496_v28 = vadd.f32 %v2002_v14, %v495_v26  ;;  %v910_v29 = vmax.f32 %v663_v25, 0.0 }
 0x177   :  { %1011 = vst.msk [vmem:[%s2352_s3 + $0xd0] sm:$0xff] %vm984_vm0, %v910_v29  ;;  %v813_v33 = vadd.f32 %v812_v27, %v496_v28  ;;  %v108_v28 = vld [vmem:[%s2350_s0 + $0x2f0] sm:$0xff]  ;;  %v109_v29 = vld [vmem:[%s2350_s0 + $0x2f8] sm:$0xff] }
 0x178   :  { %v348_v34 = vpop.f32.mrf.mxu0  ;;  %v665_v35 = vpop.f32.mrf.mxu1 }
 0x179   :  { %v960_v38 = vmax.f32 %v813_v33, 0.0  ;;  %545 = vmatmul.f32.gmra.mxu2 %v200_v30  ;;  %v349_v39 = vadd.f32 %v2002_v14, %v348_v34 }
 0x17a   :  { %862 = vmatmul.f32.gmra.mxu3 %v201_v31 }
 0x17b   :  { %1061 = vst.msk [vmem:[%s2352_s3 + $0x260] sm:$0xff] %vm984_vm0, %v960_v38  ;;  %v666_v40 = vadd.f32 %v665_v35, %v349_v39  ;;  %395 = vmatmul.f32.gmra.mxu0 %v100_v36  ;;  %712 = vmatmul.f32.gmra.mxu1 %v101_v37  ;;  %v210_v38 = vld [vmem:[%s2350_s0 + $0x620] sm:$0xff]  ;;  %v211_v39 = vld [vmem:[%s2350_s0 + $0x628] sm:$0xff] }
 0x17c   :  { %v498_v41 = vpop.f32.mrf.mxu2 }
 0x17d   :  { %v815_v42 = vpop.f32.mrf.mxu3  ;;  %v499_v43 = vadd.f32 %v2002_v14, %v498_v41  ;;  %v911_v44 = vmax.f32 %v666_v40, 0.0 }
 0x17f   :  { %1012 = vst.msk [vmem:[%s2352_s3 + $0xd8] sm:$0xff] %vm984_vm0, %v911_v44  ;;  %v816_v47 = vadd.f32 %v815_v42, %v499_v43  ;;  %v110_v43 = vld [vmem:[%s2350_s0 + $0x300] sm:$0xff]  ;;  %v111_v44 = vld [vmem:[%s2350_s0 + $0x308] sm:$0xff] }
 0x180   :  { %v351_v48 = vpop.f32.mrf.mxu0  ;;  %v668_v49 = vpop.f32.mrf.mxu1 }
 0x181   :  { %v961_v52 = vmax.f32 %v816_v47, 0.0  ;;  %548 = vmatmul.f32.gmra.mxu2 %v202_v45  ;;  %v352_v53 = vadd.f32 %v2002_v14, %v351_v48 }
 0x182   :  { %865 = vmatmul.f32.gmra.mxu3 %v203_v46 }
 0x183   :  { %1062 = vst.msk [vmem:[%s2352_s3 + $0x268] sm:$0xff] %vm984_vm0, %v961_v52  ;;  %v669_v54 = vadd.f32 %v668_v49, %v352_v53  ;;  %398 = vmatmul.f32.gmra.mxu0 %v102_v50  ;;  %715 = vmatmul.f32.gmra.mxu1 %v103_v51  ;;  %v212_v52 = vld [vmem:[%s2350_s0 + $0x630] sm:$0xff]  ;;  %v213_v53 = vld [vmem:[%s2350_s0 + $0x638] sm:$0xff] }
 0x184   :  { %v501_v55 = vpop.f32.mrf.mxu2 }
 0x185   :  { %v818_v56 = vpop.f32.mrf.mxu3  ;;  %v502_v57 = vadd.f32 %v2002_v14, %v501_v55  ;;  %v912_v58 = vmax.f32 %v669_v54, 0.0 }
 0x187   :  { %1013 = vst.msk [vmem:[%s2352_s3 + $0xe0] sm:$0xff] %vm984_vm0, %v912_v58  ;;  %v819_v61 = vadd.f32 %v818_v56, %v502_v57  ;;  %v112_v57 = vld [vmem:[%s2350_s0 + $0x310] sm:$0xff]  ;;  %v113_v58 = vld [vmem:[%s2350_s0 + $0x318] sm:$0xff] }
 0x188   :  { %v354_v62 = vpop.f32.mrf.mxu0  ;;  %v671_v63 = vpop.f32.mrf.mxu1 }
 0x189   :  { %v962_v2 = vmax.f32 %v819_v61, 0.0  ;;  %551 = vmatmul.f32.gmra.mxu2 %v204_v59  ;;  %v355_v3 = vadd.f32 %v2002_v14, %v354_v62 }
 0x18a   :  { %868 = vmatmul.f32.gmra.mxu3 %v205_v60 }
 0x18b   :  { %1063 = vst.msk [vmem:[%s2352_s3 + $0x270] sm:$0xff] %vm984_vm0, %v962_v2  ;;  %v672_v4 = vadd.f32 %v671_v63, %v355_v3  ;;  %401 = vmatmul.f32.gmra.mxu0 %v104_v0  ;;  %718 = vmatmul.f32.gmra.mxu1 %v105_v1 }
 0x18c   :  { %v504_v5 = vpop.f32.mrf.mxu2 }
 0x18d   :  { %v821_v6 = vpop.f32.mrf.mxu3  ;;  %v505_v7 = vadd.f32 %v2002_v14, %v504_v5  ;;  %v913_v8 = vmax.f32 %v672_v4, 0.0 }
 0x18f   :  { %1014 = vst.msk [vmem:[%s2352_s3 + $0xe8] sm:$0xff] %vm984_vm0, %v913_v8  ;;  %v822_v11 = vadd.f32 %v821_v6, %v505_v7 }
 0x190   :  { %v357_v12 = vpop.f32.mrf.mxu0  ;;  %v674_v13 = vpop.f32.mrf.mxu1 }
 0x191   :  { %v963_v32 = vmax.f32 %v822_v11, 0.0  ;;  %554 = vmatmul.f32.gmra.mxu2 %v206_v9  ;;  %v358_v17 = vadd.f32 %v2002_v14, %v357_v12 }
 0x192   :  { %871 = vmatmul.f32.gmra.mxu3 %v207_v10 }
 0x193   :  { %1064 = vst.msk [vmem:[%s2352_s3 + $0x278] sm:$0xff] %vm984_vm0, %v963_v32  ;;  %v675_v18 = vadd.f32 %v674_v13, %v358_v17  ;;  %404 = vmatmul.f32.gmra.mxu0 %v106_v15  ;;  %721 = vmatmul.f32.gmra.mxu1 %v107_v16 }
 0x194   :  { %v507_v19 = vpop.f32.mrf.mxu2 }
 0x195   :  { %v824_v20 = vpop.f32.mrf.mxu3  ;;  %v508_v21 = vadd.f32 %v2002_v14, %v507_v19  ;;  %v914_v22 = vmax.f32 %v675_v18, 0.0 }
 0x197   :  { %1015 = vst.msk [vmem:[%s2352_s3 + $0xf0] sm:$0xff] %vm984_vm0, %v914_v22  ;;  %v825_v25 = vadd.f32 %v824_v20, %v508_v21 }
 0x198   :  { %v360_v26 = vpop.f32.mrf.mxu0  ;;  %v677_v27 = vpop.f32.mrf.mxu1 }
 0x199   :  { %v964_v30 = vmax.f32 %v825_v25, 0.0  ;;  %557 = vmatmul.f32.gmra.mxu2 %v208_v23  ;;  %v361_v31 = vadd.f32 %v2002_v14, %v360_v26 }
 0x19a   :  { %874 = vmatmul.f32.gmra.mxu3 %v209_v24 }
 0x19b   :  { %1065 = vst.msk [vmem:[%s2352_s3 + $0x280] sm:$0xff] %vm984_vm0, %v964_v30  ;;  %v678_v33 = vadd.f32 %v677_v27, %v361_v31  ;;  %407 = vmatmul.f32.gmra.mxu0 %v108_v28  ;;  %724 = vmatmul.f32.gmra.mxu1 %v109_v29 }
 0x19c   :  { %v510_v34 = vpop.f32.mrf.mxu2 }
 0x19d   :  { %v827_v35 = vpop.f32.mrf.mxu3  ;;  %v511_v36 = vadd.f32 %v2002_v14, %v510_v34  ;;  %v915_v37 = vmax.f32 %v678_v33, 0.0 }
 0x19f   :  { %1016 = vst.msk [vmem:[%s2352_s3 + $0xf8] sm:$0xff] %vm984_vm0, %v915_v37  ;;  %v828_v40 = vadd.f32 %v827_v35, %v511_v36 }
 0x1a0   :  { %v363_v41 = vpop.f32.mrf.mxu0  ;;  %v680_v42 = vpop.f32.mrf.mxu1 }
 0x1a1   :  { %v965_v45 = vmax.f32 %v828_v40, 0.0  ;;  %560 = vmatmul.f32.gmra.mxu2 %v210_v38  ;;  %v364_v46 = vadd.f32 %v2002_v14, %v363_v41 }
 0x1a2   :  { %877 = vmatmul.f32.gmra.mxu3 %v211_v39 }
 0x1a3   :  { %1066 = vst.msk [vmem:[%s2352_s3 + $0x288] sm:$0xff] %vm984_vm0, %v965_v45  ;;  %v681_v47 = vadd.f32 %v680_v42, %v364_v46  ;;  %410 = vmatmul.f32.gmra.mxu0 %v110_v43  ;;  %727 = vmatmul.f32.gmra.mxu1 %v111_v44 }
 0x1a4   :  { %v513_v48 = vpop.f32.mrf.mxu2 }
 0x1a5   :  { %v830_v49 = vpop.f32.mrf.mxu3  ;;  %v514_v50 = vadd.f32 %v2002_v14, %v513_v48  ;;  %v916_v51 = vmax.f32 %v681_v47, 0.0 }
 0x1a7   :  { %1017 = vst.msk [vmem:[%s2352_s3 + $0x100] sm:$0xff] %vm984_vm0, %v916_v51  ;;  %v831_v54 = vadd.f32 %v830_v49, %v514_v50 }
 0x1a8   :  { %v366_v55 = vpop.f32.mrf.mxu0  ;;  %v683_v56 = vpop.f32.mrf.mxu1 }
 0x1a9   :  { %v966_v59 = vmax.f32 %v831_v54, 0.0  ;;  %563 = vmatmul.f32.gmra.mxu2 %v212_v52  ;;  %v367_v60 = vadd.f32 %v2002_v14, %v366_v55 }
 0x1aa   :  { %880 = vmatmul.f32.gmra.mxu3 %v213_v53 }
 0x1ab   :  { %1067 = vst.msk [vmem:[%s2352_s3 + $0x290] sm:$0xff] %vm984_vm0, %v966_v59  ;;  %v684_v61 = vadd.f32 %v683_v56, %v367_v60  ;;  %413 = vmatmul.f32.gmra.mxu0 %v112_v57  ;;  %730 = vmatmul.f32.gmra.mxu1 %v113_v58 }
 0x1ac   :  { %v516_v62 = vpop.f32.mrf.mxu2 }
 0x1ad   :  { %v833_v63 = vpop.f32.mrf.mxu3  ;;  %v517_v0 = vadd.f32 %v2002_v14, %v516_v62  ;;  %v917_v1 = vmax.f32 %v684_v61, 0.0 }
 0x1af   :  { %1018 = vst.msk [vmem:[%s2352_s3 + $0x108] sm:$0xff] %vm984_vm0, %v917_v1  ;;  %v834_v2 = vadd.f32 %v833_v63, %v517_v0 }
 0x1b0   :  { %v369_v3 = vpop.f32.mrf.mxu0  ;;  %v686_v4 = vpop.f32.mrf.mxu1 }
 0x1b1   :  { %v967_v5 = vmax.f32 %v834_v2, 0.0  ;;  %v370_v6 = vadd.f32 %v2002_v14, %v369_v3 }
 0x1b3   :  { %1068 = vst.msk [vmem:[%s2352_s3 + $0x298] sm:$0xff] %vm984_vm0, %v967_v5  ;;  %v687_v7 = vadd.f32 %v686_v4, %v370_v6 }
 0x1b4   :  { %v519_v8 = vpop.f32.mrf.mxu2 }
 0x1b5   :  { %v836_v9 = vpop.f32.mrf.mxu3  ;;  %v520_v10 = vadd.f32 %v2002_v14, %v519_v8  ;;  %v918_v11 = vmax.f32 %v687_v7, 0.0 }
 0x1b7   :  { %1019 = vst.msk [vmem:[%s2352_s3 + $0x110] sm:$0xff] %vm984_vm0, %v918_v11  ;;  %v837_v12 = vadd.f32 %v836_v9, %v520_v10 }
 0x1b8   :  { %v372_v13 = vpop.f32.mrf.mxu0  ;;  %v689_v15 = vpop.f32.mrf.mxu1 }
 0x1b9   :  { %v968_v16 = vmax.f32 %v837_v12, 0.0  ;;  %v373_v32 = vadd.f32 %v2002_v14, %v372_v13 }
 0x1bb   :  { %1069 = vst.msk [vmem:[%s2352_s3 + $0x2a0] sm:$0xff] %vm984_vm0, %v968_v16  ;;  %v690_v17 = vadd.f32 %v689_v15, %v373_v32 }
 0x1bc   :  { %v522_v18 = vpop.f32.mrf.mxu2 }
 0x1bd   :  { %v839_v19 = vpop.f32.mrf.mxu3  ;;  %v523_v20 = vadd.f32 %v2002_v14, %v522_v18  ;;  %v919_v21 = vmax.f32 %v690_v17, 0.0 }
 0x1bf   :  { %1020 = vst.msk [vmem:[%s2352_s3 + $0x118] sm:$0xff] %vm984_vm0, %v919_v21  ;;  %v840_v22 = vadd.f32 %v839_v19, %v523_v20 }
 0x1c0   :  { %v375_v23 = vpop.f32.mrf.mxu0  ;;  %v692_v24 = vpop.f32.mrf.mxu1 }
 0x1c1   :  { %v969_v25 = vmax.f32 %v840_v22, 0.0  ;;  %v376_v26 = vadd.f32 %v2002_v14, %v375_v23 }
 0x1c3   :  { %1070 = vst.msk [vmem:[%s2352_s3 + $0x2a8] sm:$0xff] %vm984_vm0, %v969_v25  ;;  %v693_v27 = vadd.f32 %v692_v24, %v376_v26 }
 0x1c4   :  { %v525_v28 = vpop.f32.mrf.mxu2 }
 0x1c5   :  { %v842_v29 = vpop.f32.mrf.mxu3  ;;  %v526_v30 = vadd.f32 %v2002_v14, %v525_v28  ;;  %v920_v31 = vmax.f32 %v693_v27, 0.0 }
 0x1c7   :  { %1021 = vst.msk [vmem:[%s2352_s3 + $0x120] sm:$0xff] %vm984_vm0, %v920_v31  ;;  %v843_v33 = vadd.f32 %v842_v29, %v526_v30 }
 0x1c8   :  { %v378_v34 = vpop.f32.mrf.mxu0  ;;  %v695_v35 = vpop.f32.mrf.mxu1 }
 0x1c9   :  { %v970_v36 = vmax.f32 %v843_v33, 0.0  ;;  %v379_v37 = vadd.f32 %v2002_v14, %v378_v34 }
 0x1cb   :  { %1071 = vst.msk [vmem:[%s2352_s3 + $0x2b0] sm:$0xff] %vm984_vm0, %v970_v36  ;;  %v696_v38 = vadd.f32 %v695_v35, %v379_v37 }
 0x1cc   :  { %v528_v39 = vpop.f32.mrf.mxu2 }
 0x1cd   :  { %v845_v40 = vpop.f32.mrf.mxu3  ;;  %v529_v41 = vadd.f32 %v2002_v14, %v528_v39  ;;  %v921_v42 = vmax.f32 %v696_v38, 0.0 }
 0x1cf   :  { %1022 = vst.msk [vmem:[%s2352_s3 + $0x128] sm:$0xff] %vm984_vm0, %v921_v42  ;;  %v846_v43 = vadd.f32 %v845_v40, %v529_v41 }
 0x1d0   :  { %v381_v44 = vpop.f32.mrf.mxu0  ;;  %v698_v45 = vpop.f32.mrf.mxu1 }
 0x1d1   :  { %v971_v46 = vmax.f32 %v846_v43, 0.0  ;;  %v382_v47 = vadd.f32 %v2002_v14, %v381_v44 }
 0x1d3   :  { %1072 = vst.msk [vmem:[%s2352_s3 + $0x2b8] sm:$0xff] %vm984_vm0, %v971_v46  ;;  %v699_v48 = vadd.f32 %v698_v45, %v382_v47 }
 0x1d4   :  { %v531_v49 = vpop.f32.mrf.mxu2 }
 0x1d5   :  { %v848_v50 = vpop.f32.mrf.mxu3  ;;  %v532_v51 = vadd.f32 %v2002_v14, %v531_v49  ;;  %v922_v52 = vmax.f32 %v699_v48, 0.0 }
 0x1d7   :  { %1023 = vst.msk [vmem:[%s2352_s3 + $0x130] sm:$0xff] %vm984_vm0, %v922_v52  ;;  %v849_v53 = vadd.f32 %v848_v50, %v532_v51 }
 0x1d8   :  { %v384_v54 = vpop.f32.mrf.mxu0  ;;  %v701_v55 = vpop.f32.mrf.mxu1 }
 0x1d9   :  { %v972_v56 = vmax.f32 %v849_v53, 0.0  ;;  %v385_v57 = vadd.f32 %v2002_v14, %v384_v54 }
 0x1db   :  { %1073 = vst.msk [vmem:[%s2352_s3 + $0x2c0] sm:$0xff] %vm984_vm0, %v972_v56  ;;  %v702_v58 = vadd.f32 %v701_v55, %v385_v57 }
 0x1dc   :  { %v534_v59 = vpop.f32.mrf.mxu2 }
 0x1dd   :  { %v851_v60 = vpop.f32.mrf.mxu3  ;;  %v535_v61 = vadd.f32 %v2002_v14, %v534_v59  ;;  %v923_v62 = vmax.f32 %v702_v58, 0.0 }
 0x1df   :  { %1024 = vst.msk [vmem:[%s2352_s3 + $0x138] sm:$0xff] %vm984_vm0, %v923_v62  ;;  %v852_v63 = vadd.f32 %v851_v60, %v535_v61 }
 0x1e0   :  { %v387_v0 = vpop.f32.mrf.mxu0  ;;  %v704_v1 = vpop.f32.mrf.mxu1 }
 0x1e1   :  { %v973_v2 = vmax.f32 %v852_v63, 0.0  ;;  %v388_v3 = vadd.f32 %v2002_v14, %v387_v0 }
 0x1e3   :  { %1074 = vst.msk [vmem:[%s2352_s3 + $0x2c8] sm:$0xff] %vm984_vm0, %v973_v2  ;;  %v705_v4 = vadd.f32 %v704_v1, %v388_v3 }
 0x1e4   :  { %v537_v5 = vpop.f32.mrf.mxu2 }
 0x1e5   :  { %v854_v6 = vpop.f32.mrf.mxu3  ;;  %v538_v7 = vadd.f32 %v2002_v14, %v537_v5  ;;  %v924_v8 = vmax.f32 %v705_v4, 0.0 }
 0x1e7   :  { %1025 = vst.msk [vmem:[%s2352_s3 + $0x140] sm:$0xff] %vm984_vm0, %v924_v8  ;;  %v855_v9 = vadd.f32 %v854_v6, %v538_v7 }
 0x1e8   :  { %v390_v10 = vpop.f32.mrf.mxu0  ;;  %v707_v11 = vpop.f32.mrf.mxu1 }
 0x1e9   :  { %v974_v12 = vmax.f32 %v855_v9, 0.0  ;;  %v391_v13 = vadd.f32 %v2002_v14, %v390_v10 }
 0x1eb   :  { %1075 = vst.msk [vmem:[%s2352_s3 + $0x2d0] sm:$0xff] %vm984_vm0, %v974_v12  ;;  %v708_v15 = vadd.f32 %v707_v11, %v391_v13 }
 0x1ec   :  { %v540_v16 = vpop.f32.mrf.mxu2 }
 0x1ed   :  { %v857_v32 = vpop.f32.mrf.mxu3  ;;  %v541_v17 = vadd.f32 %v2002_v14, %v540_v16  ;;  %v925_v18 = vmax.f32 %v708_v15, 0.0 }
 0x1ef   :  { %1026 = vst.msk [vmem:[%s2352_s3 + $0x148] sm:$0xff] %vm984_vm0, %v925_v18  ;;  %v858_v19 = vadd.f32 %v857_v32, %v541_v17 }
 0x1f0   :  { %v393_v20 = vpop.f32.mrf.mxu0  ;;  %v710_v21 = vpop.f32.mrf.mxu1 }
 0x1f1   :  { %v975_v22 = vmax.f32 %v858_v19, 0.0  ;;  %v394_v23 = vadd.f32 %v2002_v14, %v393_v20 }
 0x1f3   :  { %1076 = vst.msk [vmem:[%s2352_s3 + $0x2d8] sm:$0xff] %vm984_vm0, %v975_v22  ;;  %v711_v24 = vadd.f32 %v710_v21, %v394_v23 }
 0x1f4   :  { %v543_v25 = vpop.f32.mrf.mxu2 }
 0x1f5   :  { %v860_v26 = vpop.f32.mrf.mxu3  ;;  %v544_v27 = vadd.f32 %v2002_v14, %v543_v25  ;;  %v926_v28 = vmax.f32 %v711_v24, 0.0 }
 0x1f7   :  { %1027 = vst.msk [vmem:[%s2352_s3 + $0x150] sm:$0xff] %vm984_vm0, %v926_v28  ;;  %v861_v29 = vadd.f32 %v860_v26, %v544_v27 }
 0x1f8   :  { %v396_v30 = vpop.f32.mrf.mxu0  ;;  %v713_v31 = vpop.f32.mrf.mxu1 }
 0x1f9   :  { %v976_v33 = vmax.f32 %v861_v29, 0.0  ;;  %v397_v34 = vadd.f32 %v2002_v14, %v396_v30 }
 0x1fb   :  { %1077 = vst.msk [vmem:[%s2352_s3 + $0x2e0] sm:$0xff] %vm984_vm0, %v976_v33  ;;  %v714_v35 = vadd.f32 %v713_v31, %v397_v34 }
 0x1fc   :  { %v546_v36 = vpop.f32.mrf.mxu2 }
 0x1fd   :  { %v863_v37 = vpop.f32.mrf.mxu3  ;;  %v547_v38 = vadd.f32 %v2002_v14, %v546_v36  ;;  %v927_v39 = vmax.f32 %v714_v35, 0.0 }
 0x1ff   :  { %1028 = vst.msk [vmem:[%s2352_s3 + $0x158] sm:$0xff] %vm984_vm0, %v927_v39  ;;  %v864_v40 = vadd.f32 %v863_v37, %v547_v38 }
 0x200   :  { %v399_v41 = vpop.f32.mrf.mxu0  ;;  %v716_v42 = vpop.f32.mrf.mxu1 }
 0x201   :  { %v977_v43 = vmax.f32 %v864_v40, 0.0  ;;  %v400_v44 = vadd.f32 %v2002_v14, %v399_v41 }
 0x203   :  { %1078 = vst.msk [vmem:[%s2352_s3 + $0x2e8] sm:$0xff] %vm984_vm0, %v977_v43  ;;  %v717_v45 = vadd.f32 %v716_v42, %v400_v44 }
 0x204   :  { %v549_v46 = vpop.f32.mrf.mxu2 }
 0x205   :  { %v866_v47 = vpop.f32.mrf.mxu3  ;;  %v550_v48 = vadd.f32 %v2002_v14, %v549_v46  ;;  %v928_v49 = vmax.f32 %v717_v45, 0.0 }
 0x207   :  { %1029 = vst.msk [vmem:[%s2352_s3 + $0x160] sm:$0xff] %vm984_vm0, %v928_v49  ;;  %v867_v50 = vadd.f32 %v866_v47, %v550_v48 }
 0x208   :  { %v402_v51 = vpop.f32.mrf.mxu0  ;;  %v719_v52 = vpop.f32.mrf.mxu1 }
 0x209   :  { %v978_v53 = vmax.f32 %v867_v50, 0.0  ;;  %v403_v54 = vadd.f32 %v2002_v14, %v402_v51 }
 0x20b   :  { %1079 = vst.msk [vmem:[%s2352_s3 + $0x2f0] sm:$0xff] %vm984_vm0, %v978_v53  ;;  %v720_v55 = vadd.f32 %v719_v52, %v403_v54 }
 0x20c   :  { %v552_v56 = vpop.f32.mrf.mxu2 }
 0x20d   :  { %v869_v57 = vpop.f32.mrf.mxu3  ;;  %v553_v58 = vadd.f32 %v2002_v14, %v552_v56  ;;  %v929_v59 = vmax.f32 %v720_v55, 0.0 }
 0x20f   :  { %1030 = vst.msk [vmem:[%s2352_s3 + $0x168] sm:$0xff] %vm984_vm0, %v929_v59  ;;  %v870_v60 = vadd.f32 %v869_v57, %v553_v58 }
 0x210   :  { %v405_v61 = vpop.f32.mrf.mxu0  ;;  %v722_v62 = vpop.f32.mrf.mxu1 }
 0x211   :  { %v979_v63 = vmax.f32 %v870_v60, 0.0  ;;  %v406_v0 = vadd.f32 %v2002_v14, %v405_v61 }
 0x213   :  { %1080 = vst.msk [vmem:[%s2352_s3 + $0x2f8] sm:$0xff] %vm984_vm0, %v979_v63  ;;  %v723_v1 = vadd.f32 %v722_v62, %v406_v0 }
 0x214   :  { %v555_v2 = vpop.f32.mrf.mxu2 }
 0x215   :  { %v872_v3 = vpop.f32.mrf.mxu3  ;;  %v556_v4 = vadd.f32 %v2002_v14, %v555_v2  ;;  %v930_v5 = vmax.f32 %v723_v1, 0.0 }
 0x217   :  { %1031 = vst.msk [vmem:[%s2352_s3 + $0x170] sm:$0xff] %vm984_vm0, %v930_v5  ;;  %v873_v6 = vadd.f32 %v872_v3, %v556_v4 }
 0x218   :  { %v408_v7 = vpop.f32.mrf.mxu0  ;;  %v725_v8 = vpop.f32.mrf.mxu1 }
 0x219   :  { %v980_v9 = vmax.f32 %v873_v6, 0.0  ;;  %v409_v10 = vadd.f32 %v2002_v14, %v408_v7 }
 0x21b   :  { %1081 = vst.msk [vmem:[%s2352_s3 + $0x300] sm:$0xff] %vm984_vm0, %v980_v9  ;;  %v726_v11 = vadd.f32 %v725_v8, %v409_v10 }
 0x21c   :  { %v558_v12 = vpop.f32.mrf.mxu2 }
 0x21d   :  { %v875_v13 = vpop.f32.mrf.mxu3  ;;  %v559_v15 = vadd.f32 %v2002_v14, %v558_v12  ;;  %v931_v16 = vmax.f32 %v726_v11, 0.0 }
 0x21f   :  { %1032 = vst.msk [vmem:[%s2352_s3 + $0x178] sm:$0xff] %vm984_vm0, %v931_v16  ;;  %v876_v32 = vadd.f32 %v875_v13, %v559_v15 }
 0x220   :  { %v411_v17 = vpop.f32.mrf.mxu0  ;;  %v728_v18 = vpop.f32.mrf.mxu1 }
 0x221   :  { %v981_v19 = vmax.f32 %v876_v32, 0.0  ;;  %v412_v20 = vadd.f32 %v2002_v14, %v411_v17 }
 0x223   :  { %1082 = vst.msk [vmem:[%s2352_s3 + $0x308] sm:$0xff] %vm984_vm0, %v981_v19  ;;  %v729_v21 = vadd.f32 %v728_v18, %v412_v20 }
 0x224   :  { %v561_v22 = vpop.f32.mrf.mxu2 }
 0x225   :  { %v878_v23 = vpop.f32.mrf.mxu3  ;;  %v562_v24 = vadd.f32 %v2002_v14, %v561_v22  ;;  %v932_v25 = vmax.f32 %v729_v21, 0.0 }
 0x227   :  { %1033 = vst.msk [vmem:[%s2352_s3 + $0x180] sm:$0xff] %vm984_vm0, %v932_v25  ;;  %v879_v26 = vadd.f32 %v878_v23, %v562_v24 }
 0x228   :  { %v414_v27 = vpop.f32.mrf.mxu0  ;;  %v731_v28 = vpop.f32.mrf.mxu1 }
 0x229   :  { %v982_v29 = vmax.f32 %v879_v26, 0.0  ;;  %v415_v30 = vadd.f32 %v2002_v14, %v414_v27 }
 0x22b   :  { %1083 = vst.msk [vmem:[%s2352_s3 + $0x310] sm:$0xff] %vm984_vm0, %v982_v29  ;;  %v732_v31 = vadd.f32 %v731_v28, %v415_v30 }
 0x22c   :  { %v564_v33 = vpop.f32.mrf.mxu2 }
 0x22d   :  { %v881_v34 = vpop.f32.mrf.mxu3  ;;  %v565_v35 = vadd.f32 %v2002_v14, %v564_v33  ;;  %v933_v36 = vmax.f32 %v732_v31, 0.0 }
 0x22f   :  { %1034 = vst.msk [vmem:[%s2352_s3 + $0x188] sm:$0xff] %vm984_vm0, %v933_v36  ;;  %v882_v37 = vadd.f32 %v881_v34, %v565_v35 }
 0x231   :  { %v983_v38 = vmax.f32 %v882_v37, 0.0 }
 0x233   :  { %1084 = vst.msk [vmem:[%s2352_s3 + $0x318] sm:$0xff] %vm984_vm0, %v983_v38 }

// kernel: encoder_forward.4
= control target key start
LH: loop header
LB: loop body
LE: loop exit
PB: predicated region body
PF: predicated region fallthrough
CT: control target
= control target key end

     0   :  { %vm507_vm0 = vcmask 523264   ;;  %vm528_vm1 = vcmask 517120   ;;  %s1108_s1 = inlined_call_operand.vmem [shape: f32[512,64], index: 1, kind: input, shape index: {}]   ;;  %s1109_s0 = inlined_call_operand.vmem [shape: f32[162,512], index: 0, kind: input, shape index: {}]   ;;  %s1110_s2 = inlined_call_operand.vmem [shape: f32[1,64], index: 2, kind: input, shape index: {}]   ;;  %s1111_s3 = inlined_call_operand.vmem [shape: f32[162,64], index: 3, kind: output, shape index: {}]  }
   0x1   :  { %v145_v0 = vld [vmem:[%s1108_s1 + $0x178] sm:$0xff]  ;;  %v144_v2 = vld [vmem:[%s1108_s1 + $0x170] sm:$0xff]  ;;  %v143_v6 = vld [vmem:[%s1108_s1 + $0x168] sm:$0xff] }
   0x2   :  { %v113_v1 = vld [vmem:[%s1108_s1 + $0x78] sm:$0xff]  ;;  %326 = vmatpush.msra.mxu2 %v145_v0  ;;  %v112_v4 = vld [vmem:[%s1108_s1 + $0x70] sm:$0xff]  ;;  %v111_v8 = vld [vmem:[%s1108_s1 + $0x68] sm:$0xff] }
   0x3   :  { %166 = vmatpush.msra.mxu0 %v113_v1  ;;  %v161_v3 = vld [vmem:[%s1108_s1 + $0x1f8] sm:$0xff]  ;;  %v160_v7 = vld [vmem:[%s1108_s1 + $0x1f0] sm:$0xff]  ;;  %v159_v10 = vld [vmem:[%s1108_s1 + $0x1e8] sm:$0xff] }
   0x4   :  { %v129_v5 = vld [vmem:[%s1108_s1 + $0xf8] sm:$0xff]  ;;  %406 = vmatpush.msra.mxu3 %v161_v3  ;;  %327 = vmatpush.msra.mxu2 %v144_v2  ;;  %v128_v9 = vld [vmem:[%s1108_s1 + $0xf0] sm:$0xff]  ;;  %v142_v11 = vld [vmem:[%s1108_s1 + $0x160] sm:$0xff] }
   0x5   :  { %246 = vmatpush.msra.mxu1 %v129_v5  ;;  %167 = vmatpush.msra.mxu0 %v112_v4  ;;  %v110_v12 = vld [vmem:[%s1108_s1 + $0x60] sm:$0xff]  ;;  %v127_v13 = vld [vmem:[%s1108_s1 + $0xe8] sm:$0xff]  ;;  %v141_v16 = vld [vmem:[%s1108_s1 + $0x158] sm:$0xff] }
   0x6   :  { %407 = vmatpush.msra.mxu3 %v160_v7  ;;  %328 = vmatpush.msra.mxu2 %v143_v6  ;;  %v158_v14 = vld [vmem:[%s1108_s1 + $0x1e0] sm:$0xff]  ;;  %v109_v17 = vld [vmem:[%s1108_s1 + $0x58] sm:$0xff]  ;;  %v140_v20 = vld [vmem:[%s1108_s1 + $0x150] sm:$0xff] }
   0x7   :  { %247 = vmatpush.msra.mxu1 %v128_v9  ;;  %168 = vmatpush.msra.mxu0 %v111_v8  ;;  %v126_v15 = vld [vmem:[%s1108_s1 + $0xe0] sm:$0xff]  ;;  %v157_v18 = vld [vmem:[%s1108_s1 + $0x1d8] sm:$0xff]  ;;  %v108_v21 = vld [vmem:[%s1108_s1 + $0x50] sm:$0xff] }
   0x8   :  { %408 = vmatpush.msra.mxu3 %v159_v10  ;;  %329 = vmatpush.msra.mxu2 %v142_v11  ;;  %v125_v19 = vld [vmem:[%s1108_s1 + $0xd8] sm:$0xff]  ;;  %v156_v22 = vld [vmem:[%s1108_s1 + $0x1d0] sm:$0xff]  ;;  %v139_v24 = vld [vmem:[%s1108_s1 + $0x148] sm:$0xff] }
   0x9   :  { %248 = vmatpush.msra.mxu1 %v127_v13  ;;  %169 = vmatpush.msra.mxu0 %v110_v12  ;;  %v124_v23 = vld [vmem:[%s1108_s1 + $0xd0] sm:$0xff]  ;;  %v107_v25 = vld [vmem:[%s1108_s1 + $0x48] sm:$0xff]  ;;  %v138_v28 = vld [vmem:[%s1108_s1 + $0x140] sm:$0xff] }
   0xa   :  { %409 = vmatpush.msra.mxu3 %v158_v14  ;;  %330 = vmatpush.msra.mxu2 %v141_v16  ;;  %v155_v26 = vld [vmem:[%s1108_s1 + $0x1c8] sm:$0xff]  ;;  %v106_v29 = vld [vmem:[%s1108_s1 + $0x40] sm:$0xff]  ;;  %v137_v32 = vld [vmem:[%s1108_s1 + $0x138] sm:$0xff] }
   0xb   :  { %249 = vmatpush.msra.mxu1 %v126_v15  ;;  %170 = vmatpush.msra.mxu0 %v109_v17  ;;  %v123_v27 = vld [vmem:[%s1108_s1 + $0xc8] sm:$0xff]  ;;  %v154_v30 = vld [vmem:[%s1108_s1 + $0x1c0] sm:$0xff]  ;;  %v105_v33 = vld [vmem:[%s1108_s1 + $0x38] sm:$0xff] }
   0xc   :  { %410 = vmatpush.msra.mxu3 %v157_v18  ;;  %331 = vmatpush.msra.mxu2 %v140_v20  ;;  %v122_v31 = vld [vmem:[%s1108_s1 + $0xc0] sm:$0xff]  ;;  %v153_v34 = vld [vmem:[%s1108_s1 + $0x1b8] sm:$0xff]  ;;  %v136_v36 = vld [vmem:[%s1108_s1 + $0x130] sm:$0xff] }
   0xd   :  { %250 = vmatpush.msra.mxu1 %v125_v19  ;;  %171 = vmatpush.msra.mxu0 %v108_v21  ;;  %v121_v35 = vld [vmem:[%s1108_s1 + $0xb8] sm:$0xff]  ;;  %v104_v37 = vld [vmem:[%s1108_s1 + $0x30] sm:$0xff]  ;;  %v135_v40 = vld [vmem:[%s1108_s1 + $0x128] sm:$0xff] }
   0xe   :  { %411 = vmatpush.msra.mxu3 %v156_v22  ;;  %332 = vmatpush.msra.mxu2 %v139_v24  ;;  %v152_v38 = vld [vmem:[%s1108_s1 + $0x1b0] sm:$0xff]  ;;  %v103_v41 = vld [vmem:[%s1108_s1 + $0x28] sm:$0xff]  ;;  %v134_v44 = vld [vmem:[%s1108_s1 + $0x120] sm:$0xff] }
   0xf   :  { %251 = vmatpush.msra.mxu1 %v124_v23  ;;  %172 = vmatpush.msra.mxu0 %v107_v25  ;;  %v120_v39 = vld [vmem:[%s1108_s1 + $0xb0] sm:$0xff]  ;;  %v151_v42 = vld [vmem:[%s1108_s1 + $0x1a8] sm:$0xff]  ;;  %v102_v45 = vld [vmem:[%s1108_s1 + $0x20] sm:$0xff] }
  0x10   :  { %412 = vmatpush.msra.mxu3 %v155_v26  ;;  %333 = vmatpush.msra.mxu2 %v138_v28  ;;  %v119_v43 = vld [vmem:[%s1108_s1 + $0xa8] sm:$0xff]  ;;  %v150_v46 = vld [vmem:[%s1108_s1 + $0x1a0] sm:$0xff]  ;;  %v133_v48 = vld [vmem:[%s1108_s1 + $0x118] sm:$0xff] }
  0x11   :  { %252 = vmatpush.msra.mxu1 %v123_v27  ;;  %173 = vmatpush.msra.mxu0 %v106_v29  ;;  %v118_v47 = vld [vmem:[%s1108_s1 + $0xa0] sm:$0xff]  ;;  %v101_v49 = vld [vmem:[%s1108_s1 + $0x18] sm:$0xff]  ;;  %v132_v52 = vld [vmem:[%s1108_s1 + $0x110] sm:$0xff] }
  0x12   :  { %413 = vmatpush.msra.mxu3 %v154_v30  ;;  %334 = vmatpush.msra.mxu2 %v137_v32  ;;  %v149_v50 = vld [vmem:[%s1108_s1 + $0x198] sm:$0xff]  ;;  %v100_v53 = vld [vmem:[%s1108_s1 + $0x10] sm:$0xff]  ;;  %v131_v56 = vld [vmem:[%s1108_s1 + $0x108] sm:$0xff] }
  0x13   :  { %253 = vmatpush.msra.mxu1 %v122_v31  ;;  %174 = vmatpush.msra.mxu0 %v105_v33  ;;  %v117_v51 = vld [vmem:[%s1108_s1 + $0x98] sm:$0xff]  ;;  %v148_v54 = vld [vmem:[%s1108_s1 + $0x190] sm:$0xff]  ;;  %v99_v57 = vld [vmem:[%s1108_s1 + $0x8] sm:$0xff] }
  0x14   :  { %414 = vmatpush.msra.mxu3 %v153_v34  ;;  %335 = vmatpush.msra.mxu2 %v136_v36  ;;  %v116_v55 = vld [vmem:[%s1108_s1 + $0x90] sm:$0xff]  ;;  %v147_v58 = vld [vmem:[%s1108_s1 + $0x188] sm:$0xff]  ;;  %v130_v60 = vld [vmem:[%s1108_s1 + $0x100] sm:$0xff] }
  0x15   :  { %254 = vmatpush.msra.mxu1 %v121_v35  ;;  %175 = vmatpush.msra.mxu0 %v104_v37  ;;  %v115_v59 = vld [vmem:[%s1108_s1 + $0x88] sm:$0xff]  ;;  %v98_v61 = vld [vmem:[%s1108_s1] sm:$0xff]  ;;  %v16_v62 = vld [vmem:[%s1109_s0 + $0x10] sm:$0xff] }
  0x16   :  { %415 = vmatpush.msra.mxu3 %v152_v38  ;;  %336 = vmatpush.msra.mxu2 %v135_v40  ;;  %v146_v63 = vld [vmem:[%s1108_s1 + $0x180] sm:$0xff]  ;;  %v17_v1 = vld [vmem:[%s1109_s0 + $0x18] sm:$0xff]  ;;  %v15_v3 = vld [vmem:[%s1109_s0 + $0x8] sm:$0xff] }
  0x17   :  { %255 = vmatpush.msra.mxu1 %v120_v39  ;;  %176 = vmatpush.msra.mxu0 %v103_v41  ;;  %v14_v0 = vld [vmem:[%s1109_s0] sm:$0xff]  ;;  %v20_v4 = vld [vmem:[%s1109_s0 + $0x30] sm:$0xff]  ;;  %v21_v6 = vld [vmem:[%s1109_s0 + $0x38] sm:$0xff] }
  0x18   :  { %416 = vmatpush.msra.mxu3 %v151_v42  ;;  %337 = vmatpush.msra.mxu2 %v134_v44  ;;  %v114_v2 = vld [vmem:[%s1108_s1 + $0x80] sm:$0xff]  ;;  %v19_v7 = vld [vmem:[%s1109_s0 + $0x28] sm:$0xff]  ;;  %v24_v8 = vld [vmem:[%s1109_s0 + $0x50] sm:$0xff] }
  0x19   :  { %256 = vmatpush.msra.mxu1 %v119_v43  ;;  %177 = vmatpush.msra.mxu0 %v102_v45  ;;  %v18_v5 = vld [vmem:[%s1109_s0 + $0x20] sm:$0xff]  ;;  %v25_v10 = vld [vmem:[%s1109_s0 + $0x58] sm:$0xff]  ;;  %v23_v11 = vld [vmem:[%s1109_s0 + $0x48] sm:$0xff] }
  0x1a   :  { %417 = vmatpush.msra.mxu3 %v150_v46  ;;  %338 = vmatpush.msra.mxu2 %v133_v48  ;;  %v22_v9 = vld [vmem:[%s1109_s0 + $0x40] sm:$0xff]  ;;  %v28_v12 = vld [vmem:[%s1109_s0 + $0x70] sm:$0xff]  ;;  %v29_v14 = vld [vmem:[%s1109_s0 + $0x78] sm:$0xff] }
  0x1b   :  { %257 = vmatpush.msra.mxu1 %v118_v47  ;;  %178 = vmatpush.msra.mxu0 %v101_v49  ;;  %v26_v13 = vld [vmem:[%s1109_s0 + $0x60] sm:$0xff]  ;;  %v27_v15 = vld [vmem:[%s1109_s0 + $0x68] sm:$0xff]  ;;  %v32_v16 = vld [vmem:[%s1109_s0 + $0x90] sm:$0xff] }
  0x1c   :  { %418 = vmatpush.msra.mxu3 %v149_v50  ;;  %339 = vmatpush.msra.mxu2 %v132_v52  ;;  %v30_v17 = vld [vmem:[%s1109_s0 + $0x80] sm:$0xff]  ;;  %v33_v18 = vld [vmem:[%s1109_s0 + $0x98] sm:$0xff]  ;;  %v31_v19 = vld [vmem:[%s1109_s0 + $0x88] sm:$0xff] }
  0x1d   :  { %258 = vmatpush.msra.mxu1 %v117_v51  ;;  %179 = vmatpush.msra.mxu0 %v100_v53  ;;  %v36_v20 = vld [vmem:[%s1109_s0 + $0xb0] sm:$0xff]  ;;  %v34_v21 = vld [vmem:[%s1109_s0 + $0xa0] sm:$0xff]  ;;  %v37_v22 = vld [vmem:[%s1109_s0 + $0xb8] sm:$0xff] }
  0x1e   :  { %419 = vmatpush.msra.mxu3 %v148_v54  ;;  %340 = vmatpush.msra.mxu2 %v131_v56  ;;  %v35_v23 = vld [vmem:[%s1109_s0 + $0xa8] sm:$0xff]  ;;  %v40_v24 = vld [vmem:[%s1109_s0 + $0xd0] sm:$0xff]  ;;  %v38_v25 = vld [vmem:[%s1109_s0 + $0xc0] sm:$0xff] }
  0x1f   :  { %259 = vmatpush.msra.mxu1 %v116_v55  ;;  %180 = vmatpush.msra.mxu0 %v99_v57  ;;  %v41_v26 = vld [vmem:[%s1109_s0 + $0xd8] sm:$0xff]  ;;  %v39_v27 = vld [vmem:[%s1109_s0 + $0xc8] sm:$0xff]  ;;  %v44_v28 = vld [vmem:[%s1109_s0 + $0xf0] sm:$0xff] }
  0x20   :  { %420 = vmatpush.msra.mxu3 %v147_v58  ;;  %341 = vmatpush.msra.mxu2 %v130_v60  ;;  %v42_v29 = vld [vmem:[%s1109_s0 + $0xe0] sm:$0xff]  ;;  %v45_v30 = vld [vmem:[%s1109_s0 + $0xf8] sm:$0xff]  ;;  %v43_v31 = vld [vmem:[%s1109_s0 + $0xe8] sm:$0xff] }
  0x21   :  { %260 = vmatpush.msra.mxu1 %v115_v59  ;;  %181 = vmatpush.msra.mxu0 %v98_v61  ;;  %v48_v32 = vld [vmem:[%s1109_s0 + $0x110] sm:$0xff]  ;;  %v46_v33 = vld [vmem:[%s1109_s0 + $0x100] sm:$0xff]  ;;  %v49_v34 = vld [vmem:[%s1109_s0 + $0x118] sm:$0xff] }
  0x22   :  { %342 = vmatmul.f32.vlgmr.msra.gmra.mxu2 %v16_v62  ;;  %421 = vmatpush.msra.mxu3 %v146_v63  ;;  %v47_v35 = vld [vmem:[%s1109_s0 + $0x108] sm:$0xff]  ;;  %v52_v36 = vld [vmem:[%s1109_s0 + $0x130] sm:$0xff]  ;;  %v50_v37 = vld [vmem:[%s1109_s0 + $0x120] sm:$0xff] }
  0x23   :  { %182 = vmatmul.f32.vlgmr.msra.gmra.mxu0 %v14_v0  ;;  %422 = vmatmul.f32.vlgmr.msra.gmra.mxu3 %v17_v1  ;;  %v53_v38 = vld [vmem:[%s1109_s0 + $0x138] sm:$0xff]  ;;  %v51_v39 = vld [vmem:[%s1109_s0 + $0x128] sm:$0xff]  ;;  %v56_v40 = vld [vmem:[%s1109_s0 + $0x150] sm:$0xff] }
  0x24   :  { %261 = vmatpush.msra.mxu1 %v114_v2  ;;  %v54_v41 = vld [vmem:[%s1109_s0 + $0x140] sm:$0xff]  ;;  %v57_v42 = vld [vmem:[%s1109_s0 + $0x158] sm:$0xff]  ;;  %v55_v43 = vld [vmem:[%s1109_s0 + $0x148] sm:$0xff] }
  0x25   :  { %262 = vmatmul.f32.vlgmr.msra.gmra.mxu1 %v15_v3  ;;  %v60_v44 = vld [vmem:[%s1109_s0 + $0x170] sm:$0xff]  ;;  %v58_v45 = vld [vmem:[%s1109_s0 + $0x160] sm:$0xff]  ;;  %v61_v46 = vld [vmem:[%s1109_s0 + $0x178] sm:$0xff] }
  0x26   :  { %v59_v47 = vld [vmem:[%s1109_s0 + $0x168] sm:$0xff]  ;;  %v64_v48 = vld [vmem:[%s1109_s0 + $0x190] sm:$0xff]  ;;  %v62_v49 = vld [vmem:[%s1109_s0 + $0x180] sm:$0xff] }
  0x27   :  { %v65_v50 = vld [vmem:[%s1109_s0 + $0x198] sm:$0xff]  ;;  %v63_v51 = vld [vmem:[%s1109_s0 + $0x188] sm:$0xff]  ;;  %v68_v52 = vld [vmem:[%s1109_s0 + $0x1b0] sm:$0xff] }
  0x28   :  { %v66_v53 = vld [vmem:[%s1109_s0 + $0x1a0] sm:$0xff]  ;;  %v69_v54 = vld [vmem:[%s1109_s0 + $0x1b8] sm:$0xff]  ;;  %v67_v55 = vld [vmem:[%s1109_s0 + $0x1a8] sm:$0xff] }
  0x29   :  { %v72_v56 = vld [vmem:[%s1109_s0 + $0x1d0] sm:$0xff]  ;;  %v70_v57 = vld [vmem:[%s1109_s0 + $0x1c0] sm:$0xff]  ;;  %v73_v58 = vld [vmem:[%s1109_s0 + $0x1d8] sm:$0xff] }
  0x2a   :  { %345 = vmatmul.f32.gmra.mxu2 %v20_v4  ;;  %v71_v59 = vld [vmem:[%s1109_s0 + $0x1c8] sm:$0xff]  ;;  %v76_v60 = vld [vmem:[%s1109_s0 + $0x1f0] sm:$0xff]  ;;  %v74_v61 = vld [vmem:[%s1109_s0 + $0x1e0] sm:$0xff] }
  0x2b   :  { %185 = vmatmul.f32.gmra.mxu0 %v18_v5  ;;  %425 = vmatmul.f32.gmra.mxu3 %v21_v6  ;;  %v77_v62 = vld [vmem:[%s1109_s0 + $0x1f8] sm:$0xff]  ;;  %v75_v63 = vld [vmem:[%s1109_s0 + $0x1e8] sm:$0xff]  ;;  %v942_v0 = vld [vmem:[%s1110_s2] ss:$0 sm:$0xff] }
  0x2c   :  { %v80_v1 = vld [vmem:[%s1109_s0 + $0x210] sm:$0xff]  ;;  %v78_v3 = vld [vmem:[%s1109_s0 + $0x200] sm:$0xff]  ;;  %v81_v4 = vld [vmem:[%s1109_s0 + $0x218] sm:$0xff] }
  0x2d   :  { %265 = vmatmul.f32.gmra.mxu1 %v19_v7  ;;  %v79_v7 = vld [vmem:[%s1109_s0 + $0x208] sm:$0xff] }
  0x32   :  { %348 = vmatmul.f32.gmra.mxu2 %v24_v8 }
  0x33   :  { %188 = vmatmul.f32.gmra.mxu0 %v22_v9  ;;  %428 = vmatmul.f32.gmra.mxu3 %v25_v10 }
  0x35   :  { %268 = vmatmul.f32.gmra.mxu1 %v23_v11 }
  0x3a   :  { %351 = vmatmul.f32.gmra.mxu2 %v28_v12  ;;  %v84_v12 = vld [vmem:[%s1109_s0 + $0x230] sm:$0xff] }
  0x3b   :  { %191 = vmatmul.f32.gmra.mxu0 %v26_v13  ;;  %431 = vmatmul.f32.gmra.mxu3 %v29_v14 }
  0x3d   :  { %271 = vmatmul.f32.gmra.mxu1 %v27_v15  ;;  %v82_v15 = vld [vmem:[%s1109_s0 + $0x220] sm:$0xff] }
  0x42   :  { %354 = vmatmul.f32.gmra.mxu2 %v32_v16  ;;  %v85_v16 = vld [vmem:[%s1109_s0 + $0x238] sm:$0xff] }
  0x43   :  { %194 = vmatmul.f32.gmra.mxu0 %v30_v17  ;;  %434 = vmatmul.f32.gmra.mxu3 %v33_v18 }
  0x45   :  { %274 = vmatmul.f32.gmra.mxu1 %v31_v19 }
  0x4a   :  { %357 = vmatmul.f32.gmra.mxu2 %v36_v20  ;;  %v83_v20 = vld [vmem:[%s1109_s0 + $0x228] sm:$0xff] }
  0x4b   :  { %197 = vmatmul.f32.gmra.mxu0 %v34_v21  ;;  %437 = vmatmul.f32.gmra.mxu3 %v37_v22 }
  0x4d   :  { %277 = vmatmul.f32.gmra.mxu1 %v35_v23 }
  0x52   :  { %360 = vmatmul.f32.gmra.mxu2 %v40_v24 }
  0x53   :  { %200 = vmatmul.f32.gmra.mxu0 %v38_v25  ;;  %440 = vmatmul.f32.gmra.mxu3 %v41_v26  ;;  %v88_v25 = vld [vmem:[%s1109_s0 + $0x250] sm:$0xff] }
  0x55   :  { %280 = vmatmul.f32.gmra.mxu1 %v39_v27 }
  0x5a   :  { %363 = vmatmul.f32.gmra.mxu2 %v44_v28  ;;  %v86_v28 = vld [vmem:[%s1109_s0 + $0x240] sm:$0xff] }
  0x5b   :  { %203 = vmatmul.f32.gmra.mxu0 %v42_v29  ;;  %443 = vmatmul.f32.gmra.mxu3 %v45_v30  ;;  %v89_v29 = vld [vmem:[%s1109_s0 + $0x258] sm:$0xff] }
  0x5d   :  { %283 = vmatmul.f32.gmra.mxu1 %v43_v31 }
  0x62   :  { %366 = vmatmul.f32.gmra.mxu2 %v48_v32 }
  0x63   :  { %206 = vmatmul.f32.gmra.mxu0 %v46_v33  ;;  %446 = vmatmul.f32.gmra.mxu3 %v49_v34  ;;  %v87_v33 = vld [vmem:[%s1109_s0 + $0x248] sm:$0xff] }
  0x65   :  { %286 = vmatmul.f32.gmra.mxu1 %v47_v35 }
  0x6a   :  { %369 = vmatmul.f32.gmra.mxu2 %v52_v36 }
  0x6b   :  { %209 = vmatmul.f32.gmra.mxu0 %v50_v37  ;;  %449 = vmatmul.f32.gmra.mxu3 %v53_v38  ;;  %v92_v38 = vld [vmem:[%s1109_s0 + $0x270] sm:$0xff] }
  0x6d   :  { %289 = vmatmul.f32.gmra.mxu1 %v51_v39 }
  0x72   :  { %372 = vmatmul.f32.gmra.mxu2 %v56_v40 }
  0x73   :  { %212 = vmatmul.f32.gmra.mxu0 %v54_v41  ;;  %452 = vmatmul.f32.gmra.mxu3 %v57_v42  ;;  %v90_v41 = vld [vmem:[%s1109_s0 + $0x260] sm:$0xff]  ;;  %v93_v42 = vld [vmem:[%s1109_s0 + $0x278] sm:$0xff] }
  0x75   :  { %292 = vmatmul.f32.gmra.mxu1 %v55_v43 }
  0x7a   :  { %375 = vmatmul.f32.gmra.mxu2 %v60_v44 }
  0x7b   :  { %215 = vmatmul.f32.gmra.mxu0 %v58_v45  ;;  %455 = vmatmul.f32.gmra.mxu3 %v61_v46  ;;  %v91_v46 = vld [vmem:[%s1109_s0 + $0x268] sm:$0xff] }
  0x7d   :  { %295 = vmatmul.f32.gmra.mxu1 %v59_v47 }
  0x82   :  { %378 = vmatmul.f32.gmra.mxu2 %v64_v48 }
  0x83   :  { %218 = vmatmul.f32.gmra.mxu0 %v62_v49  ;;  %458 = vmatmul.f32.gmra.mxu3 %v65_v50 }
  0x85   :  { %298 = vmatmul.f32.gmra.mxu1 %v63_v51  ;;  %v96_v51 = vld [vmem:[%s1109_s0 + $0x290] sm:$0x3] }
  0x8a   :  { %381 = vmatmul.f32.gmra.mxu2 %v68_v52 }
  0x8b   :  { %221 = vmatmul.f32.gmra.mxu0 %v66_v53  ;;  %461 = vmatmul.f32.gmra.mxu3 %v69_v54  ;;  %v94_v54 = vld [vmem:[%s1109_s0 + $0x280] sm:$0x3] }
  0x8d   :  { %301 = vmatmul.f32.gmra.mxu1 %v67_v55  ;;  %v97_v55 = vld [vmem:[%s1109_s0 + $0x298] sm:$0x3] }
  0x92   :  { %384 = vmatmul.f32.gmra.mxu2 %v72_v56 }
  0x93   :  { %224 = vmatmul.f32.gmra.mxu0 %v70_v57  ;;  %464 = vmatmul.f32.gmra.mxu3 %v73_v58 }
  0x95   :  { %304 = vmatmul.f32.gmra.mxu1 %v71_v59  ;;  %v95_v59 = vld [vmem:[%s1109_s0 + $0x288] sm:$0x3] }
  0x9a   :  { %387 = vmatmul.f32.gmra.mxu2 %v76_v60 }
  0x9b   :  { %227 = vmatmul.f32.gmra.mxu0 %v74_v61  ;;  %467 = vmatmul.f32.gmra.mxu3 %v77_v62 }
  0x9d   :  { %307 = vmatmul.f32.gmra.mxu1 %v75_v63 }
  0xa0   :  { %v183_v2 = vpop.f32.mrf.mxu0 }
  0xa1   :  { %v184_v5 = vadd.f32 %v942_v0, %v183_v2 }
  0xa2   :  { %390 = vmatmul.f32.gmra.mxu2 %v80_v1  ;;  %v263_v6 = vpop.f32.mrf.mxu1 }
  0xa3   :  { %v264_v8 = vadd.f32 %v263_v6, %v184_v5  ;;  %230 = vmatmul.f32.gmra.mxu0 %v78_v3  ;;  %470 = vmatmul.f32.gmra.mxu3 %v81_v4 }
  0xa5   :  { %v343_v9 = vpop.f32.mrf.mxu2  ;;  %310 = vmatmul.f32.gmra.mxu1 %v79_v7 }
  0xa6   :  { %v344_v10 = vadd.f32 %v343_v9, %v264_v8  ;;  %v423_v11 = vpop.f32.mrf.mxu3 }
  0xa8   :  { %v424_v13 = vadd.f32 %v423_v11, %v344_v10  ;;  %v186_v14 = vpop.f32.mrf.mxu0 }
  0xa9   :  { %v187_v17 = vadd.f32 %v942_v0, %v186_v14 }
  0xaa   :  { %v486_v18 = vmax.f32 %v424_v13, 0.0  ;;  %393 = vmatmul.f32.gmra.mxu2 %v84_v12  ;;  %v266_v19 = vpop.f32.mrf.mxu1 }
  0xab   :  { %v267_v21 = vadd.f32 %v266_v19, %v187_v17  ;;  %233 = vmatmul.f32.gmra.mxu0 %v82_v15  ;;  %473 = vmatmul.f32.gmra.mxu3 %v85_v16 }
  0xac   :  { %508 = vst.msk [vmem:[%s1111_s3] sm:$0xff] %vm507_vm0, %v486_v18 }
  0xad   :  { %v346_v22 = vpop.f32.mrf.mxu2  ;;  %313 = vmatmul.f32.gmra.mxu1 %v83_v20 }
  0xae   :  { %v347_v23 = vadd.f32 %v346_v22, %v267_v21  ;;  %v426_v24 = vpop.f32.mrf.mxu3 }
  0xb0   :  { %v427_v26 = vadd.f32 %v426_v24, %v347_v23  ;;  %v189_v27 = vpop.f32.mrf.mxu0 }
  0xb1   :  { %v190_v30 = vadd.f32 %v942_v0, %v189_v27 }
  0xb2   :  { %v487_v31 = vmax.f32 %v427_v26, 0.0  ;;  %396 = vmatmul.f32.gmra.mxu2 %v88_v25  ;;  %v269_v32 = vpop.f32.mrf.mxu1 }
  0xb3   :  { %v270_v34 = vadd.f32 %v269_v32, %v190_v30  ;;  %236 = vmatmul.f32.gmra.mxu0 %v86_v28  ;;  %476 = vmatmul.f32.gmra.mxu3 %v89_v29 }
  0xb4   :  { %509 = vst.msk [vmem:[%s1111_s3 + $0x8] sm:$0xff] %vm507_vm0, %v487_v31 }
  0xb5   :  { %v349_v35 = vpop.f32.mrf.mxu2  ;;  %316 = vmatmul.f32.gmra.mxu1 %v87_v33 }
  0xb6   :  { %v350_v36 = vadd.f32 %v349_v35, %v270_v34  ;;  %v429_v37 = vpop.f32.mrf.mxu3 }
  0xb8   :  { %v430_v39 = vadd.f32 %v429_v37, %v350_v36  ;;  %v192_v40 = vpop.f32.mrf.mxu0 }
  0xb9   :  { %v193_v43 = vadd.f32 %v942_v0, %v192_v40 }
  0xba   :  { %v488_v44 = vmax.f32 %v430_v39, 0.0  ;;  %399 = vmatmul.f32.gmra.mxu2 %v92_v38  ;;  %v272_v45 = vpop.f32.mrf.mxu1 }
  0xbb   :  { %v273_v47 = vadd.f32 %v272_v45, %v193_v43  ;;  %239 = vmatmul.f32.gmra.mxu0 %v90_v41  ;;  %479 = vmatmul.f32.gmra.mxu3 %v93_v42 }
  0xbc   :  { %510 = vst.msk [vmem:[%s1111_s3 + $0x10] sm:$0xff] %vm507_vm0, %v488_v44 }
  0xbd   :  { %v352_v48 = vpop.f32.mrf.mxu2  ;;  %319 = vmatmul.f32.gmra.mxu1 %v91_v46 }
  0xbe   :  { %v353_v49 = vadd.f32 %v352_v48, %v273_v47  ;;  %v432_v50 = vpop.f32.mrf.mxu3 }
  0xc0   :  { %v433_v52 = vadd.f32 %v432_v50, %v353_v49  ;;  %v195_v53 = vpop.f32.mrf.mxu0 }
  0xc1   :  { %v196_v56 = vadd.f32 %v942_v0, %v195_v53 }
  0xc2   :  { %v489_v57 = vmax.f32 %v433_v52, 0.0  ;;  %402 = vmatmul.f32.gmra.mxu2 %v96_v51  ;;  %v275_v58 = vpop.f32.mrf.mxu1 }
  0xc3   :  { %v276_v60 = vadd.f32 %v275_v58, %v196_v56  ;;  %242 = vmatmul.f32.gmra.mxu0 %v94_v54  ;;  %482 = vmatmul.f32.gmra.mxu3 %v97_v55 }
  0xc4   :  { %511 = vst.msk [vmem:[%s1111_s3 + $0x18] sm:$0xff] %vm507_vm0, %v489_v57 }
  0xc5   :  { %v355_v61 = vpop.f32.mrf.mxu2  ;;  %322 = vmatmul.f32.gmra.mxu1 %v95_v59 }
  0xc6   :  { %v356_v62 = vadd.f32 %v355_v61, %v276_v60  ;;  %v435_v63 = vpop.f32.mrf.mxu3 }
  0xc8   :  { %v436_v1 = vadd.f32 %v435_v63, %v356_v62  ;;  %v198_v2 = vpop.f32.mrf.mxu0 }
  0xc9   :  { %v199_v3 = vadd.f32 %v942_v0, %v198_v2 }
  0xca   :  { %v490_v4 = vmax.f32 %v436_v1, 0.0  ;;  %v278_v5 = vpop.f32.mrf.mxu1 }
  0xcb   :  { %v279_v6 = vadd.f32 %v278_v5, %v199_v3 }
  0xcc   :  { %512 = vst.msk [vmem:[%s1111_s3 + $0x20] sm:$0xff] %vm507_vm0, %v490_v4 }
  0xcd   :  { %v358_v7 = vpop.f32.mrf.mxu2 }
  0xce   :  { %v359_v8 = vadd.f32 %v358_v7, %v279_v6  ;;  %v438_v9 = vpop.f32.mrf.mxu3 }
  0xd0   :  { %v439_v10 = vadd.f32 %v438_v9, %v359_v8  ;;  %v201_v11 = vpop.f32.mrf.mxu0 }
  0xd1   :  { %v202_v12 = vadd.f32 %v942_v0, %v201_v11 }
  0xd2   :  { %v491_v13 = vmax.f32 %v439_v10, 0.0  ;;  %v281_v14 = vpop.f32.mrf.mxu1 }
  0xd3   :  { %v282_v15 = vadd.f32 %v281_v14, %v202_v12 }
  0xd4   :  { %513 = vst.msk [vmem:[%s1111_s3 + $0x28] sm:$0xff] %vm507_vm0, %v491_v13 }
  0xd5   :  { %v361_v16 = vpop.f32.mrf.mxu2 }
  0xd6   :  { %v362_v17 = vadd.f32 %v361_v16, %v282_v15  ;;  %v441_v18 = vpop.f32.mrf.mxu3 }
  0xd8   :  { %v442_v19 = vadd.f32 %v441_v18, %v362_v17  ;;  %v204_v20 = vpop.f32.mrf.mxu0 }
  0xd9   :  { %v205_v21 = vadd.f32 %v942_v0, %v204_v20 }
  0xda   :  { %v492_v22 = vmax.f32 %v442_v19, 0.0  ;;  %v284_v23 = vpop.f32.mrf.mxu1 }
  0xdb   :  { %v285_v24 = vadd.f32 %v284_v23, %v205_v21 }
  0xdc   :  { %514 = vst.msk [vmem:[%s1111_s3 + $0x30] sm:$0xff] %vm507_vm0, %v492_v22 }
  0xdd   :  { %v364_v25 = vpop.f32.mrf.mxu2 }
  0xde   :  { %v365_v26 = vadd.f32 %v364_v25, %v285_v24  ;;  %v444_v27 = vpop.f32.mrf.mxu3 }
  0xe0   :  { %v445_v28 = vadd.f32 %v444_v27, %v365_v26  ;;  %v207_v29 = vpop.f32.mrf.mxu0 }
  0xe1   :  { %v208_v30 = vadd.f32 %v942_v0, %v207_v29 }
  0xe2   :  { %v493_v31 = vmax.f32 %v445_v28, 0.0  ;;  %v287_v32 = vpop.f32.mrf.mxu1 }
  0xe3   :  { %v288_v33 = vadd.f32 %v287_v32, %v208_v30 }
  0xe4   :  { %515 = vst.msk [vmem:[%s1111_s3 + $0x38] sm:$0xff] %vm507_vm0, %v493_v31 }
  0xe5   :  { %v367_v34 = vpop.f32.mrf.mxu2 }
  0xe6   :  { %v368_v35 = vadd.f32 %v367_v34, %v288_v33  ;;  %v447_v36 = vpop.f32.mrf.mxu3 }
  0xe8   :  { %v448_v37 = vadd.f32 %v447_v36, %v368_v35  ;;  %v210_v38 = vpop.f32.mrf.mxu0 }
  0xe9   :  { %v211_v39 = vadd.f32 %v942_v0, %v210_v38 }
  0xea   :  { %v494_v40 = vmax.f32 %v448_v37, 0.0  ;;  %v290_v41 = vpop.f32.mrf.mxu1 }
  0xeb   :  { %v291_v42 = vadd.f32 %v290_v41, %v211_v39 }
  0xec   :  { %516 = vst.msk [vmem:[%s1111_s3 + $0x40] sm:$0xff] %vm507_vm0, %v494_v40 }
  0xed   :  { %v370_v43 = vpop.f32.mrf.mxu2 }
  0xee   :  { %v371_v44 = vadd.f32 %v370_v43, %v291_v42  ;;  %v450_v45 = vpop.f32.mrf.mxu3 }
  0xf0   :  { %v451_v46 = vadd.f32 %v450_v45, %v371_v44  ;;  %v213_v47 = vpop.f32.mrf.mxu0 }
  0xf1   :  { %v214_v48 = vadd.f32 %v942_v0, %v213_v47 }
  0xf2   :  { %v495_v49 = vmax.f32 %v451_v46, 0.0  ;;  %v293_v50 = vpop.f32.mrf.mxu1 }
  0xf3   :  { %v294_v51 = vadd.f32 %v293_v50, %v214_v48 }
  0xf4   :  { %517 = vst.msk [vmem:[%s1111_s3 + $0x48] sm:$0xff] %vm507_vm0, %v495_v49 }
  0xf5   :  { %v373_v52 = vpop.f32.mrf.mxu2 }
  0xf6   :  { %v374_v53 = vadd.f32 %v373_v52, %v294_v51  ;;  %v453_v54 = vpop.f32.mrf.mxu3 }
  0xf8   :  { %v454_v55 = vadd.f32 %v453_v54, %v374_v53  ;;  %v216_v56 = vpop.f32.mrf.mxu0 }
  0xf9   :  { %v217_v57 = vadd.f32 %v942_v0, %v216_v56 }
  0xfa   :  { %v496_v58 = vmax.f32 %v454_v55, 0.0  ;;  %v296_v59 = vpop.f32.mrf.mxu1 }
  0xfb   :  { %v297_v60 = vadd.f32 %v296_v59, %v217_v57 }
  0xfc   :  { %518 = vst.msk [vmem:[%s1111_s3 + $0x50] sm:$0xff] %vm507_vm0, %v496_v58 }
  0xfd   :  { %v376_v61 = vpop.f32.mrf.mxu2 }
  0xfe   :  { %v377_v62 = vadd.f32 %v376_v61, %v297_v60  ;;  %v456_v63 = vpop.f32.mrf.mxu3 }
 0x100   :  { %v457_v1 = vadd.f32 %v456_v63, %v377_v62  ;;  %v219_v2 = vpop.f32.mrf.mxu0 }
 0x101   :  { %v220_v3 = vadd.f32 %v942_v0, %v219_v2 }
 0x102   :  { %v497_v4 = vmax.f32 %v457_v1, 0.0  ;;  %v299_v5 = vpop.f32.mrf.mxu1 }
 0x103   :  { %v300_v6 = vadd.f32 %v299_v5, %v220_v3 }
 0x104   :  { %519 = vst.msk [vmem:[%s1111_s3 + $0x58] sm:$0xff] %vm507_vm0, %v497_v4 }
 0x105   :  { %v379_v7 = vpop.f32.mrf.mxu2 }
 0x106   :  { %v380_v8 = vadd.f32 %v379_v7, %v300_v6  ;;  %v459_v9 = vpop.f32.mrf.mxu3 }
 0x108   :  { %v460_v10 = vadd.f32 %v459_v9, %v380_v8  ;;  %v222_v11 = vpop.f32.mrf.mxu0 }
 0x109   :  { %v223_v12 = vadd.f32 %v942_v0, %v222_v11 }
 0x10a   :  { %v498_v13 = vmax.f32 %v460_v10, 0.0  ;;  %v302_v14 = vpop.f32.mrf.mxu1 }
 0x10b   :  { %v303_v15 = vadd.f32 %v302_v14, %v223_v12 }
 0x10c   :  { %520 = vst.msk [vmem:[%s1111_s3 + $0x60] sm:$0xff] %vm507_vm0, %v498_v13 }
 0x10d   :  { %v382_v16 = vpop.f32.mrf.mxu2 }
 0x10e   :  { %v383_v17 = vadd.f32 %v382_v16, %v303_v15  ;;  %v462_v18 = vpop.f32.mrf.mxu3 }
 0x110   :  { %v463_v19 = vadd.f32 %v462_v18, %v383_v17  ;;  %v225_v20 = vpop.f32.mrf.mxu0 }
 0x111   :  { %v226_v21 = vadd.f32 %v942_v0, %v225_v20 }
 0x112   :  { %v499_v22 = vmax.f32 %v463_v19, 0.0  ;;  %v305_v23 = vpop.f32.mrf.mxu1 }
 0x113   :  { %v306_v24 = vadd.f32 %v305_v23, %v226_v21 }
 0x114   :  { %521 = vst.msk [vmem:[%s1111_s3 + $0x68] sm:$0xff] %vm507_vm0, %v499_v22 }
 0x115   :  { %v385_v25 = vpop.f32.mrf.mxu2 }
 0x116   :  { %v386_v26 = vadd.f32 %v385_v25, %v306_v24  ;;  %v465_v27 = vpop.f32.mrf.mxu3 }
 0x118   :  { %v466_v28 = vadd.f32 %v465_v27, %v386_v26  ;;  %v228_v29 = vpop.f32.mrf.mxu0 }
 0x119   :  { %v229_v30 = vadd.f32 %v942_v0, %v228_v29 }
 0x11a   :  { %v500_v31 = vmax.f32 %v466_v28, 0.0  ;;  %v308_v32 = vpop.f32.mrf.mxu1 }
 0x11b   :  { %v309_v33 = vadd.f32 %v308_v32, %v229_v30 }
 0x11c   :  { %522 = vst.msk [vmem:[%s1111_s3 + $0x70] sm:$0xff] %vm507_vm0, %v500_v31 }
 0x11d   :  { %v388_v34 = vpop.f32.mrf.mxu2 }
 0x11e   :  { %v389_v35 = vadd.f32 %v388_v34, %v309_v33  ;;  %v468_v36 = vpop.f32.mrf.mxu3 }
 0x120   :  { %v469_v37 = vadd.f32 %v468_v36, %v389_v35  ;;  %v231_v38 = vpop.f32.mrf.mxu0 }
 0x121   :  { %v232_v39 = vadd.f32 %v942_v0, %v231_v38 }
 0x122   :  { %v501_v40 = vmax.f32 %v469_v37, 0.0  ;;  %v311_v41 = vpop.f32.mrf.mxu1 }
 0x123   :  { %v312_v42 = vadd.f32 %v311_v41, %v232_v39 }
 0x124   :  { %523 = vst.msk [vmem:[%s1111_s3 + $0x78] sm:$0xff] %vm507_vm0, %v501_v40 }
 0x125   :  { %v391_v43 = vpop.f32.mrf.mxu2 }
 0x126   :  { %v392_v44 = vadd.f32 %v391_v43, %v312_v42  ;;  %v471_v45 = vpop.f32.mrf.mxu3 }
 0x128   :  { %v472_v46 = vadd.f32 %v471_v45, %v392_v44  ;;  %v234_v47 = vpop.f32.mrf.mxu0 }
 0x129   :  { %v235_v48 = vadd.f32 %v942_v0, %v234_v47 }
 0x12a   :  { %v502_v49 = vmax.f32 %v472_v46, 0.0  ;;  %v314_v50 = vpop.f32.mrf.mxu1 }
 0x12b   :  { %v315_v51 = vadd.f32 %v314_v50, %v235_v48 }
 0x12c   :  { %524 = vst.msk [vmem:[%s1111_s3 + $0x80] sm:$0xff] %vm507_vm0, %v502_v49 }
 0x12d   :  { %v394_v52 = vpop.f32.mrf.mxu2 }
 0x12e   :  { %v395_v53 = vadd.f32 %v394_v52, %v315_v51  ;;  %v474_v54 = vpop.f32.mrf.mxu3 }
 0x130   :  { %v475_v55 = vadd.f32 %v474_v54, %v395_v53  ;;  %v237_v56 = vpop.f32.mrf.mxu0 }
 0x131   :  { %v238_v57 = vadd.f32 %v942_v0, %v237_v56 }
 0x132   :  { %v503_v58 = vmax.f32 %v475_v55, 0.0  ;;  %v317_v59 = vpop.f32.mrf.mxu1 }
 0x133   :  { %v318_v60 = vadd.f32 %v317_v59, %v238_v57 }
 0x134   :  { %525 = vst.msk [vmem:[%s1111_s3 + $0x88] sm:$0xff] %vm507_vm0, %v503_v58 }
 0x135   :  { %v397_v61 = vpop.f32.mrf.mxu2 }
 0x136   :  { %v398_v62 = vadd.f32 %v397_v61, %v318_v60  ;;  %v477_v63 = vpop.f32.mrf.mxu3 }
 0x138   :  { %v478_v1 = vadd.f32 %v477_v63, %v398_v62  ;;  %v240_v2 = vpop.f32.mrf.mxu0 }
 0x139   :  { %v241_v3 = vadd.f32 %v942_v0, %v240_v2 }
 0x13a   :  { %v504_v4 = vmax.f32 %v478_v1, 0.0  ;;  %v320_v5 = vpop.f32.mrf.mxu1 }
 0x13b   :  { %v321_v6 = vadd.f32 %v320_v5, %v241_v3 }
 0x13c   :  { %526 = vst.msk [vmem:[%s1111_s3 + $0x90] sm:$0xff] %vm507_vm0, %v504_v4 }
 0x13d   :  { %v400_v7 = vpop.f32.mrf.mxu2 }
 0x13e   :  { %v401_v8 = vadd.f32 %v400_v7, %v321_v6  ;;  %v480_v9 = vpop.f32.mrf.mxu3 }
 0x140   :  { %v481_v10 = vadd.f32 %v480_v9, %v401_v8  ;;  %v243_v11 = vpop.f32.mrf.mxu0 }
 0x141   :  { %v244_v12 = vadd.f32 %v942_v0, %v243_v11 }
 0x142   :  { %v505_v13 = vmax.f32 %v481_v10, 0.0  ;;  %v323_v14 = vpop.f32.mrf.mxu1 }
 0x143   :  { %v324_v15 = vadd.f32 %v323_v14, %v244_v12 }
 0x144   :  { %527 = vst.msk [vmem:[%s1111_s3 + $0x98] sm:$0xff] %vm507_vm0, %v505_v13 }
 0x145   :  { %v403_v16 = vpop.f32.mrf.mxu2 }
 0x146   :  { %v404_v17 = vadd.f32 %v403_v16, %v324_v15  ;;  %v483_v18 = vpop.f32.mrf.mxu3 }
 0x148   :  { %v484_v19 = vadd.f32 %v483_v18, %v404_v17 }
 0x14a   :  { %v506_v20 = vmax.f32 %v484_v19, 0.0 }
 0x14c   :  { %529 = vst.msk [vmem:[%s1111_s3 + $0xa0] sm:$0x3] %vm528_vm1, %v506_v20 }

// kernel: encoder_forward.5
= control target key start
LH: loop header
LB: loop body
LE: loop exit
PB: predicated region body
PF: predicated region fallthrough
CT: control target
= control target key end

     0   :  { %s5388_s0 = inlined_call_operand.vmem [shape: f32[392,576], index: 0, kind: input, shape index: {}]   ;;  %s5389_s1 = inlined_call_operand.vmem [shape: f32[576,32], index: 1, kind: input, shape index: {}]   ;;  %s5390_s2 = inlined_call_operand.vmem [shape: f32[1,32], index: 2, kind: input, shape index: {}]   ;;  %s5391_s3 = inlined_call_operand.vmem [shape: f32[49,32,32], index: 3, kind: input, shape index: {}]   ;;  %s5392_s4 = inlined_call_operand.vmem [shape: f32[1,32], index: 4, kind: input, shape index: {}]   ;;  %s5393_s5 = inlined_call_operand.hbm [shape: f32[2,32], index: 5, kind: output, shape index: {}]  }
   0x1   :  { %v281_v0 = vld [vmem:[%s5389_s1 + $0x78] sm:$0xff]  ;;  %v280_v1 = vld [vmem:[%s5389_s1 + $0x70] sm:$0xff]  ;;  %v279_v2 = vld [vmem:[%s5389_s1 + $0x68] sm:$0xff] }
   0x2   :  { %490 = vmatpush.msra.mxu0 %v281_v0  ;;  %3092 = vmatpush.msra.mxu1 %v281_v0  ;;  %v278_v3 = vld [vmem:[%s5389_s1 + $0x60] sm:$0xff]  ;;  %v277_v4 = vld [vmem:[%s5389_s1 + $0x58] sm:$0xff]  ;;  %v276_v5 = vld [vmem:[%s5389_s1 + $0x50] sm:$0xff] }
   0x3   :  { %3093 = vmatpush.msra.mxu2 %v281_v0  ;;  %3094 = vmatpush.msra.mxu3 %v281_v0 }
   0x4   :  { %491 = vmatpush.msra.mxu0 %v280_v1  ;;  %3095 = vmatpush.msra.mxu1 %v280_v1 }
   0x5   :  { %3096 = vmatpush.msra.mxu2 %v280_v1  ;;  %3097 = vmatpush.msra.mxu3 %v280_v1 }
   0x6   :  { %492 = vmatpush.msra.mxu0 %v279_v2  ;;  %3098 = vmatpush.msra.mxu1 %v279_v2 }
   0x7   :  { %3099 = vmatpush.msra.mxu2 %v279_v2  ;;  %3100 = vmatpush.msra.mxu3 %v279_v2 }
   0x8   :  { %493 = vmatpush.msra.mxu0 %v278_v3  ;;  %3101 = vmatpush.msra.mxu1 %v278_v3 }
   0x9   :  { %3102 = vmatpush.msra.mxu2 %v278_v3  ;;  %3103 = vmatpush.msra.mxu3 %v278_v3 }
   0xa   :  { %10 = vsyncpa [#allocation3], 0  ;;  %494 = vmatpush.msra.mxu0 %v277_v4  ;;  %3104 = vmatpush.msra.mxu1 %v277_v4  ;;  %v275_v6 = vld [vmem:[%s5389_s1 + $0x48] sm:$0xff]  ;;  %v274_v7 = vld [vmem:[%s5389_s1 + $0x40] sm:$0xff]  ;;  %vm342_vm0 = vcmask 523264   ;;  %vm1368_vm1 = vcmask 261120  }
   0xb   :  { %3105 = vmatpush.msra.mxu2 %v277_v4  ;;  %3106 = vmatpush.msra.mxu3 %v277_v4  ;;  %v273_v8 = vld [vmem:[%s5389_s1 + $0x38] sm:$0xff]  ;;  %v272_v9 = vld [vmem:[%s5389_s1 + $0x30] sm:$0xff]  ;;  %v271_v10 = vld [vmem:[%s5389_s1 + $0x28] sm:$0xff]  ;;  %s2793_s21 = sshll.u32 %s5393_s5, 4  ;;  %vm2784_vm2 = vcmask 254976   ;;  %s2794_s21 = int_to_ptr.hbm [resolvable:$true] %s2793_s21 }
   0xc   :  { %495 = vmatpush.msra.mxu0 %v276_v5  ;;  %3107 = vmatpush.msra.mxu1 %v276_v5  ;;  %v270_v11 = vld [vmem:[%s5389_s1 + $0x20] sm:$0xff]  ;;  %v269_v12 = vld [vmem:[%s5389_s1 + $0x18] sm:$0xff]  ;;  %v268_v13 = vld [vmem:[%s5389_s1 + $0x10] sm:$0xff] }
   0xd   :  { %3108 = vmatpush.msra.mxu2 %v276_v5  ;;  %3109 = vmatpush.msra.mxu3 %v276_v5  ;;  %v267_v14 = vld [vmem:[%s5389_s1 + $0x8] sm:$0xff]  ;;  %v266_v15 = vld [vmem:[%s5389_s1] sm:$0xff]  ;;  %v176_v18 = vld [vmem:[%s5388_s0 + $0x4d8] sm:$0xff] }
   0xe   :  { %496 = vmatpush.msra.mxu0 %v275_v6  ;;  %3110 = vmatpush.msra.mxu1 %v275_v6  ;;  %v21_v16 = vld [vmem:[%s5388_s0] sm:$0xff]  ;;  %v146_v17 = vld [vmem:[%s5388_s0 + $0x3e8] sm:$0xff]  ;;  %v337_v20 = vld [vmem:[%s5389_s1 + $0x238] sm:$0xff] }
   0xf   :  { %3111 = vmatpush.msra.mxu2 %v275_v6  ;;  %3112 = vmatpush.msra.mxu3 %v275_v6  ;;  %v221_v19 = vld [vmem:[%s5388_s0 + $0x640] sm:$0xff]  ;;  %v297_v21 = vld [vmem:[%s5389_s1 + $0xf8] sm:$0xff]  ;;  %v296_v22 = vld [vmem:[%s5389_s1 + $0xf0] sm:$0xff] }
  0x10   :  { %497 = vmatpush.msra.mxu0 %v274_v7  ;;  %3113 = vmatpush.msra.mxu1 %v274_v7  ;;  %v336_v23 = vld [vmem:[%s5389_s1 + $0x230] sm:$0xff]  ;;  %v295_v24 = vld [vmem:[%s5389_s1 + $0xe8] sm:$0xff]  ;;  %v181_v27 = vld [vmem:[%s5388_s0 + $0x500] sm:$0xff] }
  0x11   :  { %3114 = vmatpush.msra.mxu2 %v274_v7  ;;  %3115 = vmatpush.msra.mxu3 %v274_v7  ;;  %v26_v25 = vld [vmem:[%s5388_s0 + $0x28] sm:$0xff]  ;;  %v151_v26 = vld [vmem:[%s5388_s0 + $0x410] sm:$0xff]  ;;  %v294_v29 = vld [vmem:[%s5389_s1 + $0xe0] sm:$0xff] }
  0x12   :  { %498 = vmatpush.msra.mxu0 %v273_v8  ;;  %3116 = vmatpush.msra.mxu1 %v273_v8  ;;  %v226_v28 = vld [vmem:[%s5388_s0 + $0x668] sm:$0xff]  ;;  %v293_v30 = vld [vmem:[%s5389_s1 + $0xd8] sm:$0xff]  ;;  %v312_v33 = vld [vmem:[%s5389_s1 + $0x170] sm:$0xff] }
  0x13   :  { %3117 = vmatpush.msra.mxu2 %v273_v8  ;;  %3118 = vmatpush.msra.mxu3 %v273_v8  ;;  %v313_v31 = vld [vmem:[%s5389_s1 + $0x178] sm:$0xff]  ;;  %v328_v34 = vld [vmem:[%s5389_s1 + $0x1f0] sm:$0xff]  ;;  %v311_v36 = vld [vmem:[%s5389_s1 + $0x168] sm:$0xff] }
  0x14   :  { %499 = vmatpush.msra.mxu0 %v272_v9  ;;  %3119 = vmatpush.msra.mxu1 %v272_v9  ;;  %v329_v32 = vld [vmem:[%s5389_s1 + $0x1f8] sm:$0xff]  ;;  %v292_v35 = vld [vmem:[%s5389_s1 + $0xd0] sm:$0xff]  ;;  %v327_v37 = vld [vmem:[%s5389_s1 + $0x1e8] sm:$0xff] }
  0x15   :  { %3120 = vmatpush.msra.mxu2 %v272_v9  ;;  %3121 = vmatpush.msra.mxu3 %v272_v9  ;;  %v31_v38 = vld [vmem:[%s5388_s0 + $0x50] sm:$0xff]  ;;  %v156_v39 = vld [vmem:[%s5388_s0 + $0x438] sm:$0xff]  ;;  %v186_v40 = vld [vmem:[%s5388_s0 + $0x528] sm:$0xff] }
  0x16   :  { %500 = vmatpush.msra.mxu0 %v271_v10  ;;  %3122 = vmatpush.msra.mxu1 %v271_v10  ;;  %v231_v41 = vld [vmem:[%s5388_s0 + $0x690] sm:$0xff]  ;;  %v291_v42 = vld [vmem:[%s5389_s1 + $0xc8] sm:$0xff]  ;;  %v310_v43 = vld [vmem:[%s5389_s1 + $0x160] sm:$0xff] }
  0x17   :  { %3123 = vmatpush.msra.mxu2 %v271_v10  ;;  %3124 = vmatpush.msra.mxu3 %v271_v10  ;;  %v326_v44 = vld [vmem:[%s5389_s1 + $0x1e0] sm:$0xff]  ;;  %v309_v46 = vld [vmem:[%s5389_s1 + $0x158] sm:$0xff]  ;;  %v335_v47 = vld [vmem:[%s5389_s1 + $0x228] sm:$0xff] }
  0x18   :  { %501 = vmatpush.msra.mxu0 %v270_v11  ;;  %3125 = vmatpush.msra.mxu1 %v270_v11  ;;  %v290_v45 = vld [vmem:[%s5389_s1 + $0xc0] sm:$0xff]  ;;  %v325_v48 = vld [vmem:[%s5389_s1 + $0x1d8] sm:$0xff]  ;;  %v308_v50 = vld [vmem:[%s5389_s1 + $0x150] sm:$0xff] }
  0x19   :  { %3126 = vmatpush.msra.mxu2 %v270_v11  ;;  %3127 = vmatpush.msra.mxu3 %v270_v11  ;;  %v289_v49 = vld [vmem:[%s5389_s1 + $0xb8] sm:$0xff]  ;;  %v324_v51 = vld [vmem:[%s5389_s1 + $0x1d0] sm:$0xff]  ;;  %v161_v53 = vld [vmem:[%s5388_s0 + $0x460] sm:$0xff] }
  0x1a   :  { %502 = vmatpush.msra.mxu0 %v269_v12  ;;  %3128 = vmatpush.msra.mxu1 %v269_v12  ;;  %v36_v52 = vld [vmem:[%s5388_s0 + $0x78] sm:$0xff]  ;;  %v191_v54 = vld [vmem:[%s5388_s0 + $0x550] sm:$0xff]  ;;  %v307_v57 = vld [vmem:[%s5389_s1 + $0x148] sm:$0xff] }
  0x1b   :  { %3129 = vmatpush.msra.mxu2 %v269_v12  ;;  %3130 = vmatpush.msra.mxu3 %v269_v12  ;;  %v236_v55 = vld [vmem:[%s5388_s0 + $0x6b8] sm:$0xff]  ;;  %v288_v56 = vld [vmem:[%s5389_s1 + $0xb0] sm:$0xff]  ;;  %v323_v58 = vld [vmem:[%s5389_s1 + $0x1c8] sm:$0xff] }
  0x1c   :  { %503 = vmatpush.msra.mxu0 %v268_v13  ;;  %3131 = vmatpush.msra.mxu1 %v268_v13  ;;  %v287_v59 = vld [vmem:[%s5389_s1 + $0xa8] sm:$0xff]  ;;  %v306_v60 = vld [vmem:[%s5389_s1 + $0x140] sm:$0xff]  ;;  %v305_v63 = vld [vmem:[%s5389_s1 + $0x138] sm:$0xff] }
  0x1d   :  { %3132 = vmatpush.msra.mxu2 %v268_v13  ;;  %3133 = vmatpush.msra.mxu3 %v268_v13  ;;  %v322_v61 = vld [vmem:[%s5389_s1 + $0x1c0] sm:$0xff]  ;;  %v321_v0 = vld [vmem:[%s5389_s1 + $0x1b8] sm:$0xff]  ;;  %v166_v2 = vld [vmem:[%s5388_s0 + $0x488] sm:$0xff] }
  0x1e   :  { %504 = vmatpush.msra.mxu0 %v267_v14  ;;  %3134 = vmatpush.msra.mxu1 %v267_v14  ;;  %v286_v62 = vld [vmem:[%s5389_s1 + $0xa0] sm:$0xff]  ;;  %v196_v3 = vld [vmem:[%s5388_s0 + $0x578] sm:$0xff]  ;;  %v304_v6 = vld [vmem:[%s5389_s1 + $0x130] sm:$0xff] }
  0x1f   :  { %3135 = vmatpush.msra.mxu2 %v267_v14  ;;  %3136 = vmatpush.msra.mxu3 %v267_v14  ;;  %v41_v1 = vld [vmem:[%s5388_s0 + $0xa0] sm:$0xff]  ;;  %v285_v5 = vld [vmem:[%s5389_s1 + $0x98] sm:$0xff]  ;;  %v320_v7 = vld [vmem:[%s5389_s1 + $0x1b0] sm:$0xff] }
  0x20   :  { %505 = vmatpush.msra.mxu0 %v266_v15  ;;  %3137 = vmatpush.msra.mxu1 %v266_v15  ;;  %v241_v4 = vld [vmem:[%s5388_s0 + $0x6e0] sm:$0xff]  ;;  %v284_v8 = vld [vmem:[%s5389_s1 + $0x90] sm:$0xff]  ;;  %v303_v9 = vld [vmem:[%s5389_s1 + $0x128] sm:$0xff] }
  0x21   :  { %3138 = vmatpush.msra.mxu2 %v266_v15  ;;  %3139 = vmatpush.msra.mxu3 %v266_v15  ;;  %v319_v10 = vld [vmem:[%s5389_s1 + $0x1a8] sm:$0xff]  ;;  %v302_v12 = vld [vmem:[%s5389_s1 + $0x120] sm:$0xff]  ;;  %v171_v15 = vld [vmem:[%s5388_s0 + $0x4b0] sm:$0xff] }
  0x22   :  { %506 = vmatmul.f32.vlgmr.msra.gmra.mxu0 %v21_v16  ;;  %581 = vmatmul.f32.vlgmr.msra.gmra.mxu1 %v146_v17  ;;  %v283_v11 = vld [vmem:[%s5389_s1 + $0x88] sm:$0xff]  ;;  %v318_v13 = vld [vmem:[%s5389_s1 + $0x1a0] sm:$0xff] }
  0x23   :  { %599 = vmatmul.f32.vlgmr.msra.gmra.mxu2 %v176_v18  ;;  %626 = vmatmul.f32.vlgmr.msra.gmra.mxu3 %v221_v19  ;;  %v46_v14 = vld [vmem:[%s5388_s0 + $0xc8] sm:$0xff]  ;;  %v201_v16 = vld [vmem:[%s5388_s0 + $0x5a0] sm:$0xff]  ;;  %v301_v19 = vld [vmem:[%s5389_s1 + $0x118] sm:$0xff] }
  0x24   :  { %1154 = vmatpush.msrb.mxu0 %v337_v20  ;;  %654 = vmatpush.msrb.mxu1 %v297_v21  ;;  %v246_v17 = vld [vmem:[%s5388_s0 + $0x708] sm:$0xff]  ;;  %v282_v18 = vld [vmem:[%s5389_s1 + $0x80] sm:$0xff]  ;;  %v317_v20 = vld [vmem:[%s5389_s1 + $0x198] sm:$0xff] }
  0x25   :  { %818 = vmatpush.msrb.mxu2 %v313_v31  ;;  %982 = vmatpush.msrb.mxu3 %v329_v32  ;;  %v300_v21 = vld [vmem:[%s5389_s1 + $0x110] sm:$0xff]  ;;  %v314_v31 = vld [vmem:[%s5389_s1 + $0x180] sm:$0xff]  ;;  %v56_v32 = vld [vmem:[%s5388_s0 + $0x118] sm:$0xff] }
  0x26   :  { %655 = vmatpush.msrb.mxu1 %v296_v22  ;;  %1155 = vmatpush.msrb.mxu0 %v336_v23  ;;  %v334_v22 = vld [vmem:[%s5389_s1 + $0x220] sm:$0xff]  ;;  %v316_v23 = vld [vmem:[%s5389_s1 + $0x190] sm:$0xff] }
  0x27   :  { %819 = vmatpush.msrb.mxu2 %v312_v33  ;;  %983 = vmatpush.msrb.mxu3 %v328_v34  ;;  %v27_v33 = vld [vmem:[%s5388_s0 + $0x30] sm:$0xff] }
  0x28   :  { %656 = vmatpush.msrb.mxu1 %v295_v24  ;;  %1156 = vmatpush.msrb.mxu0 %v335_v47  ;;  %v299_v24 = vld [vmem:[%s5389_s1 + $0x108] sm:$0xff]  ;;  %v211_v34 = vld [vmem:[%s5388_s0 + $0x5f0] sm:$0xff]  ;;  %v28_v47 = vld [vmem:[%s5388_s0 + $0x38] sm:$0xff] }
  0x29   :  { %820 = vmatpush.msrb.mxu2 %v311_v36  ;;  %984 = vmatpush.msrb.mxu3 %v327_v37  ;;  %v61_v36 = vld [vmem:[%s5388_s0 + $0x140] sm:$0xff]  ;;  %v32_v37 = vld [vmem:[%s5388_s0 + $0x58] sm:$0xff] }
  0x2a   :  { %509 = vmatmul.f32.gmra.mxu0 %v26_v25  ;;  %584 = vmatmul.f32.gmra.mxu1 %v151_v26  ;;  %v315_v25 = vld [vmem:[%s5389_s1 + $0x188] sm:$0xff]  ;;  %v51_v26 = vld [vmem:[%s5388_s0 + $0xf0] sm:$0xff] }
  0x2b   :  { %602 = vmatmul.f32.gmra.mxu2 %v181_v27  ;;  %629 = vmatmul.f32.gmra.mxu3 %v226_v28  ;;  %v22_v27 = vld [vmem:[%s5388_s0 + $0x8] sm:$0xff] }
  0x2c   :  { %657 = vmatpush.msrb.mxu1 %v294_v29  ;;  %821 = vmatpush.msrb.mxu2 %v310_v43  ;;  %v206_v28 = vld [vmem:[%s5388_s0 + $0x5c8] sm:$0xff]  ;;  %v251_v29 = vld [vmem:[%s5388_s0 + $0x730] sm:$0xff] }
  0x2d   :  { %985 = vmatpush.msrb.mxu3 %v326_v44  ;;  %1157 = vmatpush.msrb.mxu0 %v334_v22  ;;  %v23_v43 = vld [vmem:[%s5388_s0 + $0x10] sm:$0xff]  ;;  %v24_v44 = vld [vmem:[%s5388_s0 + $0x18] sm:$0xff] }
  0x2e   :  { %658 = vmatpush.msrb.mxu1 %v293_v30  ;;  %822 = vmatpush.msrb.mxu2 %v309_v46  ;;  %v298_v30 = vld [vmem:[%s5389_s1 + $0x100] sm:$0xff]  ;;  %v42_v46 = vld [vmem:[%s5388_s0 + $0xa8] sm:$0xff] }
  0x2f   :  { %986 = vmatpush.msrb.mxu3 %v325_v48  ;;  %v29_v48 = vld [vmem:[%s5388_s0 + $0x40] sm:$0xff] }
  0x30   :  { %659 = vmatpush.msrb.mxu1 %v292_v35  ;;  %823 = vmatpush.msrb.mxu2 %v308_v50  ;;  %v256_v35 = vld [vmem:[%s5388_s0 + $0x758] sm:$0xff]  ;;  %v47_v50 = vld [vmem:[%s5388_s0 + $0xd0] sm:$0xff] }
  0x31   :  { %987 = vmatpush.msrb.mxu3 %v324_v51  ;;  %v33_v51 = vld [vmem:[%s5388_s0 + $0x60] sm:$0xff] }
  0x32   :  { %512 = vmatmul.f32.gmra.mxu0 %v31_v38  ;;  %587 = vmatmul.f32.gmra.mxu1 %v156_v39  ;;  %v216_v38 = vld [vmem:[%s5388_s0 + $0x618] sm:$0xff]  ;;  %v261_v39 = vld [vmem:[%s5388_s0 + $0x780] sm:$0xff] }
  0x33   :  { %605 = vmatmul.f32.gmra.mxu2 %v186_v40  ;;  %632 = vmatmul.f32.gmra.mxu3 %v231_v41  ;;  %v333_v40 = vld [vmem:[%s5389_s1 + $0x218] sm:$0xff]  ;;  %v66_v41 = vld [vmem:[%s5388_s0 + $0x168] sm:$0xff] }
  0x34   :  { %660 = vmatpush.msrb.mxu1 %v291_v42  ;;  %824 = vmatpush.msrb.mxu2 %v307_v57  ;;  %v37_v42 = vld [vmem:[%s5388_s0 + $0x80] sm:$0xff]  ;;  %v332_v57 = vld [vmem:[%s5389_s1 + $0x210] sm:$0xff] }
  0x35   :  { %988 = vmatpush.msrb.mxu3 %v323_v58  ;;  %1158 = vmatpush.msrb.mxu0 %v333_v40  ;;  %v86_v58 = vld [vmem:[%s5388_s0 + $0x208] sm:$0xff] }
  0x36   :  { %661 = vmatpush.msrb.mxu1 %v290_v45  ;;  %825 = vmatpush.msrb.mxu2 %v306_v60  ;;  %v71_v45 = vld [vmem:[%s5388_s0 + $0x190] sm:$0xff] }
  0x37   :  { %989 = vmatpush.msrb.mxu3 %v322_v61  ;;  %1159 = vmatpush.msrb.mxu0 %v332_v57  ;;  %v43_v60 = vld [vmem:[%s5388_s0 + $0xb0] sm:$0xff]  ;;  %v44_v61 = vld [vmem:[%s5388_s0 + $0xb8] sm:$0xff] }
  0x38   :  { %662 = vmatpush.msrb.mxu1 %v289_v49  ;;  %826 = vmatpush.msrb.mxu2 %v305_v63  ;;  %v76_v49 = vld [vmem:[%s5388_s0 + $0x1b8] sm:$0xff]  ;;  %v62_v63 = vld [vmem:[%s5388_s0 + $0x148] sm:$0xff] }
  0x39   :  { %990 = vmatpush.msrb.mxu3 %v321_v0  ;;  %v48_v0 = vld [vmem:[%s5388_s0 + $0xd8] sm:$0xff] }
  0x3a   :  { %515 = vmatmul.f32.gmra.mxu0 %v36_v52  ;;  %590 = vmatmul.f32.gmra.mxu1 %v161_v53  ;;  %v34_v52 = vld [vmem:[%s5388_s0 + $0x68] sm:$0xff]  ;;  %v81_v53 = vld [vmem:[%s5388_s0 + $0x1e0] sm:$0xff] }
  0x3b   :  { %608 = vmatmul.f32.gmra.mxu2 %v191_v54  ;;  %635 = vmatmul.f32.gmra.mxu3 %v236_v55  ;;  %v52_v54 = vld [vmem:[%s5388_s0 + $0xf8] sm:$0xff]  ;;  %v38_v55 = vld [vmem:[%s5388_s0 + $0x88] sm:$0xff] }
  0x3c   :  { %663 = vmatpush.msrb.mxu1 %v288_v56  ;;  %827 = vmatpush.msrb.mxu2 %v304_v6  ;;  %v39_v56 = vld [vmem:[%s5388_s0 + $0x90] sm:$0xff]  ;;  %v331_v6 = vld [vmem:[%s5389_s1 + $0x208] sm:$0xff] }
  0x3d   :  { %991 = vmatpush.msrb.mxu3 %v320_v7  ;;  %1160 = vmatpush.msrb.mxu0 %v331_v6  ;;  %v107_v6 = vld [vmem:[%s5388_s0 + $0x2b0] sm:$0xff] }
  0x3e   :  { %664 = vmatpush.msrb.mxu1 %v287_v59  ;;  %828 = vmatpush.msrb.mxu2 %v303_v9  ;;  %v57_v59 = vld [vmem:[%s5388_s0 + $0x120] sm:$0xff] }
  0x3f   :  { %992 = vmatpush.msrb.mxu3 %v319_v10  ;;  %v101_v9 = vld [vmem:[%s5388_s0 + $0x280] sm:$0xff]  ;;  %v72_v10 = vld [vmem:[%s5388_s0 + $0x198] sm:$0xff] }
  0x40   :  { %665 = vmatpush.msrb.mxu1 %v286_v62  ;;  %829 = vmatpush.msrb.mxu2 %v302_v12  ;;  %v91_v62 = vld [vmem:[%s5388_s0 + $0x230] sm:$0xff] }
  0x41   :  { %993 = vmatpush.msrb.mxu3 %v318_v13  ;;  %v59_v12 = vld [vmem:[%s5388_s0 + $0x130] sm:$0xff] }
  0x42   :  { %518 = vmatmul.f32.gmra.mxu0 %v41_v1  ;;  %593 = vmatmul.f32.gmra.mxu1 %v166_v2  ;;  %v49_v1 = vld [vmem:[%s5388_s0 + $0xe0] sm:$0xff]  ;;  %v96_v2 = vld [vmem:[%s5388_s0 + $0x258] sm:$0xff] }
  0x43   :  { %611 = vmatmul.f32.gmra.mxu2 %v196_v3  ;;  %638 = vmatmul.f32.gmra.mxu3 %v241_v4  ;;  %v67_v3 = vld [vmem:[%s5388_s0 + $0x170] sm:$0xff]  ;;  %v53_v4 = vld [vmem:[%s5388_s0 + $0x100] sm:$0xff] }
  0x44   :  { %666 = vmatpush.msrb.mxu1 %v285_v5  ;;  %830 = vmatpush.msrb.mxu2 %v301_v19  ;;  %v54_v5 = vld [vmem:[%s5388_s0 + $0x108] sm:$0xff]  ;;  %v63_v19 = vld [vmem:[%s5388_s0 + $0x150] sm:$0xff] }
  0x45   :  { %994 = vmatpush.msrb.mxu3 %v317_v20  ;;  %v64_v20 = vld [vmem:[%s5388_s0 + $0x158] sm:$0xff] }
  0x46   :  { %667 = vmatpush.msrb.mxu1 %v284_v8  ;;  %831 = vmatpush.msrb.mxu2 %v300_v21 }
  0x47   :  { %995 = vmatpush.msrb.mxu3 %v316_v23 }
  0x48   :  { %668 = vmatpush.msrb.mxu1 %v283_v11  ;;  %832 = vmatpush.msrb.mxu2 %v299_v24  ;;  %v58_v11 = vld [vmem:[%s5388_s0 + $0x128] sm:$0xff] }
  0x49   :  { %996 = vmatpush.msrb.mxu3 %v315_v25  ;;  %v111_v25 = vld [vmem:[%s5388_s0 + $0x2d0] sm:$0xff] }
  0x4a   :  { %521 = vmatmul.f32.gmra.mxu0 %v46_v14  ;;  %596 = vmatmul.f32.gmra.mxu1 %v171_v15 }
  0x4b   :  { %614 = vmatmul.f32.gmra.mxu2 %v201_v16  ;;  %641 = vmatmul.f32.gmra.mxu3 %v246_v17  ;;  %v106_v17 = vld [vmem:[%s5388_s0 + $0x2a8] sm:$0xff] }
  0x4c   :  { %669 = vmatpush.msrb.mxu1 %v282_v18  ;;  %833 = vmatpush.msrb.mxu2 %v298_v30  ;;  %v77_v18 = vld [vmem:[%s5388_s0 + $0x1c0] sm:$0xff] }
  0x4d   :  { %997 = vmatpush.msrb.mxu3 %v314_v31 }
  0x52   :  { %524 = vmatmul.f32.gmra.mxu0 %v51_v26  ;;  %670 = vmatmul.f32.vlgmr.msrb.gmra.mxu1 %v22_v27  ;;  %v82_v26 = vld [vmem:[%s5388_s0 + $0x1e8] sm:$0xff]  ;;  %v68_v27 = vld [vmem:[%s5388_s0 + $0x178] sm:$0xff] }
  0x53   :  { %617 = vmatmul.f32.gmra.mxu2 %v206_v28  ;;  %644 = vmatmul.f32.gmra.mxu3 %v251_v29  ;;  %v69_v28 = vld [vmem:[%s5388_s0 + $0x180] sm:$0xff] }
  0x54   :  { %v330_v29 = vld [vmem:[%s5389_s1 + $0x200] sm:$0xff]  ;;  %s3173_s1 = smov [#allocation2]  }
  0x55   :  { %1161 = vmatpush.msrb.mxu0 %v330_v29  ;;  %v3798_v29 = vld [vmem:[%s5390_s2] ss:$0 sm:$0xff]  ;;  %s2791_s18 = sshll.u32 %s3173_s1, 4  ;;  %s2792_s18 = int_to_ptr.vmem [resolvable:$true] %s2791_s18 }
  0x5a   :  { %527 = vmatmul.f32.gmra.mxu0 %v56_v32  ;;  %673 = vmatmul.f32.gmra.mxu1 %v27_v33 }
  0x5b   :  { %620 = vmatmul.f32.gmra.mxu2 %v211_v34  ;;  %647 = vmatmul.f32.gmra.mxu3 %v256_v35  ;;  %v116_v34 = vld [vmem:[%s5388_s0 + $0x2f8] sm:$0xff]  ;;  %v87_v35 = vld [vmem:[%s5388_s0 + $0x210] sm:$0xff] }
  0x62   :  { %530 = vmatmul.f32.gmra.mxu0 %v61_v36  ;;  %676 = vmatmul.f32.gmra.mxu1 %v32_v37  ;;  %v73_v36 = vld [vmem:[%s5388_s0 + $0x1a0] sm:$0xff]  ;;  %v74_v37 = vld [vmem:[%s5388_s0 + $0x1a8] sm:$0xff] }
  0x63   :  { %623 = vmatmul.f32.gmra.mxu2 %v216_v38  ;;  %650 = vmatmul.f32.gmra.mxu3 %v261_v39 }
  0x6a   :  { %533 = vmatmul.f32.gmra.mxu0 %v66_v41  ;;  %679 = vmatmul.f32.gmra.mxu1 %v37_v42  ;;  %v121_v42 = vld [vmem:[%s5388_s0 + $0x320] sm:$0xff] }
  0x6b   :  { %834 = vmatmul.f32.vlgmr.msrb.gmra.mxu2 %v23_v43  ;;  %998 = vmatmul.f32.vlgmr.msrb.gmra.mxu3 %v24_v44  ;;  %v92_v43 = vld [vmem:[%s5388_s0 + $0x238] sm:$0xff]  ;;  %v78_v44 = vld [vmem:[%s5388_s0 + $0x1c8] sm:$0xff] }
  0x72   :  { %536 = vmatmul.f32.gmra.mxu0 %v71_v45  ;;  %682 = vmatmul.f32.gmra.mxu1 %v42_v46  ;;  %v79_v45 = vld [vmem:[%s5388_s0 + $0x1d0] sm:$0xff]  ;;  %v1362_v46 = vld [vmem:[%s5391_s3 + $0x18] sm:$0xff] }
  0x73   :  { %837 = vmatmul.f32.gmra.mxu2 %v28_v47  ;;  %1001 = vmatmul.f32.gmra.mxu3 %v29_v48  ;;  %v2854_v47 = vld [vmem:[%s5391_s3 + $0x38] sm:$0xff] }
  0x74   :  { %v2860_v48 = vld [vmem:[%s5391_s3 + $0x58] sm:$0xff]  ;;  %1407 = vmatpush.msra.mxu2 %v1362_v46  ;;  %1384 = vmatpush.msra.mxu1 %v2854_v47 }
  0x75   :  { %1435 = vmatpush.msra.mxu3 %v2860_v48 }
  0x7a   :  { %539 = vmatmul.f32.gmra.mxu0 %v76_v49  ;;  %685 = vmatmul.f32.gmra.mxu1 %v47_v50 }
  0x7b   :  { %840 = vmatmul.f32.gmra.mxu2 %v33_v51  ;;  %1004 = vmatmul.f32.gmra.mxu3 %v34_v52 }
  0x82   :  { %542 = vmatmul.f32.gmra.mxu0 %v81_v53  ;;  %688 = vmatmul.f32.gmra.mxu1 %v52_v54  ;;  %v126_v53 = vld [vmem:[%s5388_s0 + $0x348] sm:$0xff]  ;;  %v97_v54 = vld [vmem:[%s5388_s0 + $0x260] sm:$0xff] }
  0x83   :  { %843 = vmatmul.f32.gmra.mxu2 %v38_v55  ;;  %1007 = vmatmul.f32.gmra.mxu3 %v39_v56  ;;  %v83_v55 = vld [vmem:[%s5388_s0 + $0x1f0] sm:$0xff]  ;;  %v84_v56 = vld [vmem:[%s5388_s0 + $0x1f8] sm:$0xff] }
  0x8a   :  { %545 = vmatmul.f32.gmra.mxu0 %v86_v58  ;;  %691 = vmatmul.f32.gmra.mxu1 %v57_v59 }
  0x8b   :  { %846 = vmatmul.f32.gmra.mxu2 %v43_v60  ;;  %1010 = vmatmul.f32.gmra.mxu3 %v44_v61  ;;  %v131_v61 = vld [vmem:[%s5388_s0 + $0x370] sm:$0xff] }
  0x92   :  { %548 = vmatmul.f32.gmra.mxu0 %v91_v62  ;;  %694 = vmatmul.f32.gmra.mxu1 %v62_v63  ;;  %v102_v62 = vld [vmem:[%s5388_s0 + $0x288] sm:$0xff]  ;;  %v88_v63 = vld [vmem:[%s5388_s0 + $0x218] sm:$0xff] }
  0x93   :  { %849 = vmatmul.f32.gmra.mxu2 %v48_v0  ;;  %1013 = vmatmul.f32.gmra.mxu3 %v49_v1  ;;  %v89_v0 = vld [vmem:[%s5388_s0 + $0x220] sm:$0xff] }
  0x9a   :  { %551 = vmatmul.f32.gmra.mxu0 %v96_v2  ;;  %697 = vmatmul.f32.gmra.mxu1 %v67_v3 }
  0x9b   :  { %852 = vmatmul.f32.gmra.mxu2 %v53_v4  ;;  %1016 = vmatmul.f32.gmra.mxu3 %v54_v5  ;;  %v136_v5 = vld [vmem:[%s5388_s0 + $0x398] sm:$0xff] }
  0x9f   :  { %v3609_v7 = vpop.f32.mrf.mxu0  ;;  %v3611_v8 = vpop.f32.mrf.mxu1 }
  0xa2   :  { %554 = vmatmul.f32.gmra.mxu0 %v101_v9  ;;  %700 = vmatmul.f32.gmra.mxu1 %v72_v10  ;;  %v93_v9 = vld [vmem:[%s5388_s0 + $0x240] sm:$0xff]  ;;  %v94_v10 = vld [vmem:[%s5388_s0 + $0x248] sm:$0xff] }
  0xa3   :  { %855 = vmatmul.f32.gmra.mxu2 %v58_v11  ;;  %1019 = vmatmul.f32.gmra.mxu3 %v59_v12 }
  0xa6   :  { %v3625_v13 = vpop.f32.mrf.mxu2  ;;  %v3627_v14 = vpop.f32.mrf.mxu3 }
  0xa7   :  { %5394 = vst [vmem:[#allocation5_spill] sm:$0xff] %v3625_v13  ;;  %v3629_v15 = vpop.f32.mrf.mxu0  ;;  %v3631_v16 = vpop.f32.mrf.mxu1  ;;  %v258_v13 = vld [vmem:[%s5388_s0 + $0x768] sm:$0xff] }
  0xa8   :  { %5395 = vst [vmem:[#allocation6_spill] sm:$0xff] %v3627_v14  ;;  %v252_v14 = vld [vmem:[%s5388_s0 + $0x738] sm:$0xff] }
  0xaa   :  { %557 = vmatmul.f32.gmra.mxu0 %v106_v17  ;;  %703 = vmatmul.f32.gmra.mxu1 %v77_v18 }
  0xab   :  { %858 = vmatmul.f32.gmra.mxu2 %v63_v19  ;;  %1022 = vmatmul.f32.gmra.mxu3 %v64_v20  ;;  %v141_v19 = vld [vmem:[%s5388_s0 + $0x3c0] sm:$0xff]  ;;  %v112_v20 = vld [vmem:[%s5388_s0 + $0x2d8] sm:$0xff] }
  0xae   :  { %v3645_v21 = vpop.f32.mrf.mxu2  ;;  %v3647_v22 = vpop.f32.mrf.mxu3 }
  0xaf   :  { %5396 = vst [vmem:[#allocation7_spill] sm:$0xff] %v3645_v21  ;;  %v3649_v23 = vpop.f32.mrf.mxu0  ;;  %v3651_v24 = vpop.f32.mrf.mxu1 }
  0xb0   :  { %5397 = vst [vmem:[#allocation8_spill] sm:$0xff] %v3647_v22 }
  0xb2   :  { %560 = vmatmul.f32.gmra.mxu0 %v111_v25  ;;  %706 = vmatmul.f32.gmra.mxu1 %v82_v26  ;;  %v98_v25 = vld [vmem:[%s5388_s0 + $0x268] sm:$0xff]  ;;  %v99_v26 = vld [vmem:[%s5388_s0 + $0x270] sm:$0xff] }
  0xb3   :  { %861 = vmatmul.f32.gmra.mxu2 %v68_v27  ;;  %1025 = vmatmul.f32.gmra.mxu3 %v69_v28 }
  0xb6   :  { %v3668_v30 = vpop.f32.mrf.mxu2  ;;  %v3670_v31 = vpop.f32.mrf.mxu3 }
  0xb7   :  { %5398 = vst [vmem:[#allocation9_spill] sm:$0xff] %v3668_v30  ;;  %v3672_v32 = vpop.f32.mrf.mxu0  ;;  %v3674_v33 = vpop.f32.mrf.mxu1  ;;  %v2872_v30 = vld [vmem:[%s5391_s3 + $0xa0] sm:$0xff] }
  0xb8   :  { %5399 = vst [vmem:[#allocation10_spill] sm:$0xff] %v3670_v31  ;;  %v232_v31 = vld [vmem:[%s5388_s0 + $0x698] sm:$0xff] }
  0xba   :  { %563 = vmatmul.f32.gmra.mxu0 %v116_v34  ;;  %709 = vmatmul.f32.gmra.mxu1 %v87_v35 }
  0xbb   :  { %864 = vmatmul.f32.gmra.mxu2 %v73_v36  ;;  %1028 = vmatmul.f32.gmra.mxu3 %v74_v37  ;;  %v117_v36 = vld [vmem:[%s5388_s0 + $0x300] sm:$0xff] }
  0xbc   :  { %v25_v37 = vld [vmem:[%s5388_s0 + $0x20] sm:$0xff] }
  0xbe   :  { %v3688_v38 = vpop.f32.mrf.mxu2  ;;  %v3690_v39 = vpop.f32.mrf.mxu3 }
  0xbf   :  { %5400 = vst [vmem:[#allocation11_spill] sm:$0xff] %v3688_v38  ;;  %v3692_v40 = vpop.f32.mrf.mxu0  ;;  %v3694_v41 = vpop.f32.mrf.mxu1 }
  0xc0   :  { %5401 = vst [vmem:[#allocation12_spill] sm:$0xff] %v3690_v39 }
  0xc2   :  { %566 = vmatmul.f32.gmra.mxu0 %v121_v42  ;;  %712 = vmatmul.f32.gmra.mxu1 %v92_v43  ;;  %v103_v42 = vld [vmem:[%s5388_s0 + $0x290] sm:$0xff]  ;;  %v104_v43 = vld [vmem:[%s5388_s0 + $0x298] sm:$0xff] }
  0xc3   :  { %867 = vmatmul.f32.gmra.mxu2 %v78_v44  ;;  %1031 = vmatmul.f32.gmra.mxu3 %v79_v45  ;;  %v508_v44 = vadd.f32 %v3798_v29, %v3609_v7  ;;  %v108_v7 = vld [vmem:[%s5388_s0 + $0x2b8] sm:$0xff] }
  0xc6   :  { %v3717_v49 = vpop.f32.mrf.mxu2  ;;  %v3719_v50 = vpop.f32.mrf.mxu3 }
  0xc7   :  { %5402 = vst [vmem:[#allocation13_spill] sm:$0xff] %v3717_v49  ;;  %v3721_v51 = vpop.f32.mrf.mxu0  ;;  %v3723_v52 = vpop.f32.mrf.mxu1  ;;  %v2875_v49 = vld [vmem:[%s5391_s3 + $0xb8] sm:$0xff] }
  0xc8   :  { %5403 = vst [vmem:[#allocation14_spill] sm:$0xff] %v3719_v50  ;;  %v130_v50 = vld [vmem:[%s5388_s0 + $0x368] sm:$0xff] }
  0xc9   :  { %5404 = vst [vmem:[#allocation15_spill] sm:$0xff] %v3723_v52 }
  0xca   :  { %569 = vmatmul.f32.gmra.mxu0 %v126_v53  ;;  %715 = vmatmul.f32.gmra.mxu1 %v97_v54 }
  0xcb   :  { %870 = vmatmul.f32.gmra.mxu2 %v83_v55  ;;  %1034 = vmatmul.f32.gmra.mxu3 %v84_v56  ;;  %v122_v55 = vld [vmem:[%s5388_s0 + $0x328] sm:$0xff] }
  0xcc   :  { %v30_v56 = vld [vmem:[%s5388_s0 + $0x48] sm:$0xff] }
  0xce   :  { %v3737_v57 = vpop.f32.mrf.mxu2  ;;  %v3739_v58 = vpop.f32.mrf.mxu3 }
  0xcf   :  { %5405 = vst [vmem:[#allocation16_spill] sm:$0xff] %v3737_v57  ;;  %v3741_v59 = vpop.f32.mrf.mxu0  ;;  %v671_v60 = vpop.f32.mrf.mxu1  ;;  %v2870_v57 = vld [vmem:[%s5391_s3 + $0x98] sm:$0xff] }
  0xd0   :  { %5406 = vst [vmem:[#allocation17_spill] sm:$0xff] %v3739_v58  ;;  %v672_v45 = vadd.f32 %v671_v60, %v508_v44  ;;  %v109_v60 = vld [vmem:[%s5388_s0 + $0x2c0] sm:$0xff] }
  0xd2   :  { %572 = vmatmul.f32.gmra.mxu0 %v131_v61  ;;  %718 = vmatmul.f32.gmra.mxu1 %v102_v62  ;;  %v511_v62 = vadd.f32 %v3798_v29, %v3629_v15  ;;  %v113_v15 = vld [vmem:[%s5388_s0 + $0x2e0] sm:$0xff] }
  0xd3   :  { %873 = vmatmul.f32.gmra.mxu2 %v88_v63  ;;  %1037 = vmatmul.f32.gmra.mxu3 %v89_v0 }
  0xd6   :  { %v3755_v1 = vpop.f32.mrf.mxu2  ;;  %v3757_v2 = vpop.f32.mrf.mxu3 }
  0xd7   :  { %5407 = vst [vmem:[#allocation18_spill] sm:$0xff] %v3755_v1  ;;  %v3759_v3 = vpop.f32.mrf.mxu0  ;;  %v674_v4 = vpop.f32.mrf.mxu1  ;;  %v2857_v1 = vld [vmem:[%s5391_s3 + $0x40] sm:$0xff] }
  0xd8   :  { %5408 = vst [vmem:[#allocation19_spill] sm:$0xff] %v3757_v2  ;;  %v675_v63 = vadd.f32 %v674_v4, %v511_v62  ;;  %v114_v4 = vld [vmem:[%s5388_s0 + $0x2e8] sm:$0xff]  ;;  %v207_v2 = vld [vmem:[%s5388_s0 + $0x5d0] sm:$0xff] }
  0xda   :  { %575 = vmatmul.f32.gmra.mxu0 %v136_v5  ;;  %721 = vmatmul.f32.gmra.mxu1 %v107_v6 }
  0xdb   :  { %876 = vmatmul.f32.gmra.mxu2 %v93_v9  ;;  %1040 = vmatmul.f32.gmra.mxu3 %v94_v10 }
  0xde   :  { %v3773_v11 = vpop.f32.mrf.mxu2  ;;  %v3775_v12 = vpop.f32.mrf.mxu3 }
  0xdf   :  { %5409 = vst [vmem:[#allocation20_spill] sm:$0xff] %v3773_v11  ;;  %v3777_v17 = vpop.f32.mrf.mxu0  ;;  %v677_v18 = vpop.f32.mrf.mxu1 }
  0xe0   :  { %5410 = vst [vmem:[#allocation21_spill] sm:$0xff] %v3775_v12  ;;  %v202_v12 = vld [vmem:[%s5388_s0 + $0x5a8] sm:$0xff] }
  0xe2   :  { %578 = vmatmul.f32.gmra.mxu0 %v141_v19  ;;  %724 = vmatmul.f32.gmra.mxu1 %v112_v20  ;;  %v127_v19 = vld [vmem:[%s5388_s0 + $0x350] sm:$0xff] }
  0xe3   :  { %879 = vmatmul.f32.gmra.mxu2 %v98_v25  ;;  %1043 = vmatmul.f32.gmra.mxu3 %v99_v26  ;;  %v35_v20 = vld [vmem:[%s5388_s0 + $0x70] sm:$0xff]  ;;  %v514_v26 = vadd.f32 %v3798_v29, %v3649_v23  ;;  %v118_v23 = vld [vmem:[%s5388_s0 + $0x308] sm:$0xff] }
  0xe6   :  { %v3791_v27 = vpop.f32.mrf.mxu2  ;;  %v3793_v28 = vpop.f32.mrf.mxu3 }
  0xe7   :  { %5411 = vst [vmem:[#allocation22_spill] sm:$0xff] %v3791_v27  ;;  %v3800_v34 = vpop.f32.mrf.mxu0  ;;  %v680_v35 = vpop.f32.mrf.mxu1  ;;  %v170_v27 = vld [vmem:[%s5388_s0 + $0x4a8] sm:$0xff] }
  0xe8   :  { %5412 = vst [vmem:[#allocation23_spill] sm:$0xff] %v3793_v28 }
  0xea   :  { %727 = vmatmul.f32.gmra.mxu1 %v117_v36  ;;  %2802 = vmatmul.msk.f32.vlgmr.msrb.gmra.mxu0 %vm342_vm0, %v25_v37  ;;  %v678_v36 = vadd.f32 %v677_v18, %v514_v26  ;;  %v119_v18 = vld [vmem:[%s5388_s0 + $0x310] sm:$0xff] }
  0xeb   :  { %882 = vmatmul.f32.gmra.mxu2 %v103_v42  ;;  %1046 = vmatmul.f32.gmra.mxu3 %v104_v43 }
  0xee   :  { %v835_v46 = vpop.f32.mrf.mxu2  ;;  %v999_v47 = vpop.f32.mrf.mxu3 }
  0xef   :  { %v836_v48 = vadd.f32 %v835_v46, %v672_v45  ;;  %v3817_v53 = vpop.f32.mrf.mxu0  ;;  %v683_v54 = vpop.f32.mrf.mxu1  ;;  %v132_v46 = vld [vmem:[%s5388_s0 + $0x378] sm:$0xff] }
  0xf1   :  { %v3831_v61 = vadd.f32 %v999_v47, %v836_v48  ;;  %v40_v47 = vld [vmem:[%s5388_s0 + $0x98] sm:$0xff] }
  0xf2   :  { %730 = vmatmul.f32.gmra.mxu1 %v122_v55  ;;  %2803 = vmatmul.msk.f32.gmra.mxu0 %vm342_vm0, %v30_v56  ;;  %v517_v55 = vadd.f32 %v3798_v29, %v3672_v32  ;;  %v123_v32 = vld [vmem:[%s5388_s0 + $0x330] sm:$0xff] }
  0xf3   :  { %885 = vmatmul.f32.gmra.mxu2 %v108_v7  ;;  %1049 = vmatmul.f32.gmra.mxu3 %v109_v60 }
  0xf4   :  { %v681_v56 = vadd.f32 %v680_v35, %v517_v55  ;;  %v124_v35 = vld [vmem:[%s5388_s0 + $0x338] sm:$0xff] }
  0xf6   :  { %v838_v0 = vpop.f32.mrf.mxu2  ;;  %v1002_v5 = vpop.f32.mrf.mxu3 }
  0xf7   :  { %v839_v6 = vadd.f32 %v838_v0, %v675_v63  ;;  %v3836_v9 = vpop.f32.mrf.mxu0  ;;  %v686_v10 = vpop.f32.mrf.mxu1 }
  0xf9   :  { %v3850_v25 = vadd.f32 %v1002_v5, %v839_v6  ;;  %v137_v5 = vld [vmem:[%s5388_s0 + $0x3a0] sm:$0xff] }
  0xfa   :  { %733 = vmatmul.f32.gmra.mxu1 %v127_v19  ;;  %2804 = vmatmul.msk.f32.gmra.mxu0 %vm342_vm0, %v35_v20  ;;  %v45_v6 = vld [vmem:[%s5388_s0 + $0xc0] sm:$0xff]  ;;  %v520_v20 = vadd.f32 %v3798_v29, %v3692_v40  ;;  %v128_v40 = vld [vmem:[%s5388_s0 + $0x358] sm:$0xff] }
  0xfb   :  { %888 = vmatmul.f32.gmra.mxu2 %v113_v15  ;;  %1052 = vmatmul.f32.gmra.mxu3 %v114_v4 }
  0xfc   :  { %v684_v15 = vadd.f32 %v683_v54, %v520_v20  ;;  %v129_v54 = vld [vmem:[%s5388_s0 + $0x360] sm:$0xff] }
  0xfe   :  { %v841_v37 = vpop.f32.mrf.mxu2  ;;  %v1005_v42 = vpop.f32.mrf.mxu3 }
  0xff   :  { %v842_v43 = vadd.f32 %v841_v37, %v678_v36  ;;  %v3855_v44 = vpop.f32.mrf.mxu0  ;;  %v689_v45 = vpop.f32.mrf.mxu1 }
 0x101   :  { %v3869_v48 = vadd.f32 %v1005_v42, %v842_v43  ;;  %v142_v43 = vld [vmem:[%s5388_s0 + $0x3c8] sm:$0xff] }
 0x102   :  { %736 = vmatmul.f32.gmra.mxu1 %v132_v46  ;;  %2805 = vmatmul.msk.f32.gmra.mxu0 %vm342_vm0, %v40_v47  ;;  %v50_v46 = vld [vmem:[%s5388_s0 + $0xe8] sm:$0xff] }
 0x103   :  { %891 = vmatmul.f32.gmra.mxu2 %v118_v23  ;;  %1055 = vmatmul.f32.gmra.mxu3 %v119_v18  ;;  %v523_v23 = vadd.f32 %v3798_v29, %v3721_v51  ;;  %v133_v51 = vld [vmem:[%s5388_s0 + $0x380] sm:$0xff] }
 0x105   :  { %v687_v18 = vadd.f32 %v686_v10, %v523_v23  ;;  %v134_v10 = vld [vmem:[%s5388_s0 + $0x388] sm:$0xff]  ;;  %v529_v23 = vadd.f32 %v3798_v29, %v3759_v3  ;;  %v65_v3 = vld [vmem:[%s5388_s0 + $0x160] sm:$0xff] }
 0x106   :  { %v844_v7 = vpop.f32.mrf.mxu2  ;;  %v1008_v60 = vpop.f32.mrf.mxu3 }
 0x107   :  { %v845_v62 = vadd.f32 %v844_v7, %v681_v56  ;;  %v3874_v63 = vpop.f32.mrf.mxu0  ;;  %v692_v0 = vpop.f32.mrf.mxu1 }
 0x109   :  { %v3888_v19 = vadd.f32 %v1008_v60, %v845_v62 }
 0x10a   :  { %739 = vmatmul.f32.gmra.mxu1 %v137_v5  ;;  %2806 = vmatmul.msk.f32.gmra.mxu0 %vm342_vm0, %v45_v6  ;;  %v147_v5 = vld [vmem:[%s5388_s0 + $0x3f0] sm:$0xff] }
 0x10b   :  { %894 = vmatmul.f32.gmra.mxu2 %v123_v32  ;;  %1058 = vmatmul.f32.gmra.mxu3 %v124_v35  ;;  %v55_v6 = vld [vmem:[%s5388_s0 + $0x110] sm:$0xff]  ;;  %v526_v35 = vadd.f32 %v3798_v29, %v3741_v59  ;;  %v138_v59 = vld [vmem:[%s5388_s0 + $0x3a8] sm:$0xff] }
 0x10d   :  { %v690_v20 = vadd.f32 %v689_v45, %v526_v35  ;;  %v139_v45 = vld [vmem:[%s5388_s0 + $0x3b0] sm:$0xff] }
 0x10e   :  { %v847_v4 = vpop.f32.mrf.mxu2  ;;  %v1011_v26 = vpop.f32.mrf.mxu3 }
 0x10f   :  { %v848_v36 = vadd.f32 %v847_v4, %v684_v15  ;;  %v3893_v37 = vpop.f32.mrf.mxu0  ;;  %v3895_v42 = vpop.f32.mrf.mxu1 }
 0x111   :  { %v3909_v47 = vadd.f32 %v1011_v26, %v848_v36 }
 0x112   :  { %742 = vmatmul.f32.gmra.mxu1 %v142_v43  ;;  %2807 = vmatmul.msk.f32.gmra.mxu0 %vm342_vm0, %v50_v46  ;;  %v152_v43 = vld [vmem:[%s5388_s0 + $0x418] sm:$0xff] }
 0x113   :  { %897 = vmatmul.f32.gmra.mxu2 %v128_v40  ;;  %1061 = vmatmul.f32.gmra.mxu3 %v129_v54  ;;  %v60_v46 = vld [vmem:[%s5388_s0 + $0x138] sm:$0xff] }
 0x116   :  { %v850_v55 = vpop.f32.mrf.mxu2  ;;  %v1014_v56 = vpop.f32.mrf.mxu3 }
 0x117   :  { %v851_v7 = vadd.f32 %v850_v55, %v687_v18  ;;  %v3914_v60 = vpop.f32.mrf.mxu0  ;;  %v3916_v62 = vpop.f32.mrf.mxu1  ;;  %v1361_v18 = vld [vmem:[%s5391_s3 + $0x10] sm:$0xff]  ;;  %v693_v55 = vadd.f32 %v692_v0, %v529_v23  ;;  %v144_v0 = vld [vmem:[%s5388_s0 + $0x3d8] sm:$0xff] }
 0x118   :  { %1408 = vmatpush.msra.mxu2 %v1361_v18  ;;  %v162_v18 = vld [vmem:[%s5388_s0 + $0x468] sm:$0xff] }
 0x119   :  { %v3930_v32 = vadd.f32 %v1014_v56, %v851_v7 }
 0x11a   :  { %745 = vmatmul.f32.gmra.mxu1 %v147_v5  ;;  %2808 = vmatmul.msk.f32.gmra.mxu0 %vm342_vm0, %v55_v6 }
 0x11b   :  { %900 = vmatmul.f32.gmra.mxu2 %v133_v51  ;;  %1064 = vmatmul.f32.gmra.mxu3 %v134_v10  ;;  %v157_v51 = vld [vmem:[%s5388_s0 + $0x440] sm:$0xff]  ;;  %v143_v10 = vld [vmem:[%s5388_s0 + $0x3d0] sm:$0xff] }
 0x11e   :  { %v853_v15 = vpop.f32.mrf.mxu2  ;;  %v1017_v4 = vpop.f32.mrf.mxu3 }
 0x11f   :  { %v854_v26 = vadd.f32 %v853_v15, %v690_v20  ;;  %v3935_v36 = vpop.f32.mrf.mxu0  ;;  %v701_v54 = vpop.f32.mrf.mxu1  ;;  %v2853_v20 = vld [vmem:[%s5391_s3 + $0x30] sm:$0xff] }
 0x120   :  { %v2859_v15 = vld [vmem:[%s5391_s3 + $0x50] sm:$0xff]  ;;  %1385 = vmatpush.msra.mxu1 %v2853_v20 }
 0x121   :  { %v3949_v40 = vadd.f32 %v1017_v4, %v854_v26  ;;  %v532_v4 = vadd.f32 %v3798_v29, %v3777_v17  ;;  %1436 = vmatpush.msra.mxu3 %v2859_v15  ;;  %v70_v17 = vld [vmem:[%s5388_s0 + $0x188] sm:$0xff]  ;;  %v167_v15 = vld [vmem:[%s5388_s0 + $0x490] sm:$0xff] }
 0x122   :  { %748 = vmatmul.f32.gmra.mxu1 %v152_v43  ;;  %2809 = vmatmul.msk.f32.gmra.mxu0 %vm342_vm0, %v60_v46 }
 0x123   :  { %903 = vmatmul.f32.gmra.mxu2 %v138_v59  ;;  %1067 = vmatmul.f32.gmra.mxu3 %v139_v45  ;;  %v696_v43 = vadd.f32 %v3895_v42, %v532_v4  ;;  %v149_v42 = vld [vmem:[%s5388_s0 + $0x400] sm:$0xff]  ;;  %v75_v4 = vld [vmem:[%s5388_s0 + $0x1b0] sm:$0xff] }
 0x126   :  { %v856_v56 = vpop.f32.mrf.mxu2  ;;  %v1020_v7 = vpop.f32.mrf.mxu3 }
 0x127   :  { %v857_v5 = vadd.f32 %v856_v56, %v693_v55  ;;  %v3957_v6 = vpop.f32.mrf.mxu0  ;;  %v704_v26 = vpop.f32.mrf.mxu1  ;;  %v148_v55 = vld [vmem:[%s5388_s0 + $0x3f8] sm:$0xff] }
 0x129   :  { %v3971_v35 = vadd.f32 %v1020_v7, %v857_v5  ;;  %v535_v7 = vadd.f32 %v3798_v29, %v3800_v34  ;;  %v153_v34 = vld [vmem:[%s5388_s0 + $0x420] sm:$0xff] }
 0x12a   :  { %751 = vmatmul.f32.gmra.mxu1 %v157_v51  ;;  %2810 = vmatmul.msk.f32.gmra.mxu0 %vm342_vm0, %v65_v3 }
 0x12b   :  { %906 = vmatmul.f32.gmra.mxu2 %v143_v10  ;;  %1070 = vmatmul.f32.gmra.mxu3 %v144_v0  ;;  %v699_v5 = vadd.f32 %v3916_v62, %v535_v7  ;;  %v154_v62 = vld [vmem:[%s5388_s0 + $0x428] sm:$0xff]  ;;  %v172_v7 = vld [vmem:[%s5388_s0 + $0x4b8] sm:$0xff] }
 0x12e   :  { %v859_v46 = vpop.f32.mrf.mxu2  ;;  %v1023_v59 = vpop.f32.mrf.mxu3 }
 0x12f   :  { %v860_v45 = vadd.f32 %v859_v46, %v696_v43  ;;  %v3983_v23 = vpop.f32.mrf.mxu0  ;;  %v707_v51 = vpop.f32.mrf.mxu1  ;;  %v538_v46 = vadd.f32 %v3798_v29, %v3817_v53  ;;  %v158_v53 = vld [vmem:[%s5388_s0 + $0x448] sm:$0xff] }
 0x131   :  { %v3997_v56 = vadd.f32 %v1023_v59, %v860_v45  ;;  %v702_v59 = vadd.f32 %v701_v54, %v538_v46  ;;  %v159_v54 = vld [vmem:[%s5388_s0 + $0x450] sm:$0xff]  ;;  %v177_v46 = vld [vmem:[%s5388_s0 + $0x4e0] sm:$0xff] }
 0x132   :  { %754 = vmatmul.f32.gmra.mxu1 %v162_v18  ;;  %2811 = vmatmul.msk.f32.gmra.mxu0 %vm342_vm0, %v70_v17 }
 0x133   :  { %909 = vmatmul.f32.gmra.mxu2 %v148_v55  ;;  %1073 = vmatmul.f32.gmra.mxu3 %v149_v42 }
 0x136   :  { %v862_v3 = vpop.f32.mrf.mxu2  ;;  %v1026_v10 = vpop.f32.mrf.mxu3 }
 0x137   :  { %v863_v0 = vadd.f32 %v862_v3, %v699_v5  ;;  %v4003_v20 = vpop.f32.mrf.mxu0  ;;  %v710_v17 = vpop.f32.mrf.mxu1  ;;  %v80_v5 = vld [vmem:[%s5388_s0 + $0x1d8] sm:$0xff] }
 0x139   :  { %v4017_v43 = vadd.f32 %v1026_v10, %v863_v0  ;;  %v541_v10 = vadd.f32 %v3798_v29, %v3836_v9  ;;  %v163_v9 = vld [vmem:[%s5388_s0 + $0x470] sm:$0xff] }
 0x13a   :  { %757 = vmatmul.f32.gmra.mxu1 %v167_v15  ;;  %2812 = vmatmul.msk.f32.gmra.mxu0 %vm342_vm0, %v75_v4 }
 0x13b   :  { %912 = vmatmul.f32.gmra.mxu2 %v153_v34  ;;  %1076 = vmatmul.f32.gmra.mxu3 %v154_v62  ;;  %v705_v0 = vadd.f32 %v704_v26, %v541_v10  ;;  %v164_v26 = vld [vmem:[%s5388_s0 + $0x478] sm:$0xff] }
 0x13e   :  { %v865_v45 = vpop.f32.mrf.mxu2  ;;  %v1029_v18 = vpop.f32.mrf.mxu3 }
 0x13f   :  { %v866_v55 = vadd.f32 %v865_v45, %v702_v59  ;;  %v4022_v42 = vpop.f32.mrf.mxu0  ;;  %v85_v59 = vld [vmem:[%s5388_s0 + $0x200] sm:$0xff]  ;;  %v713_v45 = vpop.f32.mrf.mxu1 }
 0x141   :  { %v4036_v3 = vadd.f32 %v1029_v18, %v866_v55  ;;  %v544_v55 = vadd.f32 %v3798_v29, %v3855_v44  ;;  %v168_v44 = vld [vmem:[%s5388_s0 + $0x498] sm:$0xff] }
 0x142   :  { %760 = vmatmul.f32.gmra.mxu1 %v172_v7  ;;  %2813 = vmatmul.msk.f32.gmra.mxu0 %vm342_vm0, %v80_v5 }
 0x143   :  { %915 = vmatmul.f32.gmra.mxu2 %v158_v53  ;;  %1079 = vmatmul.f32.gmra.mxu3 %v159_v54  ;;  %v708_v7 = vadd.f32 %v707_v51, %v544_v55  ;;  %v169_v51 = vld [vmem:[%s5388_s0 + $0x4a0] sm:$0xff] }
 0x146   :  { %v868_v15 = vpop.f32.mrf.mxu2  ;;  %v1032_v4 = vpop.f32.mrf.mxu3 }
 0x147   :  { %v869_v34 = vadd.f32 %v868_v15, %v705_v0  ;;  %v4041_v62 = vpop.f32.mrf.mxu0  ;;  %v182_v0 = vld [vmem:[%s5388_s0 + $0x508] sm:$0xff] }
 0x148   :  { %v90_v15 = vld [vmem:[%s5388_s0 + $0x228] sm:$0xff] }
 0x149   :  { %v4055_v18 = vadd.f32 %v1032_v4, %v869_v34  ;;  %v547_v34 = vadd.f32 %v3798_v29, %v3874_v63  ;;  %v173_v63 = vld [vmem:[%s5388_s0 + $0x4c0] sm:$0xff] }
 0x14a   :  { %763 = vmatmul.f32.gmra.mxu1 %v177_v46  ;;  %2814 = vmatmul.msk.f32.gmra.mxu0 %vm342_vm0, %v85_v59  ;;  %v716_v46 = vpop.f32.mrf.mxu1 }
 0x14b   :  { %918 = vmatmul.f32.gmra.mxu2 %v163_v9  ;;  %1082 = vmatmul.f32.gmra.mxu3 %v164_v26  ;;  %v711_v59 = vadd.f32 %v710_v17, %v547_v34  ;;  %v174_v17 = vld [vmem:[%s5388_s0 + $0x4c8] sm:$0xff] }
 0x14e   :  { %v871_v5 = vpop.f32.mrf.mxu2  ;;  %v1035_v53 = vpop.f32.mrf.mxu3 }
 0x14f   :  { %v872_v54 = vadd.f32 %v871_v5, %v708_v7  ;;  %v4060_v10 = vpop.f32.mrf.mxu0  ;;  %v187_v5 = vld [vmem:[%s5388_s0 + $0x530] sm:$0xff] }
 0x151   :  { %v4074_v4 = vadd.f32 %v1035_v53, %v872_v54  ;;  %v95_v53 = vld [vmem:[%s5388_s0 + $0x250] sm:$0xff] }
 0x152   :  { %766 = vmatmul.f32.gmra.mxu1 %v182_v0  ;;  %2815 = vmatmul.msk.f32.gmra.mxu0 %vm342_vm0, %v90_v15  ;;  %v550_v0 = vadd.f32 %v3798_v29, %v3893_v37  ;;  %v178_v37 = vld [vmem:[%s5388_s0 + $0x4e8] sm:$0xff] }
 0x153   :  { %921 = vmatmul.f32.gmra.mxu2 %v168_v44  ;;  %1085 = vmatmul.f32.gmra.mxu3 %v169_v51  ;;  %v719_v44 = vpop.f32.mrf.mxu1 }
 0x154   :  { %v714_v15 = vadd.f32 %v713_v45, %v550_v0  ;;  %v179_v45 = vld [vmem:[%s5388_s0 + $0x4f0] sm:$0xff] }
 0x156   :  { %v874_v9 = vpop.f32.mrf.mxu2  ;;  %v1038_v26 = vpop.f32.mrf.mxu3 }
 0x157   :  { %v875_v55 = vadd.f32 %v874_v9, %v711_v59  ;;  %v4079_v7 = vpop.f32.mrf.mxu0 }
 0x159   :  { %v4093_v54 = vadd.f32 %v1038_v26, %v875_v55  ;;  %v192_v26 = vld [vmem:[%s5388_s0 + $0x558] sm:$0xff] }
 0x15a   :  { %769 = vmatmul.f32.gmra.mxu1 %v187_v5  ;;  %2816 = vmatmul.msk.f32.gmra.mxu0 %vm342_vm0, %v95_v53  ;;  %v100_v55 = vld [vmem:[%s5388_s0 + $0x278] sm:$0xff]  ;;  %v553_v53 = vadd.f32 %v3798_v29, %v3914_v60  ;;  %v183_v60 = vld [vmem:[%s5388_s0 + $0x510] sm:$0xff] }
 0x15b   :  { %924 = vmatmul.f32.gmra.mxu2 %v173_v63  ;;  %1088 = vmatmul.f32.gmra.mxu3 %v174_v17 }
 0x15c   :  { %v717_v63 = vadd.f32 %v716_v46, %v553_v53  ;;  %v184_v46 = vld [vmem:[%s5388_s0 + $0x518] sm:$0xff] }
 0x15e   :  { %v877_v51 = vpop.f32.mrf.mxu2  ;;  %v1041_v34 = vpop.f32.mrf.mxu3 }
 0x15f   :  { %v878_v59 = vadd.f32 %v877_v51, %v714_v15  ;;  %v4098_v9 = vpop.f32.mrf.mxu0  ;;  %v722_v15 = vpop.f32.mrf.mxu1 }
 0x161   :  { %v4112_v5 = vadd.f32 %v1041_v34, %v878_v59  ;;  %v197_v34 = vld [vmem:[%s5388_s0 + $0x580] sm:$0xff] }
 0x162   :  { %772 = vmatmul.f32.gmra.mxu1 %v192_v26  ;;  %2817 = vmatmul.msk.f32.gmra.mxu0 %vm342_vm0, %v100_v55  ;;  %v105_v59 = vld [vmem:[%s5388_s0 + $0x2a0] sm:$0xff]  ;;  %v556_v55 = vadd.f32 %v3798_v29, %v3935_v36  ;;  %v188_v36 = vld [vmem:[%s5388_s0 + $0x538] sm:$0xff] }
 0x163   :  { %927 = vmatmul.f32.gmra.mxu2 %v178_v37  ;;  %1091 = vmatmul.f32.gmra.mxu3 %v179_v45 }
 0x164   :  { %v720_v37 = vadd.f32 %v719_v44, %v556_v55  ;;  %v189_v44 = vld [vmem:[%s5388_s0 + $0x540] sm:$0xff] }
 0x166   :  { %v880_v17 = vpop.f32.mrf.mxu2  ;;  %v1044_v0 = vpop.f32.mrf.mxu3 }
 0x167   :  { %v881_v51 = vadd.f32 %v880_v17, %v717_v63  ;;  %v4117_v28 = vpop.f32.mrf.mxu0 }
 0x169   :  { %v4131_v26 = vadd.f32 %v1044_v0, %v881_v51  ;;  %v110_v0 = vld [vmem:[%s5388_s0 + $0x2c8] sm:$0xff]  ;;  %v725_v51 = vpop.f32.mrf.mxu1 }
 0x16a   :  { %775 = vmatmul.f32.gmra.mxu1 %v197_v34  ;;  %2818 = vmatmul.msk.f32.gmra.mxu0 %vm342_vm0, %v105_v59  ;;  %v559_v59 = vadd.f32 %v3798_v29, %v3957_v6  ;;  %v193_v6 = vld [vmem:[%s5388_s0 + $0x560] sm:$0xff] }
 0x16b   :  { %930 = vmatmul.f32.gmra.mxu2 %v183_v60  ;;  %1094 = vmatmul.f32.gmra.mxu3 %v184_v46 }
 0x16c   :  { %v723_v60 = vadd.f32 %v722_v15, %v559_v59  ;;  %v194_v15 = vld [vmem:[%s5388_s0 + $0x568] sm:$0xff] }
 0x16e   :  { %v883_v45 = vpop.f32.mrf.mxu2  ;;  %v1047_v53 = vpop.f32.mrf.mxu3 }
 0x16f   :  { %v884_v63 = vadd.f32 %v883_v45, %v720_v37  ;;  %v4136_v17 = vpop.f32.mrf.mxu0 }
 0x170   :  { %v1167_v38 = vadd.f32 %v4136_v17, %v3850_v25  ;;  %v253_v17 = vld [vmem:[%s5388_s0 + $0x740] sm:$0xff] }
 0x171   :  { %v4150_v34 = vadd.f32 %v1047_v53, %v884_v63  ;;  %v562_v63 = vadd.f32 %v3798_v29, %v3983_v23  ;;  %v198_v23 = vld [vmem:[%s5388_s0 + $0x588] sm:$0xff] }
 0x172   :  { %778 = vmatmul.f32.gmra.mxu1 %v202_v12  ;;  %2819 = vmatmul.msk.f32.gmra.mxu0 %vm342_vm0, %v110_v0  ;;  %v115_v12 = vld [vmem:[%s5388_s0 + $0x2f0] sm:$0xff]  ;;  %v728_v0 = vpop.f32.mrf.mxu1 }
 0x173   :  { %933 = vmatmul.f32.gmra.mxu2 %v188_v36  ;;  %1097 = vmatmul.f32.gmra.mxu3 %v189_v44  ;;  %v726_v36 = vadd.f32 %v725_v51, %v562_v63  ;;  %v199_v51 = vld [vmem:[%s5388_s0 + $0x590] sm:$0xff] }
 0x176   :  { %v886_v46 = vpop.f32.mrf.mxu2  ;;  %v1050_v55 = vpop.f32.mrf.mxu3 }
 0x177   :  { %v887_v37 = vadd.f32 %v886_v46, %v723_v60  ;;  %v4155_v45 = vpop.f32.mrf.mxu0 }
 0x179   :  { %v4169_v53 = vadd.f32 %v1050_v55, %v887_v37  ;;  %v212_v55 = vld [vmem:[%s5388_s0 + $0x5f8] sm:$0xff] }
 0x17a   :  { %781 = vmatmul.f32.gmra.mxu1 %v207_v2  ;;  %2820 = vmatmul.msk.f32.gmra.mxu0 %vm342_vm0, %v115_v12  ;;  %v120_v2 = vld [vmem:[%s5388_s0 + $0x318] sm:$0xff]  ;;  %v565_v12 = vadd.f32 %v3798_v29, %v4003_v20  ;;  %v203_v20 = vld [vmem:[%s5388_s0 + $0x5b0] sm:$0xff] }
 0x17b   :  { %936 = vmatmul.f32.gmra.mxu2 %v193_v6  ;;  %1100 = vmatmul.f32.gmra.mxu3 %v194_v15  ;;  %v731_v15 = vpop.f32.mrf.mxu1 }
 0x17c   :  { %v729_v6 = vadd.f32 %v728_v0, %v565_v12  ;;  %v204_v0 = vld [vmem:[%s5388_s0 + $0x5b8] sm:$0xff]  ;;  %v568_v12 = vadd.f32 %v3798_v29, %v4022_v42 }
 0x17e   :  { %v889_v44 = vpop.f32.mrf.mxu2  ;;  %v1053_v59 = vpop.f32.mrf.mxu3 }
 0x17f   :  { %v890_v60 = vadd.f32 %v889_v44, %v726_v36  ;;  %v4174_v46 = vpop.f32.mrf.mxu0 }
 0x181   :  { %v4188_v37 = vadd.f32 %v1053_v59, %v890_v60  ;;  %v217_v59 = vld [vmem:[%s5388_s0 + $0x620] sm:$0xff] }
 0x182   :  { %784 = vmatmul.f32.gmra.mxu1 %v212_v55  ;;  %2821 = vmatmul.msk.f32.gmra.mxu0 %vm342_vm0, %v120_v2  ;;  %v125_v60 = vld [vmem:[%s5388_s0 + $0x340] sm:$0xff]  ;;  %v1360_v2 = vld [vmem:[%s5391_s3 + $0x8] sm:$0xff] }
 0x183   :  { %939 = vmatmul.f32.gmra.mxu2 %v198_v23  ;;  %1103 = vmatmul.f32.gmra.mxu3 %v199_v51  ;;  %v2852_v23 = vld [vmem:[%s5391_s3 + $0x28] sm:$0xff]  ;;  %v4229_v42 = vpop.f32.mrf.mxu1 }
 0x184   :  { %v2858_v51 = vld [vmem:[%s5391_s3 + $0x48] sm:$0xff]  ;;  %1409 = vmatpush.msra.mxu2 %v1360_v2  ;;  %1386 = vmatpush.msra.mxu1 %v2852_v23 }
 0x185   :  { %1437 = vmatpush.msra.mxu3 %v2858_v51 }
 0x186   :  { %v892_v63 = vpop.f32.mrf.mxu2  ;;  %v1056_v36 = vpop.f32.mrf.mxu3 }
 0x187   :  { %v893_v44 = vadd.f32 %v892_v63, %v729_v6  ;;  %v4193_v58 = vpop.f32.mrf.mxu0  ;;  %v732_v6 = vadd.f32 %v731_v15, %v568_v12  ;;  %v208_v15 = vld [vmem:[%s5388_s0 + $0x5d8] sm:$0xff]  ;;  %v227_v12 = vld [vmem:[%s5388_s0 + $0x670] sm:$0xff]  ;;  %1438 = vmatpush.msra.mxu3 %v2857_v1  ;;  %v1311_v1 = vmax.f32 %v1167_v38, 0.0  ;;  %v2867_v38 = vld [vmem:[%s5391_s3 + $0x80] sm:$0xff] }
 0x189   :  { %v4207_v55 = vadd.f32 %v1056_v36, %v893_v44  ;;  %1522 = vmatpush.msrb.mxu3 %v2875_v49  ;;  %v2868_v49 = vld [vmem:[%s5391_s3 + $0x88] sm:$0xff] }
 0x18a   :  { %787 = vmatmul.f32.gmra.mxu1 %v217_v59  ;;  %2822 = vmatmul.msk.f32.gmra.mxu0 %vm342_vm0, %v125_v60  ;;  %v222_v60 = vld [vmem:[%s5388_s0 + $0x648] sm:$0xff] }
 0x18b   :  { %942 = vmatmul.f32.gmra.mxu2 %v203_v20  ;;  %1106 = vmatmul.f32.gmra.mxu3 %v204_v0  ;;  %v209_v20 = vld [vmem:[%s5388_s0 + $0x5e0] sm:$0xff] }
 0x18e   :  { %v895_v63 = vpop.f32.mrf.mxu2  ;;  %v1059_v36 = vpop.f32.mrf.mxu3 }
 0x18f   :  { %v896_v44 = vadd.f32 %v895_v63, %v732_v6  ;;  %v4221_v59 = vpop.f32.mrf.mxu0  ;;  %v135_v6 = vld [vmem:[%s5388_s0 + $0x390] sm:$0xff]  ;;  %v214_v63 = vld [vmem:[%s5388_s0 + $0x608] sm:$0xff] }
 0x191   :  { %v4237_v0 = vadd.f32 %v1059_v36, %v896_v44  ;;  %v737_v36 = vpop.f32.mrf.mxu1  ;;  %v574_v44 = vadd.f32 %v3798_v29, %v4060_v10  ;;  %v218_v29 = vld [vmem:[%s5388_s0 + $0x628] sm:$0xff]  ;;  %v219_v10 = vld [vmem:[%s5388_s0 + $0x630] sm:$0xff] }
 0x192   :  { %790 = vmatmul.f32.gmra.mxu1 %v222_v60  ;;  %2823 = vmatmul.msk.f32.gmra.mxu0 %vm342_vm0, %v130_v50  ;;  %v213_v50 = vld [vmem:[%s5388_s0 + $0x600] sm:$0xff] }
 0x193   :  { %945 = vmatmul.f32.gmra.mxu2 %v208_v15  ;;  %1109 = vmatmul.f32.gmra.mxu3 %v209_v20  ;;  %v738_v60 = vadd.f32 %v737_v36, %v574_v44  ;;  %v145_v36 = vld [vmem:[%s5388_s0 + $0x3e0] sm:$0xff] }
 0x196   :  { %v4240_v2 = vpop.f32.mrf.mxu2  ;;  %v4242_v23 = vpop.f32.mrf.mxu3 }
 0x197   :  { %v4244_v51 = vpop.f32.mrf.mxu0 }
 0x19a   :  { %793 = vmatmul.f32.gmra.mxu1 %v227_v12  ;;  %2824 = vmatmul.msk.f32.gmra.mxu0 %vm342_vm0, %v135_v6  ;;  %v140_v12 = vld [vmem:[%s5388_s0 + $0x3b8] sm:$0xff] }
 0x19b   :  { %948 = vmatmul.f32.gmra.mxu2 %v213_v50  ;;  %1112 = vmatmul.f32.gmra.mxu3 %v214_v63  ;;  %v237_v63 = vld [vmem:[%s5388_s0 + $0x6c0] sm:$0xff] }
 0x19e   :  { %v901_v15 = vpop.f32.mrf.mxu2  ;;  %v1065_v22 = vpop.f32.mrf.mxu3 }
 0x19f   :  { %v902_v20 = vadd.f32 %v901_v15, %v738_v60  ;;  %v4261_v39 = vpop.f32.mrf.mxu0  ;;  %v242_v60 = vld [vmem:[%s5388_s0 + $0x6e8] sm:$0xff] }
 0x1a0   :  { %v150_v15 = vld [vmem:[%s5388_s0 + $0x408] sm:$0xff] }
 0x1a1   :  { %v4275_v6 = vadd.f32 %v1065_v22, %v902_v20  ;;  %v223_v22 = vld [vmem:[%s5388_s0 + $0x650] sm:$0xff]  ;;  %v228_v20 = vld [vmem:[%s5388_s0 + $0x678] sm:$0xff] }
 0x1a2   :  { %796 = vmatmul.f32.gmra.mxu1 %v232_v31  ;;  %2825 = vmatmul.msk.f32.gmra.mxu0 %vm342_vm0, %v140_v12  ;;  %v224_v31 = vld [vmem:[%s5388_s0 + $0x658] sm:$0xff]  ;;  %v229_v12 = vld [vmem:[%s5388_s0 + $0x680] sm:$0xff] }
 0x1a3   :  { %951 = vmatmul.f32.gmra.mxu2 %v218_v29  ;;  %1115 = vmatmul.f32.gmra.mxu3 %v219_v10  ;;  %v247_v10 = vld [vmem:[%s5388_s0 + $0x710] sm:$0xff] }
 0x1a6   :  { %v4383_v11 = vpop.f32.mrf.mxu2 }
 0x1a7   :  { %v4278_v50 = vpop.f32.mrf.mxu0 }
 0x1aa   :  { %799 = vmatmul.f32.gmra.mxu1 %v237_v63  ;;  %2826 = vmatmul.msk.f32.gmra.mxu0 %vm342_vm0, %v145_v36  ;;  %v155_v63 = vld [vmem:[%s5388_s0 + $0x430] sm:$0xff]  ;;  %v233_v36 = vld [vmem:[%s5388_s0 + $0x6a0] sm:$0xff] }
 0x1ab   :  { %954 = vmatmul.f32.gmra.mxu2 %v223_v22  ;;  %1118 = vmatmul.f32.gmra.mxu3 %v224_v31  ;;  %v234_v22 = vld [vmem:[%s5388_s0 + $0x6a8] sm:$0xff]  ;;  %v2851_v31 = vld [vmem:[%s5391_s3 + $0x20] sm:$0xff] }
 0x1ac   :  { %1387 = vmatpush.msra.mxu1 %v2851_v31  ;;  %v239_v31 = vld [vmem:[%s5388_s0 + $0x6d0] sm:$0xff] }
 0x1af   :  { %v4293_v44 = vpop.f32.mrf.mxu0 }
 0x1b2   :  { %802 = vmatmul.f32.gmra.mxu1 %v242_v60  ;;  %2827 = vmatmul.msk.f32.gmra.mxu0 %vm342_vm0, %v150_v15  ;;  %v4325_v60 = vpop.f32.mrf.mxu1  ;;  %v2865_v15 = vld [vmem:[%s5391_s3 + $0x78] sm:$0xff] }
 0x1b3   :  { %957 = vmatmul.f32.gmra.mxu2 %v228_v20  ;;  %1121 = vmatmul.f32.gmra.mxu3 %v229_v12  ;;  %v2864_v20 = vld [vmem:[%s5391_s3 + $0x70] sm:$0xff] }
 0x1b4   :  { %1464 = vmatpush.msrb.mxu1 %v2865_v15  ;;  %v2862_v15 = vld [vmem:[%s5391_s3 + $0x60] sm:$0xff] }
 0x1b6   :  { %1465 = vmatpush.msrb.mxu1 %v2864_v20 }
 0x1b7   :  { %v4308_v29 = vpop.f32.mrf.mxu0 }
 0x1ba   :  { %805 = vmatmul.f32.gmra.mxu1 %v247_v10  ;;  %2828 = vmatmul.msk.f32.gmra.mxu0 %vm342_vm0, %v155_v63  ;;  %v160_v10 = vld [vmem:[%s5388_s0 + $0x458] sm:$0xff]  ;;  %v2863_v63 = vld [vmem:[%s5391_s3 + $0x68] sm:$0xff] }
 0x1bb   :  { %960 = vmatmul.f32.gmra.mxu2 %v233_v36  ;;  %1124 = vmatmul.f32.gmra.mxu3 %v234_v22  ;;  %v238_v22 = vld [vmem:[%s5388_s0 + $0x6c8] sm:$0xff] }
 0x1bc   :  { %1466 = vmatpush.msrb.mxu1 %v2863_v63  ;;  %v165_v63 = vld [vmem:[%s5388_s0 + $0x480] sm:$0xff] }
 0x1be   :  { %1467 = vmatpush.msrb.mxu1 %v2862_v15  ;;  %v262_v15 = vld [vmem:[%s5388_s0 + $0x788] sm:$0xff] }
 0x1bf   :  { %v1196_v12 = vpop.f32.mrf.mxu0 }
 0x1c0   :  { %v4344_v36 = vadd.f32 %v1196_v12, %v4055_v18  ;;  %v4356_v18 = vpop.f32.mrf.mxu1  ;;  %v257_v12 = vld [vmem:[%s5388_s0 + $0x760] sm:$0xff] }
 0x1c2   :  { %808 = vmatmul.f32.gmra.mxu1 %v252_v14  ;;  %2829 = vmatmul.msk.f32.gmra.mxu0 %vm342_vm0, %v160_v10  ;;  %v243_v14 = vld [vmem:[%s5388_s0 + $0x6f0] sm:$0xff]  ;;  %v244_v10 = vld [vmem:[%s5388_s0 + $0x6f8] sm:$0xff] }
 0x1c3   :  { %963 = vmatmul.f32.gmra.mxu2 %v238_v22  ;;  %1127 = vmatmul.f32.gmra.mxu3 %v239_v31 }
 0x1c7   :  { %v4358_v20 = vpop.f32.mrf.mxu0 }
 0x1c8   :  { %v4373_v22 = vpop.f32.mrf.mxu1 }
 0x1ca   :  { %811 = vmatmul.f32.gmra.mxu1 %v257_v12  ;;  %2830 = vmatmul.msk.f32.gmra.mxu0 %vm342_vm0, %v165_v63  ;;  %v248_v12 = vld [vmem:[%s5388_s0 + $0x718] sm:$0xff]  ;;  %v249_v63 = vld [vmem:[%s5388_s0 + $0x720] sm:$0xff] }
 0x1cb   :  { %966 = vmatmul.f32.gmra.mxu2 %v243_v14  ;;  %1130 = vmatmul.f32.gmra.mxu3 %v244_v10  ;;  %v4391_v14 = vpop.f32.mrf.mxu3  ;;  %v1359_v10 = vld [vmem:[%s5391_s3] sm:$0xff] }
 0x1cc   :  { %1410 = vmatpush.msra.mxu2 %v1359_v10  ;;  %v254_v10 = vld [vmem:[%s5388_s0 + $0x748] sm:$0xff] }
 0x1ce   :  { %1493 = vmatpush.msrb.mxu2 %v2870_v57  ;;  %v2873_v57 = vld [vmem:[%s5391_s3 + $0xa8] sm:$0xff] }
 0x1cf   :  { %v4375_v31 = vpop.f32.mrf.mxu0 }
 0x1d0   :  { %v4425_v25 = vpop.f32.mrf.mxu1 }
 0x1d2   :  { %814 = vmatmul.f32.gmra.mxu1 %v262_v15  ;;  %2831 = vmatmul.msk.f32.gmra.mxu0 %vm342_vm0, %v170_v27  ;;  %v2869_v27 = vld [vmem:[%s5391_s3 + $0x90] sm:$0xff] }
 0x1d3   :  { %969 = vmatmul.f32.gmra.mxu2 %v248_v12  ;;  %1133 = vmatmul.f32.gmra.mxu3 %v249_v63  ;;  %v2874_v15 = vld [vmem:[%s5391_s3 + $0xb0] sm:$0xff]  ;;  %v4446_v21 = vpop.f32.mrf.mxu3 }
 0x1d4   :  { %v175_v63 = vld [vmem:[%s5388_s0 + $0x4d0] sm:$0xff]  ;;  %1494 = vmatpush.msrb.mxu2 %v2869_v27  ;;  %1523 = vmatpush.msrb.mxu3 %v2874_v15  ;;  %v2880_v27 = vld [vmem:[%s5391_s3 + $0xd8] sm:$0xff]  ;;  %v4439_v15 = vpop.f32.mrf.mxu2 }
 0x1d6   :  { %1495 = vmatpush.msrb.mxu2 %v2868_v49  ;;  %1524 = vmatpush.msrb.mxu3 %v2873_v57  ;;  %v2879_v49 = vld [vmem:[%s5391_s3 + $0xd0] sm:$0xff]  ;;  %v1173_v57 = vadd.f32 %v4174_v46, %v3888_v19 }
 0x1d7   :  { %v4414_v12 = vpop.f32.mrf.mxu0  ;;  %v259_v19 = vld [vmem:[%s5388_s0 + $0x770] sm:$0xff] }
 0x1d8   :  { %1496 = vmatpush.msrb.mxu2 %v2867_v38  ;;  %1525 = vmatpush.msrb.mxu3 %v2872_v30  ;;  %v2877_v30 = vld [vmem:[%s5391_s3 + $0xc0] sm:$0xff]  ;;  %v4470_v46 = vpop.f32.mrf.mxu1  ;;  %v1182_v38 = vadd.f32 %v4244_v51, %v3949_v40  ;;  %v263_v51 = vld [vmem:[%s5388_s0 + $0x790] sm:$0xff] }
 0x1da   :  { %2832 = vmatmul.msk.f32.gmra.mxu0 %vm342_vm0, %v175_v63  ;;  %2855 = vmatmul.msk.f32.vlgmr.msra.gmra.mxu1 %vm1368_vm1, %v1311_v1  ;;  %v2878_v63 = vld [vmem:[%s5391_s3 + $0xc8] sm:$0xff]  ;;  %v1316_v40 = vmax.f32 %v1182_v38, 0.0 }
 0x1db   :  { %972 = vmatmul.f32.gmra.mxu2 %v253_v17  ;;  %1136 = vmatmul.f32.gmra.mxu3 %v254_v10  ;;  %v180_v17 = vld [vmem:[%s5388_s0 + $0x4f8] sm:$0xff]  ;;  %v1313_v10 = vmax.f32 %v1173_v57, 0.0  ;;  %v2894_v57 = vld [vmem:[%s5391_s3 + $0x130] sm:$0xff] }
 0x1dc   :  { %1551 = vmatpush.msra.mxu1 %v2880_v27  ;;  %v2895_v27 = vld [vmem:[%s5391_s3 + $0x138] sm:$0xff] }
 0x1de   :  { %1552 = vmatpush.msra.mxu1 %v2879_v49  ;;  %v4479_v49 = vpop.f32.mrf.mxu2 }
 0x1df   :  { %v4456_v1 = vpop.f32.mrf.mxu0 }
 0x1e0   :  { %1553 = vmatpush.msra.mxu1 %v2878_v63  ;;  %v4484_v63 = vpop.f32.mrf.mxu3  ;;  %v4508_v38 = vpop.f32.mrf.mxu1 }
 0x1e2   :  { %2833 = vmatmul.msk.f32.gmra.mxu0 %vm342_vm0, %v180_v17  ;;  %2866 = vmatmul.msk.f32.vlgmr.msrb.gmra.mxu1 %vm1368_vm1, %v1313_v10  ;;  %v2893_v17 = vld [vmem:[%s5391_s3 + $0x128] sm:$0xff] }
 0x1e3   :  { %975 = vmatmul.f32.gmra.mxu2 %v258_v13  ;;  %1139 = vmatmul.f32.gmra.mxu3 %v259_v19  ;;  %v185_v13 = vld [vmem:[%s5388_s0 + $0x520] sm:$0xff]  ;;  %v264_v19 = vld [vmem:[%s5388_s0 + $0x798] sm:$0xff] }
 0x1e4   :  { %1554 = vmatpush.msra.mxu1 %v2877_v30  ;;  %v2892_v30 = vld [vmem:[%s5391_s3 + $0x120] sm:$0xff] }
 0x1e6   :  { %1638 = vmatpush.msrb.mxu1 %v2895_v27  ;;  %v2910_v27 = vld [vmem:[%s5391_s3 + $0x198] sm:$0xff]  ;;  %v4519_v52 = vpop.f32.mrf.mxu2 }
 0x1e7   :  { %v4489_v10 = vpop.f32.mrf.mxu0 }
 0x1e8   :  { %1639 = vmatpush.msrb.mxu1 %v2894_v57  ;;  %v1191_v57 = vadd.f32 %v4293_v44, %v4017_v43  ;;  %v190_v44 = vld [vmem:[%s5388_s0 + $0x548] sm:$0xff] }
 0x1ea   :  { %1640 = vmatpush.msrb.mxu1 %v2893_v17  ;;  %2834 = vmatmul.msk.f32.gmra.mxu0 %vm342_vm0, %v185_v13  ;;  %v2909_v17 = vld [vmem:[%s5391_s3 + $0x190] sm:$0xff]  ;;  %v1164_v13 = vadd.f32 %v4117_v28, %v3831_v61  ;;  %v1319_v28 = vmax.f32 %v1191_v57, 0.0  ;;  %v2925_v57 = vld [vmem:[%s5391_s3 + $0x1f8] sm:$0xff] }
 0x1eb   :  { %2881 = vmatmul.msk.f32.vlgmr.msra.gmra.mxu1 %vm1368_vm1, %v1316_v40  ;;  %978 = vmatmul.f32.gmra.mxu2 %v263_v51  ;;  %v1170_v40 = vadd.f32 %v4155_v45, %v3869_v48  ;;  %v2908_v51 = vld [vmem:[%s5391_s3 + $0x188] sm:$0xff]  ;;  %v2907_v48 = vld [vmem:[%s5391_s3 + $0x180] sm:$0xff]  ;;  %v2885_v45 = vld [vmem:[%s5391_s3 + $0xf8] sm:$0xff] }
 0x1ec   :  { %1142 = vmatmul.f32.gmra.mxu3 %v264_v19  ;;  %1641 = vmatpush.msrb.mxu1 %v2892_v30  ;;  %v4524_v19 = vpop.f32.mrf.mxu3  ;;  %v1310_v61 = vmax.f32 %v1164_v13, 0.0  ;;  %v1200_v13 = vadd.f32 %v4358_v20, %v4074_v4  ;;  %v2883_v4 = vld [vmem:[%s5391_s3 + $0xe8] sm:$0xff]  ;;  %v4565_v20 = vpop.f32.mrf.mxu1 }
 0x1ed   :  { %v1312_v30 = vmax.f32 %v1170_v40, 0.0  ;;  %v2889_v40 = vld [vmem:[%s5391_s3 + $0x110] sm:$0xff] }
 0x1ee   :  { %1725 = vmatpush.msra.mxu1 %v2910_v27  ;;  %v2890_v27 = vld [vmem:[%s5391_s3 + $0x118] sm:$0xff] }
 0x1ef   :  { %v4526_v43 = vpop.f32.mrf.mxu0 }
 0x1f0   :  { %1726 = vmatpush.msra.mxu1 %v2909_v17  ;;  %v2884_v17 = vld [vmem:[%s5391_s3 + $0xf0] sm:$0xff] }
 0x1f2   :  { %1727 = vmatpush.msra.mxu1 %v2908_v51  ;;  %2835 = vmatmul.msk.f32.gmra.mxu0 %vm342_vm0, %v190_v44  ;;  %v2924_v51 = vld [vmem:[%s5391_s3 + $0x1f0] sm:$0xff]  ;;  %v1176_v44 = vadd.f32 %v4193_v58, %v3909_v47  ;;  %v2923_v58 = vld [vmem:[%s5391_s3 + $0x1e8] sm:$0xff] }
 0x1f3   :  { %2896 = vmatmul.msk.f32.vlgmr.msrb.gmra.mxu1 %vm1368_vm1, %v1319_v28  ;;  %2856 = vmatmul.msk.f32.vlgmr.msra.gmra.mxu2 %vm1368_vm1, %v1310_v61  ;;  %v1179_v28 = vadd.f32 %v4221_v59, %v3930_v32  ;;  %v2888_v61 = vld [vmem:[%s5391_s3 + $0x108] sm:$0xff]  ;;  %v195_v32 = vld [vmem:[%s5388_s0 + $0x570] sm:$0xff]  ;;  %v4576_v59 = vpop.f32.mrf.mxu2 }
 0x1f4   :  { %2861 = vmatmul.msk.f32.vlgmr.msra.gmra.mxu3 %vm1368_vm1, %v1312_v30  ;;  %1728 = vmatpush.msra.mxu1 %v2907_v48  ;;  %v1322_v30 = vmax.f32 %v1200_v13, 0.0  ;;  %v1314_v48 = vmax.f32 %v1176_v44, 0.0  ;;  %v2922_v13 = vld [vmem:[%s5391_s3 + $0x1e0] sm:$0xff]  ;;  %v2940_v44 = vld [vmem:[%s5391_s3 + $0x258] sm:$0xff] }
 0x1f5   :  { %1580 = vmatpush.msra.mxu2 %v2885_v45  ;;  %1609 = vmatpush.msra.mxu3 %v2890_v27  ;;  %v1315_v45 = vmax.f32 %v1179_v28, 0.0  ;;  %v4578_v27 = vpop.f32.mrf.mxu3  ;;  %v1209_v28 = vadd.f32 %v4456_v1, %v4131_v26  ;;  %v2939_v26 = vld [vmem:[%s5391_s3 + $0x250] sm:$0xff]  ;;  %v2898_v1 = vld [vmem:[%s5391_s3 + $0x148] sm:$0xff] }
 0x1f6   :  { %1812 = vmatpush.msrb.mxu1 %v2925_v57  ;;  %v2882_v57 = vld [vmem:[%s5391_s3 + $0xe0] sm:$0xff] }
 0x1f7   :  { %1581 = vmatpush.msra.mxu2 %v2884_v17  ;;  %v1217_v47 = vpop.f32.mrf.mxu0  ;;  %1610 = vmatpush.msra.mxu3 %v2889_v40  ;;  %v2887_v17 = vld [vmem:[%s5391_s3 + $0x100] sm:$0xff]  ;;  %v2900_v40 = vld [vmem:[%s5391_s3 + $0x158] sm:$0xff] }
 0x1f8   :  { %1813 = vmatpush.msrb.mxu1 %v2924_v51  ;;  %v2905_v51 = vld [vmem:[%s5391_s3 + $0x178] sm:$0xff] }
 0x1f9   :  { %1582 = vmatpush.msra.mxu2 %v2883_v4  ;;  %1611 = vmatpush.msra.mxu3 %v2888_v61  ;;  %v2899_v4 = vld [vmem:[%s5391_s3 + $0x150] sm:$0xff]  ;;  %v1185_v61 = vadd.f32 %v4261_v39, %v3971_v35  ;;  %v200_v35 = vld [vmem:[%s5388_s0 + $0x598] sm:$0xff] }
 0x1fa   :  { %1814 = vmatpush.msrb.mxu1 %v2923_v58  ;;  %2836 = vmatmul.msk.f32.gmra.mxu0 %vm342_vm0, %v195_v32  ;;  %v1188_v58 = vadd.f32 %v4278_v50, %v3997_v56  ;;  %v2904_v32 = vld [vmem:[%s5391_s3 + $0x170] sm:$0xff]  ;;  %v4625_v56 = vpop.f32.mrf.mxu1  ;;  %v1325_v50 = vmax.f32 %v1209_v28, 0.0  ;;  %v1218_v28 = vadd.f32 %v1217_v47, %v4188_v37  ;;  %v4665_v37 = vld [vmem:[%s5390_s2] ss:$0 sm:$0xff] }
 0x1fb   :  { %2911 = vmatmul.msk.f32.vlgmr.msra.gmra.mxu1 %vm1368_vm1, %v1322_v30  ;;  %2871 = vmatmul.msk.f32.vlgmr.msrb.gmra.mxu2 %vm1368_vm1, %v1314_v48  ;;  %v1317_v30 = vmax.f32 %v1185_v61, 0.0  ;;  %v2920_v61 = vld [vmem:[%s5391_s3 + $0x1d8] sm:$0xff]  ;;  %v571_v47 = vadd.f32 %v4665_v37, %v4041_v62 }
 0x1fc   :  { %2876 = vmatmul.msk.f32.vlgmr.msrb.gmra.mxu3 %vm1368_vm1, %v1315_v45  ;;  %1583 = vmatpush.msra.mxu2 %v2882_v57  ;;  %v1318_v48 = vmax.f32 %v1188_v58, 0.0  ;;  %v2903_v45 = vld [vmem:[%s5391_s3 + $0x168] sm:$0xff]  ;;  %v1194_v58 = vadd.f32 %v4308_v29, %v4036_v3  ;;  %v2919_v3 = vld [vmem:[%s5391_s3 + $0x1d0] sm:$0xff] }
 0x1fd   :  { %1612 = vmatpush.msra.mxu3 %v2887_v17  ;;  %1815 = vmatpush.msrb.mxu1 %v2922_v13  ;;  %v2938_v57 = vld [vmem:[%s5391_s3 + $0x248] sm:$0xff]  ;;  %v4633_v17 = vpop.f32.mrf.mxu2  ;;  %v2897_v13 = vld [vmem:[%s5391_s3 + $0x140] sm:$0xff]  ;;  %v735_v62 = vadd.f32 %v4229_v42, %v571_v47  ;;  %v2954_v42 = vld [vmem:[%s5391_s3 + $0x2b0] sm:$0xff] }
 0x1fe   :  { %1667 = vmatpush.msrb.mxu2 %v2900_v40  ;;  %v4640_v40 = vpop.f32.mrf.mxu3 }
 0x1ff   :  { %1696 = vmatpush.msrb.mxu3 %v2905_v51  ;;  %1899 = vmatpush.msra.mxu1 %v2940_v44  ;;  %v4620_v39 = vpop.f32.mrf.mxu0  ;;  %v2902_v51 = vld [vmem:[%s5391_s3 + $0x160] sm:$0xff] }
 0x200   :  { %1668 = vmatpush.msrb.mxu2 %v2899_v4  ;;  %v2937_v44 = vld [vmem:[%s5391_s3 + $0x240] sm:$0xff]  ;;  %v2915_v4 = vld [vmem:[%s5391_s3 + $0x1b8] sm:$0xff] }
 0x201   :  { %1697 = vmatpush.msrb.mxu3 %v2904_v32  ;;  %1900 = vmatpush.msra.mxu1 %v2939_v26  ;;  %v2955_v32 = vld [vmem:[%s5391_s3 + $0x2b8] sm:$0xff]  ;;  %v2914_v26 = vld [vmem:[%s5391_s3 + $0x1b0] sm:$0xff] }
 0x202   :  { %1669 = vmatpush.msrb.mxu2 %v2898_v1  ;;  %2837 = vmatmul.msk.f32.gmra.mxu0 %vm342_vm0, %v200_v35  ;;  %v205_v1 = vld [vmem:[%s5388_s0 + $0x5c0] sm:$0xff]  ;;  %v1328_v35 = vmax.f32 %v1218_v28, 0.0  ;;  %v2930_v28 = vld [vmem:[%s5391_s3 + $0x218] sm:$0xff] }
 0x203   :  { %2926 = vmatmul.msk.f32.vlgmr.msrb.gmra.mxu1 %vm1368_vm1, %v1325_v50  ;;  %2886 = vmatmul.msk.f32.vlgmr.msra.gmra.mxu2 %vm1368_vm1, %v1317_v30  ;;  %v1320_v50 = vmax.f32 %v1194_v58, 0.0  ;;  %v1321_v30 = vmax.f32 %v4344_v36, 0.0  ;;  %v2912_v36 = vld [vmem:[%s5391_s3 + $0x1a0] sm:$0xff]  ;;  %v1206_v58 = vadd.f32 %v4414_v12, %v4112_v5  ;;  %v210_v5 = vld [vmem:[%s5388_s0 + $0x5e8] sm:$0xff] }
 0x204   :  { %2891 = vmatmul.msk.f32.vlgmr.msra.gmra.mxu3 %vm1368_vm1, %v1318_v48  ;;  %1901 = vmatpush.msra.mxu1 %v2938_v57  ;;  %v2913_v48 = vld [vmem:[%s5391_s3 + $0x1a8] sm:$0xff]  ;;  %v899_v57 = vadd.f32 %v4240_v2, %v735_v62  ;;  %v2917_v2 = vld [vmem:[%s5391_s3 + $0x1c0] sm:$0xff] }
 0x205   :  { %1698 = vmatpush.msrb.mxu3 %v2903_v45  ;;  %1670 = vmatpush.msrb.mxu2 %v2897_v13  ;;  %v2918_v45 = vld [vmem:[%s5391_s3 + $0x1c8] sm:$0xff]  ;;  %v4689_v13 = vpop.f32.mrf.mxu1 }
 0x206   :  { %1902 = vmatpush.msra.mxu1 %v2937_v44  ;;  %v2953_v44 = vld [vmem:[%s5391_s3 + $0x2a8] sm:$0xff]  ;;  %v1063_v47 = vadd.f32 %v4242_v23, %v899_v57  ;;  %v2934_v23 = vld [vmem:[%s5391_s3 + $0x230] sm:$0xff]  ;;  %v2932_v57 = vld [vmem:[%s5391_s3 + $0x220] sm:$0xff] }
 0x207   :  { %1699 = vmatpush.msrb.mxu3 %v2902_v51  ;;  %v4675_v29 = vpop.f32.mrf.mxu0  ;;  %1754 = vmatpush.msra.mxu2 %v2915_v4  ;;  %v4704_v51 = vpop.f32.mrf.mxu2  ;;  %v1203_v4 = vadd.f32 %v4375_v31, %v4093_v54  ;;  %v2929_v54 = vld [vmem:[%s5391_s3 + $0x210] sm:$0xff]  ;;  %v2928_v62 = vld [vmem:[%s5391_s3 + $0x208] sm:$0xff] }
 0x208   :  { %1986 = vmatpush.msrb.mxu1 %v2955_v32  ;;  %v2935_v32 = vld [vmem:[%s5391_s3 + $0x238] sm:$0xff] }
 0x209   :  { %1783 = vmatpush.msra.mxu3 %v2920_v61  ;;  %1755 = vmatpush.msra.mxu2 %v2914_v26  ;;  %v4714_v61 = vpop.f32.mrf.mxu3  ;;  %v2952_v26 = vld [vmem:[%s5391_s3 + $0x2a0] sm:$0xff] }
 0x20a   :  { %2838 = vmatmul.msk.f32.gmra.mxu0 %vm342_vm0, %v205_v1  ;;  %1987 = vmatpush.msrb.mxu1 %v2954_v42  ;;  %v1324_v1 = vmax.f32 %v1206_v58, 0.0  ;;  %v2945_v42 = vld [vmem:[%s5391_s3 + $0x278] sm:$0xff]  ;;  %v2949_v58 = vld [vmem:[%s5391_s3 + $0x290] sm:$0xff] }
 0x20b   :  { %1784 = vmatpush.msra.mxu3 %v2919_v3  ;;  %2941 = vmatmul.msk.f32.vlgmr.msra.gmra.mxu1 %vm1368_vm1, %v1328_v35  ;;  %v1323_v3 = vmax.f32 %v1203_v4, 0.0 }
 0x20c   :  { %2901 = vmatmul.msk.f32.vlgmr.msrb.gmra.mxu2 %vm1368_vm1, %v1320_v50  ;;  %2906 = vmatmul.msk.f32.vlgmr.msrb.gmra.mxu3 %vm1368_vm1, %v1321_v30  ;;  %v2933_v50 = vld [vmem:[%s5391_s3 + $0x228] sm:$0xff]  ;;  %v2970_v30 = vld [vmem:[%s5391_s3 + $0x318] sm:$0xff] }
 0x20d   :  { %1756 = vmatpush.msra.mxu2 %v2913_v48  ;;  %1785 = vmatpush.msra.mxu3 %v2918_v45  ;;  %v2927_v48 = vld [vmem:[%s5391_s3 + $0x200] sm:$0xff]  ;;  %v4749_v45 = vpop.f32.mrf.mxu1 }
 0x20e   :  { %1988 = vmatpush.msrb.mxu1 %v2953_v44  ;;  %v2950_v44 = vld [vmem:[%s5391_s3 + $0x298] sm:$0xff] }
 0x20f   :  { %1757 = vmatpush.msra.mxu2 %v2912_v36  ;;  %1786 = vmatpush.msra.mxu3 %v2917_v2  ;;  %v1226_v31 = vpop.f32.mrf.mxu0  ;;  %v1212_v36 = vadd.f32 %v4489_v10, %v4150_v34  ;;  %v1215_v2 = vadd.f32 %v4526_v43, %v4169_v53  ;;  %v4768_v4 = vpop.f32.mrf.mxu2  ;;  %v2944_v34 = vld [vmem:[%s5391_s3 + $0x270] sm:$0xff] }
 0x210   :  { %v1227_v12 = vadd.f32 %v1226_v31, %v1063_v47  ;;  %1989 = vmatpush.msrb.mxu1 %v2952_v26  ;;  %v215_v43 = vld [vmem:[%s5388_s0 + $0x610] sm:$0xff]  ;;  %v2943_v26 = vld [vmem:[%s5391_s3 + $0x268] sm:$0xff] }
 0x211   :  { %1841 = vmatpush.msrb.mxu2 %v2930_v28  ;;  %1870 = vmatpush.msrb.mxu3 %v2935_v32  ;;  %v2969_v28 = vld [vmem:[%s5391_s3 + $0x310] sm:$0xff]  ;;  %v4773_v10 = vpop.f32.mrf.mxu3  ;;  %v1326_v32 = vmax.f32 %v1212_v36, 0.0  ;;  %v1327_v47 = vmax.f32 %v1215_v2, 0.0  ;;  %v2968_v31 = vld [vmem:[%s5391_s3 + $0x308] sm:$0xff] }
 0x212   :  { %v1331_v35 = vmax.f32 %v1227_v12, 0.0  ;;  %2839 = vmatmul.msk.f32.gmra.mxu0 %vm342_vm0, %v210_v5  ;;  %2073 = vmatpush.msra.mxu1 %v2970_v30  ;;  %v577_v5 = vadd.f32 %v4665_v37, %v4079_v7  ;;  %v2947_v12 = vld [vmem:[%s5391_s3 + $0x280] sm:$0xff]  ;;  %v2965_v7 = vld [vmem:[%s5391_s3 + $0x2f8] sm:$0xff]  ;;  %v580_v30 = vadd.f32 %v4665_v37, %v4098_v9  ;;  %v2958_v2 = vld [vmem:[%s5391_s3 + $0x2c8] sm:$0xff] }
 0x213   :  { %1842 = vmatpush.msrb.mxu2 %v2929_v54  ;;  %1871 = vmatpush.msrb.mxu3 %v2934_v23  ;;  %v2948_v54 = vld [vmem:[%s5391_s3 + $0x288] sm:$0xff]  ;;  %v2942_v23 = vld [vmem:[%s5391_s3 + $0x260] sm:$0xff]  ;;  %v2985_v9 = vld [vmem:[%s5391_s3 + $0x378] sm:$0xff] }
 0x214   :  { %2916 = vmatmul.msk.f32.vlgmr.msra.gmra.mxu2 %vm1368_vm1, %v1323_v3  ;;  %2921 = vmatmul.msk.f32.vlgmr.msra.gmra.mxu3 %vm1368_vm1, %v1324_v1  ;;  %v2960_v3 = vld [vmem:[%s5391_s3 + $0x2d8] sm:$0xff]  ;;  %v741_v1 = vadd.f32 %v4325_v60, %v577_v5  ;;  %v2959_v60 = vld [vmem:[%s5391_s3 + $0x2d0] sm:$0xff] }
 0x215   :  { %2956 = vmatmul.msk.f32.vlgmr.msrb.gmra.mxu1 %vm1368_vm1, %v1331_v35  ;;  %1843 = vmatpush.msrb.mxu2 %v2928_v62  ;;  %v1221_v62 = vadd.f32 %v4620_v39, %v4207_v55  ;;  %v1224_v35 = vadd.f32 %v4675_v29, %v4237_v0  ;;  %v2964_v55 = vld [vmem:[%s5391_s3 + $0x2f0] sm:$0xff]  ;;  %v220_v29 = vld [vmem:[%s5388_s0 + $0x638] sm:$0xff] }
 0x216   :  { %1872 = vmatpush.msrb.mxu3 %v2933_v50  ;;  %2074 = vmatpush.msra.mxu1 %v2969_v28  ;;  %v2967_v50 = vld [vmem:[%s5391_s3 + $0x300] sm:$0xff]  ;;  %v905_v0 = vadd.f32 %v4383_v11, %v741_v1  ;;  %v2974_v5 = vld [vmem:[%s5391_s3 + $0x330] sm:$0xff]  ;;  %v2973_v1 = vld [vmem:[%s5391_s3 + $0x328] sm:$0xff] }
 0x217   :  { %1844 = vmatpush.msrb.mxu2 %v2927_v48  ;;  %v4775_v53 = vpop.f32.mrf.mxu0  ;;  %v744_v48 = vadd.f32 %v4356_v18, %v580_v30  ;;  %v1329_v36 = vmax.f32 %v1221_v62, 0.0  ;;  %v1330_v11 = vmax.f32 %v1224_v35, 0.0  ;;  %v2984_v18 = vld [vmem:[%s5391_s3 + $0x370] sm:$0xff] }
 0x218   :  { %1873 = vmatpush.msrb.mxu3 %v2932_v57  ;;  %2075 = vmatpush.msra.mxu1 %v2968_v31  ;;  %v4833_v57 = vpop.f32.mrf.mxu2 }
 0x219   :  { %1928 = vmatpush.msra.mxu2 %v2945_v42  ;;  %v4835_v42 = vpop.f32.mrf.mxu3  ;;  %v908_v28 = vadd.f32 %v4439_v15, %v744_v48  ;;  %v2962_v15 = vld [vmem:[%s5391_s3 + $0x2e0] sm:$0xff]  ;;  %v2989_v48 = vld [vmem:[%s5391_s3 + $0x390] sm:$0xff] }
 0x21a   :  { %1957 = vmatpush.msra.mxu3 %v2950_v44  ;;  %2840 = vmatmul.msk.f32.gmra.mxu0 %vm342_vm0, %v215_v43  ;;  %v2963_v44 = vld [vmem:[%s5391_s3 + $0x2e8] sm:$0xff]  ;;  %v2957_v43 = vld [vmem:[%s5391_s3 + $0x2c0] sm:$0xff] }
 0x21b   :  { %1929 = vmatpush.msra.mxu2 %v2944_v34  ;;  %2076 = vmatpush.msra.mxu1 %v2967_v50  ;;  %v1069_v34 = vadd.f32 %v4391_v14, %v905_v0  ;;  %v2980_v14 = vld [vmem:[%s5391_s3 + $0x358] sm:$0xff]  ;;  %v1072_v31 = vadd.f32 %v4446_v21, %v908_v28  ;;  %v2993_v28 = vld [vmem:[%s5391_s3 + $0x3a8] sm:$0xff] }
 0x21c   :  { %1958 = vmatpush.msra.mxu3 %v2949_v58  ;;  %2931 = vmatmul.msk.f32.vlgmr.msrb.gmra.mxu2 %vm1368_vm1, %v1326_v32  ;;  %v2975_v58 = vld [vmem:[%s5391_s3 + $0x338] sm:$0xff]  ;;  %v1230_v32 = vadd.f32 %v4775_v53, %v4275_v6  ;;  %v2979_v6 = vld [vmem:[%s5391_s3 + $0x350] sm:$0xff] }
 0x21d   :  { %2936 = vmatmul.msk.f32.vlgmr.msrb.gmra.mxu3 %vm1368_vm1, %v1327_v47  ;;  %1930 = vmatpush.msra.mxu2 %v2943_v26  ;;  %v2983_v26 = vld [vmem:[%s5391_s3 + $0x368] sm:$0xff]  ;;  %v2990_v0 = vld [vmem:[%s5391_s3 + $0x398] sm:$0xff] }
 0x21e   :  { %1959 = vmatpush.msra.mxu3 %v2948_v54  ;;  %2160 = vmatpush.msrb.mxu1 %v2985_v9  ;;  %v583_v54 = vadd.f32 %v4665_v37, %v3611_v8  ;;  %v2982_v8 = vld [vmem:[%s5391_s3 + $0x360] sm:$0xff] }
 0x21f   :  { %1931 = vmatpush.msra.mxu2 %v2942_v23  ;;  %v1232_v39 = vpop.f32.mrf.mxu0  ;;  %v225_v23 = vld [vmem:[%s5388_s0 + $0x660] sm:$0xff] }
 0x220   :  { %1960 = vmatpush.msra.mxu3 %v2947_v12  ;;  %v1233_v47 = vadd.f32 %v1232_v39, %v1069_v34  ;;  %2161 = vmatpush.msrb.mxu1 %v2984_v18  ;;  %v747_v21 = vadd.f32 %v4373_v22, %v583_v54  ;;  %v4888_v35 = vpop.f32.mrf.mxu2  ;;  %v2978_v22 = vld [vmem:[%s5391_s3 + $0x348] sm:$0xff]  ;;  %v2995_v39 = vld [vmem:[%s5391_s3 + $0x3b8] sm:$0xff] }
 0x221   :  { %2015 = vmatpush.msrb.mxu2 %v2960_v3  ;;  %v1332_v3 = vmax.f32 %v1230_v32, 0.0  ;;  %v4894_v30 = vpop.f32.mrf.mxu3 }
 0x222   :  { %2044 = vmatpush.msrb.mxu3 %v2965_v7  ;;  %2841 = vmatmul.msk.f32.gmra.mxu0 %vm342_vm0, %v220_v29  ;;  %v1333_v7 = vmax.f32 %v1233_v47, 0.0  ;;  %v911_v62 = vadd.f32 %v4479_v49, %v747_v21  ;;  %v2972_v49 = vld [vmem:[%s5391_s3 + $0x320] sm:$0xff]  ;;  %v586_v29 = vadd.f32 %v4665_v37, %v3631_v16  ;;  %v235_v47 = vld [vmem:[%s5388_s0 + $0x6b0] sm:$0xff]  ;;  %v240_v21 = vld [vmem:[%s5388_s0 + $0x6d8] sm:$0xff] }
 0x223   :  { %2016 = vmatpush.msrb.mxu2 %v2959_v60  ;;  %2162 = vmatpush.msrb.mxu1 %v2983_v26  ;;  %v4901_v60 = vpop.f32.mrf.mxu1  ;;  %v2999_v26 = vld [vmem:[%s5391_s3 + $0x3d0] sm:$0xff] }
 0x224   :  { %2045 = vmatpush.msrb.mxu3 %v2964_v55  ;;  %2946 = vmatmul.msk.f32.vlgmr.msra.gmra.mxu2 %vm1368_vm1, %v1329_v36  ;;  %v2977_v55 = vld [vmem:[%s5391_s3 + $0x340] sm:$0xff]  ;;  %v1075_v9 = vadd.f32 %v4484_v63, %v911_v62  ;;  %v750_v16 = vadd.f32 %v4425_v25, %v586_v29  ;;  %v2988_v63 = vld [vmem:[%s5391_s3 + $0x388] sm:$0xff] }
 0x225   :  { %2951 = vmatmul.msk.f32.vlgmr.msra.gmra.mxu3 %vm1368_vm1, %v1330_v11  ;;  %2017 = vmatpush.msrb.mxu2 %v2958_v2  ;;  %v230_v11 = vld [vmem:[%s5388_s0 + $0x688] sm:$0xff]  ;;  %v2994_v2 = vld [vmem:[%s5391_s3 + $0x3b0] sm:$0xff]  ;;  %v2987_v25 = vld [vmem:[%s5391_s3 + $0x380] sm:$0xff] }
 0x226   :  { %2046 = vmatpush.msrb.mxu3 %v2963_v44  ;;  %2163 = vmatpush.msrb.mxu1 %v2982_v8  ;;  %v914_v18 = vadd.f32 %v4519_v52, %v750_v16  ;;  %v3000_v52 = vld [vmem:[%s5391_s3 + $0x3d8] sm:$0xff]  ;;  %v3002_v62 = vld [vmem:[%s5391_s3 + $0x3e0] sm:$0xff] }
 0x227   :  { %2018 = vmatpush.msrb.mxu2 %v2957_v43  ;;  %v1235_v53 = vpop.f32.mrf.mxu0  ;;  %v2992_v43 = vld [vmem:[%s5391_s3 + $0x3a0] sm:$0xff] }
 0x228   :  { %2047 = vmatpush.msrb.mxu3 %v2962_v15  ;;  %v1236_v12 = vadd.f32 %v1235_v53, %v1072_v31  ;;  %v4940_v15 = vpop.f32.mrf.mxu2 }
 0x229   :  { %2102 = vmatpush.msra.mxu2 %v2975_v58  ;;  %v589_v58 = vadd.f32 %v4665_v37, %v3651_v24  ;;  %v2998_v24 = vld [vmem:[%s5391_s3 + $0x3c8] sm:$0xff]  ;;  %v4964_v53 = vpop.f32.mrf.mxu3 }
 0x22a   :  { %2131 = vmatpush.msra.mxu3 %v2980_v14  ;;  %v1334_v50 = vmax.f32 %v1236_v12, 0.0  ;;  %2842 = vmatmul.msk.f32.gmra.mxu0 %vm342_vm0, %v225_v23  ;;  %v1078_v14 = vadd.f32 %v4524_v19, %v914_v18  ;;  %v3004_v12 = vld [vmem:[%s5391_s3 + $0x3f0] sm:$0xff]  ;;  %v250_v18 = vld [vmem:[%s5388_s0 + $0x728] sm:$0xff] }
 0x22b   :  { %2103 = vmatpush.msra.mxu2 %v2974_v5  ;;  %v753_v54 = vadd.f32 %v4470_v46, %v589_v58  ;;  %v3005_v46 = vld [vmem:[%s5391_s3 + $0x3f8] sm:$0xff] }
 0x22c   :  { %2132 = vmatpush.msra.mxu3 %v2979_v6  ;;  %2961 = vmatmul.msk.f32.vlgmr.msrb.gmra.mxu2 %vm1368_vm1, %v1332_v3  ;;  %v2997_v6 = vld [vmem:[%s5391_s3 + $0x3c0] sm:$0xff] }
 0x22d   :  { %2966 = vmatmul.msk.f32.vlgmr.msrb.gmra.mxu3 %vm1368_vm1, %v1333_v7  ;;  %2971 = vmatmul.msk.f32.vlgmr.msra.gmra.mxu1 %vm1368_vm1, %v1334_v50  ;;  %v917_v19 = vadd.f32 %v4576_v59, %v753_v54  ;;  %v592_v59 = vadd.f32 %v4665_v37, %v3674_v33  ;;  %v3003_v33 = vld [vmem:[%s5391_s3 + $0x3e8] sm:$0xff]  ;;  %v4988_v50 = vpop.f32.mrf.mxu1 }
 0x22e   :  { %2104 = vmatpush.msra.mxu2 %v2973_v1  ;;  %2133 = vmatpush.msra.mxu3 %v2978_v22  ;;  %v3010_v22 = vld [vmem:[%s5391_s3 + $0x418] sm:$0xff] }
 0x22f   :  { %v1238_v36 = vpop.f32.mrf.mxu0  ;;  %2247 = vmatpush.msra.mxu1 %v3000_v52  ;;  %v1081_v23 = vadd.f32 %v4578_v27, %v917_v19  ;;  %v756_v3 = vadd.f32 %v4508_v38, %v592_v59 }
 0x230   :  { %2105 = vmatpush.msra.mxu2 %v2972_v49  ;;  %2134 = vmatpush.msra.mxu3 %v2977_v55  ;;  %v1239_v44 = vadd.f32 %v1238_v36, %v1075_v9  ;;  %v4991_v38 = vpop.f32.mrf.mxu2 }
 0x231   :  { %2248 = vmatpush.msra.mxu1 %v2999_v26  ;;  %v920_v27 = vadd.f32 %v4633_v17, %v756_v3  ;;  %v595_v17 = vadd.f32 %v4665_v37, %v3694_v41  ;;  %v3008_v41 = vld [vmem:[%s5391_s3 + $0x408] sm:$0xff] }
 0x232   :  { %2189 = vmatpush.msrb.mxu2 %v2990_v0  ;;  %2218 = vmatpush.msrb.mxu3 %v2995_v39  ;;  %v1335_v34 = vmax.f32 %v1239_v44, 0.0  ;;  %v245_v0 = vld [vmem:[%s5388_s0 + $0x700] sm:$0xff]  ;;  %v3009_v39 = vld [vmem:[%s5391_s3 + $0x410] sm:$0xff] }
 0x233   :  { %2843 = vmatmul.msk.f32.gmra.mxu0 %vm342_vm0, %v230_v11  ;;  %2249 = vmatpush.msra.mxu1 %v2998_v24  ;;  %v1084_v49 = vadd.f32 %v4640_v40, %v920_v27  ;;  %v759_v29 = vadd.f32 %v4565_v20, %v595_v17  ;;  %v3007_v11 = vld [vmem:[%s5391_s3 + $0x400] sm:$0xff]  ;;  %v3015_v20 = vld [vmem:[%s5391_s3 + $0x438] sm:$0xff]  ;;  %v3019_v24 = vld [vmem:[%s5391_s3 + $0x450] sm:$0xff] }
 0x234   :  { %2190 = vmatpush.msrb.mxu2 %v2989_v48  ;;  %2219 = vmatpush.msrb.mxu3 %v2994_v2  ;;  %v5006_v48 = vpop.f32.mrf.mxu3  ;;  %v5413_v2 = vld [vmem:[#allocation15_spill] sm:$0xff] }
 0x235   :  { %2976 = vmatmul.msk.f32.vlgmr.msra.gmra.mxu2 %vm1368_vm1, %v1335_v34  ;;  %2250 = vmatpush.msra.mxu1 %v2997_v6  ;;  %v923_v40 = vadd.f32 %v4704_v51, %v759_v29  ;;  %v598_v16 = vadd.f32 %v4665_v37, %v5413_v2  ;;  %v5023_v44 = vpop.f32.mrf.mxu1  ;;  %v3014_v34 = vld [vmem:[%s5391_s3 + $0x430] sm:$0xff] }
 0x236   :  { %2191 = vmatpush.msrb.mxu2 %v2988_v63  ;;  %2220 = vmatpush.msrb.mxu3 %v2993_v28  ;;  %v3024_v27 = vld [vmem:[%s5391_s3 + $0x470] sm:$0xff] }
 0x237   :  { %v1241_v32 = vpop.f32.mrf.mxu0  ;;  %v1087_v51 = vadd.f32 %v4714_v61, %v923_v40  ;;  %v3013_v61 = vld [vmem:[%s5391_s3 + $0x428] sm:$0xff]  ;;  %v265_v40 = vld [vmem:[%s5388_s0 + $0x7a0] sm:$0xff] }
 0x238   :  { %2192 = vmatpush.msrb.mxu2 %v2987_v25  ;;  %2221 = vmatpush.msrb.mxu3 %v2992_v43  ;;  %v1242_v31 = vadd.f32 %v1241_v32, %v1078_v14  ;;  %v5025_v63 = vpop.f32.mrf.mxu2  ;;  %v762_v25 = vadd.f32 %v4625_v56, %v598_v16  ;;  %v3012_v14 = vld [vmem:[%s5391_s3 + $0x420] sm:$0xff]  ;;  %v3020_v56 = vld [vmem:[%s5391_s3 + $0x458] sm:$0xff] }
 0x23a   :  { %v1336_v5 = vmax.f32 %v1242_v31, 0.0  ;;  %2276 = vmatpush.msra.mxu2 %v3005_v46  ;;  %v926_v52 = vadd.f32 %v4768_v4, %v762_v25  ;;  %v255_v31 = vld [vmem:[%s5388_s0 + $0x750] sm:$0xff] }
 0x23b   :  { %2844 = vmatmul.msk.f32.gmra.mxu0 %vm342_vm0, %v235_v47  ;;  %v5414_v47 = vld [vmem:[#allocation5_spill] sm:$0xff] }
 0x23c   :  { %2981 = vmatmul.msk.f32.vlgmr.msra.gmra.mxu3 %vm1368_vm1, %v1336_v5  ;;  %2277 = vmatpush.msra.mxu2 %v3004_v12  ;;  %v5042_v32 = vpop.f32.mrf.mxu3  ;;  %v601_v4 = vadd.f32 %v4665_v37, %v5414_v47  ;;  %v1090_v26 = vadd.f32 %v4773_v10, %v926_v52  ;;  %v3018_v10 = vld [vmem:[%s5391_s3 + $0x448] sm:$0xff]  ;;  %v5415_v12 = vld [vmem:[#allocation7_spill] sm:$0xff] }
 0x23d   :  { %2305 = vmatpush.msra.mxu3 %v3010_v22  ;;  %v5058_v5 = vpop.f32.mrf.mxu1  ;;  %v3023_v22 = vld [vmem:[%s5391_s3 + $0x468] sm:$0xff] }
 0x23e   :  { %2278 = vmatpush.msra.mxu2 %v3003_v33  ;;  %v765_v19 = vadd.f32 %v4689_v13, %v601_v4  ;;  %v3017_v13 = vld [vmem:[%s5391_s3 + $0x440] sm:$0xff]  ;;  %v260_v33 = vld [vmem:[%s5388_s0 + $0x778] sm:$0xff] }
 0x23f   :  { %v1244_v8 = vpop.f32.mrf.mxu0  ;;  %2306 = vmatpush.msra.mxu3 %v3009_v39 }
 0x240   :  { %v1245_v7 = vadd.f32 %v1244_v8, %v1081_v23  ;;  %2279 = vmatpush.msra.mxu2 %v3002_v62  ;;  %v5060_v46 = vpop.f32.mrf.mxu2  ;;  %v929_v59 = vadd.f32 %v4833_v57, %v765_v19  ;;  %v604_v57 = vadd.f32 %v4665_v37, %v5415_v12  ;;  %v3037_v12 = vld [vmem:[%s5391_s3 + $0x4c0] sm:$0xff] }
 0x241   :  { %2307 = vmatpush.msra.mxu3 %v3008_v41 }
 0x242   :  { %v1337_v1 = vmax.f32 %v1245_v7, 0.0  ;;  %v1093_v3 = vadd.f32 %v4835_v42, %v929_v59 }
 0x243   :  { %2845 = vmatmul.msk.f32.gmra.mxu0 %vm342_vm0, %v240_v21  ;;  %2308 = vmatpush.msra.mxu3 %v3007_v11  ;;  %v3025_v21 = vld [vmem:[%s5391_s3 + $0x478] sm:$0xff] }
 0x244   :  { %2986 = vmatmul.msk.f32.vlgmr.msrb.gmra.mxu1 %vm1368_vm1, %v1337_v1  ;;  %v5071_v8 = vpop.f32.mrf.mxu3  ;;  %v768_v1 = vadd.f32 %v4749_v45, %v604_v57  ;;  %v3022_v45 = vld [vmem:[%s5391_s3 + $0x460] sm:$0xff] }
 0x245   :  { %2334 = vmatpush.msrb.mxu1 %v3015_v20  ;;  %v5090_v17 = vpop.f32.mrf.mxu1  ;;  %v5419_v57 = vld [vmem:[#allocation16_spill] sm:$0xff] }
 0x246   :  { %v932_v42 = vadd.f32 %v4888_v35, %v768_v1  ;;  %v5416_v35 = vld [vmem:[#allocation9_spill] sm:$0xff] }
 0x247   :  { %v1247_v55 = vpop.f32.mrf.mxu0  ;;  %2335 = vmatpush.msrb.mxu1 %v3014_v34  ;;  %v607_v39 = vadd.f32 %v4665_v37, %v5416_v35  ;;  %v5420_v35 = vld [vmem:[#allocation18_spill] sm:$0xff] }
 0x248   :  { %v1248_v9 = vadd.f32 %v1247_v55, %v1084_v49  ;;  %v5093_v55 = vpop.f32.mrf.mxu2  ;;  %v1096_v29 = vadd.f32 %v4894_v30, %v932_v42  ;;  %v3028_v30 = vld [vmem:[%s5391_s3 + $0x488] sm:$0xff] }
 0x249   :  { %2336 = vmatpush.msrb.mxu1 %v3013_v61  ;;  %v771_v11 = vadd.f32 %v4901_v60, %v607_v39  ;;  %v3034_v61 = vld [vmem:[%s5391_s3 + $0x4b0] sm:$0xff]  ;;  %v3043_v42 = vld [vmem:[%s5391_s3 + $0x4e8] sm:$0xff]  ;;  %v619_v39 = vadd.f32 %v4665_v37, %v5420_v35 }
 0x24a   :  { %v1338_v36 = vmax.f32 %v1248_v9, 0.0 }
 0x24b   :  { %2846 = vmatmul.msk.f32.gmra.mxu0 %vm342_vm0, %v245_v0  ;;  %2337 = vmatpush.msrb.mxu1 %v3012_v14  ;;  %v3030_v0 = vld [vmem:[%s5391_s3 + $0x498] sm:$0xff]  ;;  %v935_v2 = vadd.f32 %v4940_v15, %v771_v11  ;;  %v3048_v11 = vld [vmem:[%s5391_s3 + $0x508] sm:$0xff] }
 0x24c   :  { %2991 = vmatmul.msk.f32.vlgmr.msrb.gmra.mxu2 %vm1368_vm1, %v1338_v36  ;;  %v5105_v9 = vpop.f32.mrf.mxu3  ;;  %v3029_v36 = vld [vmem:[%s5391_s3 + $0x490] sm:$0xff] }
 0x24d   :  { %2363 = vmatpush.msrb.mxu2 %v3020_v56  ;;  %v5417_v15 = vld [vmem:[#allocation11_spill] sm:$0xff]  ;;  %v1099_v25 = vadd.f32 %v4964_v53, %v935_v2  ;;  %v3033_v56 = vld [vmem:[%s5391_s3 + $0x4a8] sm:$0xff]  ;;  %v3032_v53 = vld [vmem:[%s5391_s3 + $0x4a0] sm:$0xff] }
 0x24e   :  { %v610_v34 = vadd.f32 %v4665_v37, %v5417_v15 }
 0x24f   :  { %v1250_v28 = vpop.f32.mrf.mxu0  ;;  %2364 = vmatpush.msrb.mxu2 %v3019_v24 }
 0x250   :  { %v1251_v43 = vadd.f32 %v1250_v28, %v1087_v51  ;;  %v3027_v51 = vld [vmem:[%s5391_s3 + $0x480] sm:$0xff]  ;;  %v5122_v28 = vpop.f32.mrf.mxu1  ;;  %v5125_v60 = vpop.f32.mrf.mxu2  ;;  %v774_v52 = vadd.f32 %v4988_v50, %v610_v34  ;;  %v3040_v50 = vld [vmem:[%s5391_s3 + $0x4d8] sm:$0xff] }
 0x251   :  { %2365 = vmatpush.msrb.mxu2 %v3018_v10 }
 0x252   :  { %v1339_v58 = vmax.f32 %v1251_v43, 0.0  ;;  %v938_v47 = vadd.f32 %v4991_v38, %v774_v52  ;;  %v3053_v52 = vld [vmem:[%s5391_s3 + $0x528] sm:$0xff] }
 0x253   :  { %2847 = vmatmul.msk.f32.gmra.mxu0 %vm342_vm0, %v250_v18  ;;  %2366 = vmatpush.msrb.mxu2 %v3017_v13  ;;  %v3035_v18 = vld [vmem:[%s5391_s3 + $0x4b8] sm:$0xff] }
 0x254   :  { %2996 = vmatmul.msk.f32.vlgmr.msrb.gmra.mxu3 %vm1368_vm1, %v1339_v58  ;;  %v5137_v14 = vpop.f32.mrf.mxu3 }
 0x255   :  { %2392 = vmatpush.msrb.mxu3 %v3025_v21 }
 0x257   :  { %v1253_v54 = vpop.f32.mrf.mxu0  ;;  %2393 = vmatpush.msrb.mxu3 %v3024_v27 }
 0x258   :  { %v1254_v6 = vadd.f32 %v1253_v54, %v1090_v26  ;;  %v5418_v26 = vld [vmem:[#allocation13_spill] sm:$0xff]  ;;  %v5153_v24 = vpop.f32.mrf.mxu1  ;;  %v5155_v38 = vpop.f32.mrf.mxu2 }
 0x259   :  { %2394 = vmatpush.msrb.mxu3 %v3023_v22  ;;  %v613_v54 = vadd.f32 %v4665_v37, %v5418_v26 }
 0x25a   :  { %v1340_v23 = vmax.f32 %v1254_v6, 0.0  ;;  %v3039_v6 = vld [vmem:[%s5391_s3 + $0x4d0] sm:$0xff] }
 0x25b   :  { %2848 = vmatmul.msk.f32.gmra.mxu0 %vm342_vm0, %v255_v31  ;;  %2395 = vmatpush.msrb.mxu3 %v3022_v45  ;;  %v1102_v31 = vadd.f32 %v5006_v48, %v938_v47  ;;  %v777_v10 = vadd.f32 %v5023_v44, %v613_v54  ;;  %v3045_v44 = vld [vmem:[%s5391_s3 + $0x4f8] sm:$0xff]  ;;  %v3042_v45 = vld [vmem:[%s5391_s3 + $0x4e0] sm:$0xff]  ;;  %v3059_v54 = vld [vmem:[%s5391_s3 + $0x550] sm:$0xff] }
 0x25c   :  { %3001 = vmatmul.msk.f32.vlgmr.msra.gmra.mxu1 %vm1368_vm1, %v1340_v23  ;;  %v3038_v23 = vld [vmem:[%s5391_s3 + $0x4c8] sm:$0xff]  ;;  %v5165_v21 = vpop.f32.mrf.mxu3 }
 0x25d   :  { %2421 = vmatpush.msra.mxu1 %v3030_v0  ;;  %v941_v48 = vadd.f32 %v5025_v63, %v777_v10  ;;  %v3050_v0 = vld [vmem:[%s5391_s3 + $0x518] sm:$0xff]  ;;  %v3058_v10 = vld [vmem:[%s5391_s3 + $0x548] sm:$0xff] }
 0x25f   :  { %v1256_v7 = vpop.f32.mrf.mxu0  ;;  %2422 = vmatpush.msra.mxu1 %v3029_v36  ;;  %v1105_v63 = vadd.f32 %v5042_v32, %v941_v48  ;;  %v5423_v48 = vld [vmem:[#allocation6_spill] sm:$0xff] }
 0x260   :  { %v1257_v62 = vadd.f32 %v1256_v7, %v1093_v3  ;;  %v616_v3 = vadd.f32 %v4665_v37, %v5419_v57  ;;  %v5181_v1 = vpop.f32.mrf.mxu1  ;;  %v5183_v22 = vpop.f32.mrf.mxu2 }
 0x261   :  { %2423 = vmatpush.msra.mxu1 %v3028_v30 }
 0x262   :  { %v1341_v49 = vmax.f32 %v1257_v62, 0.0  ;;  %v780_v27 = vadd.f32 %v5058_v5, %v616_v3  ;;  %v3064_v3 = vld [vmem:[%s5391_s3 + $0x570] sm:$0xff] }
 0x263   :  { %2849 = vmatmul.msk.f32.gmra.mxu0 %vm342_vm0, %v260_v33  ;;  %2424 = vmatpush.msra.mxu1 %v3027_v51  ;;  %v3044_v33 = vld [vmem:[%s5391_s3 + $0x4f0] sm:$0xff]  ;;  %v5421_v51 = vld [vmem:[#allocation20_spill] sm:$0xff] }
 0x264   :  { %3006 = vmatmul.msk.f32.vlgmr.msra.gmra.mxu2 %vm1368_vm1, %v1341_v49  ;;  %v944_v32 = vadd.f32 %v5060_v46, %v780_v27  ;;  %v5193_v5 = vpop.f32.mrf.mxu3 }
 0x265   :  { %2450 = vmatpush.msra.mxu2 %v3035_v18 }
 0x266   :  { %v1108_v46 = vadd.f32 %v5071_v8, %v944_v32  ;;  %v3047_v8 = vld [vmem:[%s5391_s3 + $0x500] sm:$0xff] }
 0x267   :  { %v1259_v41 = vpop.f32.mrf.mxu0  ;;  %2451 = vmatpush.msra.mxu2 %v3034_v61  ;;  %v5424_v32 = vld [vmem:[#allocation8_spill] sm:$0xff] }
 0x268   :  { %v1260_v20 = vadd.f32 %v1259_v41, %v1096_v29  ;;  %v3049_v41 = vld [vmem:[%s5391_s3 + $0x510] sm:$0xff]  ;;  %v5209_v30 = vpop.f32.mrf.mxu1 }
 0x269   :  { %2452 = vmatpush.msra.mxu2 %v3033_v56 }
 0x26a   :  { %v1342_v16 = vmax.f32 %v1260_v20, 0.0 }
 0x26b   :  { %2850 = vmatmul.msk.f32.gmra.mxu0 %vm342_vm0, %v265_v40  ;;  %2453 = vmatpush.msra.mxu2 %v3032_v53  ;;  %v783_v40 = vadd.f32 %v5090_v17, %v619_v39  ;;  %v3055_v17 = vld [vmem:[%s5391_s3 + $0x538] sm:$0xff]  ;;  %v5422_v53 = vld [vmem:[#allocation22_spill] sm:$0xff] }
 0x26c   :  { %3011 = vmatmul.msk.f32.vlgmr.msra.gmra.mxu3 %vm1368_vm1, %v1342_v16  ;;  %v5214_v16 = vpop.f32.mrf.mxu2  ;;  %v5223_v15 = vpop.f32.mrf.mxu3 }
 0x26d   :  { %2479 = vmatpush.msra.mxu3 %v3040_v50  ;;  %v947_v20 = vadd.f32 %v5093_v55, %v783_v40  ;;  %v622_v55 = vadd.f32 %v4665_v37, %v5421_v51 }
 0x26f   :  { %v1262_v43 = vpop.f32.mrf.mxu0  ;;  %2480 = vmatpush.msra.mxu3 %v3039_v6  ;;  %v1111_v18 = vadd.f32 %v5105_v9, %v947_v20  ;;  %v3052_v9 = vld [vmem:[%s5391_s3 + $0x520] sm:$0xff] }
 0x270   :  { %v1263_v58 = vadd.f32 %v1262_v43, %v1099_v25  ;;  %v3054_v25 = vld [vmem:[%s5391_s3 + $0x530] sm:$0xff]  ;;  %v786_v43 = vadd.f32 %v5122_v28, %v622_v55  ;;  %v5236_v47 = vpop.f32.mrf.mxu1  ;;  %v3060_v28 = vld [vmem:[%s5391_s3 + $0x558] sm:$0xff] }
 0x271   :  { %2481 = vmatpush.msra.mxu3 %v3038_v23 }
 0x272   :  { %v1343_v4 = vmax.f32 %v1263_v58, 0.0  ;;  %v950_v58 = vadd.f32 %v5125_v60, %v786_v43  ;;  %v625_v60 = vadd.f32 %v4665_v37, %v5422_v53 }
 0x273   :  { %2482 = vmatpush.msra.mxu3 %v3037_v12 }
 0x274   :  { %3016 = vmatmul.msk.f32.vlgmr.msrb.gmra.mxu1 %vm1368_vm1, %v1343_v4  ;;  %v5242_v4 = vpop.f32.mrf.mxu2  ;;  %v1114_v50 = vadd.f32 %v5137_v14, %v950_v58  ;;  %v5251_v6 = vpop.f32.mrf.mxu3  ;;  %v3057_v14 = vld [vmem:[%s5391_s3 + $0x540] sm:$0xff] }
 0x275   :  { %2508 = vmatpush.msrb.mxu1 %v3045_v44  ;;  %v5426_v58 = vld [vmem:[#allocation12_spill] sm:$0xff] }
 0x277   :  { %v1265_v19 = vpop.f32.mrf.mxu0  ;;  %2509 = vmatpush.msrb.mxu1 %v3044_v33  ;;  %v3063_v33 = vld [vmem:[%s5391_s3 + $0x568] sm:$0xff] }
 0x278   :  { %v1266_v59 = vadd.f32 %v1265_v19, %v1102_v31  ;;  %v789_v31 = vadd.f32 %v5153_v24, %v625_v60  ;;  %v3065_v24 = vld [vmem:[%s5391_s3 + $0x578] sm:$0xff] }
 0x279   :  { %2510 = vmatpush.msrb.mxu1 %v3043_v42 }
 0x27a   :  { %v1344_v13 = vmax.f32 %v1266_v59, 0.0  ;;  %v953_v59 = vadd.f32 %v5155_v38, %v789_v31  ;;  %v800_v38 = vpop.f32.mrf.mxu1  ;;  %v3077_v31 = vld [vmem:[%s5391_s3 + $0x5c0] sm:$0xff] }
 0x27b   :  { %2511 = vmatpush.msrb.mxu1 %v3042_v45 }
 0x27c   :  { %3021 = vmatmul.msk.f32.vlgmr.msrb.gmra.mxu2 %vm1368_vm1, %v1344_v13  ;;  %v628_v13 = vadd.f32 %v4665_v37, %v5423_v48  ;;  %v1117_v12 = vadd.f32 %v5165_v21, %v953_v59  ;;  %v5267_v44 = vpop.f32.mrf.mxu2  ;;  %v3062_v21 = vld [vmem:[%s5391_s3 + $0x560] sm:$0xff]  ;;  %v5280_v42 = vpop.f32.mrf.mxu3 }
 0x27d   :  { %2537 = vmatpush.msrb.mxu2 %v3050_v0  ;;  %v3069_v0 = vld [vmem:[%s5391_s3 + $0x590] sm:$0xff] }
 0x27f   :  { %v1268_v7 = vpop.f32.mrf.mxu0  ;;  %2538 = vmatpush.msrb.mxu2 %v3049_v41  ;;  %v3068_v41 = vld [vmem:[%s5391_s3 + $0x588] sm:$0xff] }
 0x280   :  { %v1269_v62 = vadd.f32 %v1268_v7, %v1105_v63  ;;  %v792_v63 = vadd.f32 %v5181_v1, %v628_v13  ;;  %v3070_v1 = vld [vmem:[%s5391_s3 + $0x598] sm:$0xff] }
 0x281   :  { %2539 = vmatpush.msrb.mxu2 %v3048_v11  ;;  %v3075_v11 = vld [vmem:[%s5391_s3 + $0x5b8] sm:$0xff] }
 0x282   :  { %v1345_v49 = vmax.f32 %v1269_v62, 0.0  ;;  %v956_v27 = vadd.f32 %v5183_v22, %v792_v63  ;;  %v803_v39 = vpop.f32.mrf.mxu1  ;;  %v3082_v63 = vld [vmem:[%s5391_s3 + $0x5e0] sm:$0xff] }
 0x283   :  { %2540 = vmatpush.msrb.mxu2 %v3047_v8 }
 0x284   :  { %3026 = vmatmul.msk.f32.vlgmr.msrb.gmra.mxu3 %vm1368_vm1, %v1345_v49  ;;  %v631_v49 = vadd.f32 %v4665_v37, %v5424_v32  ;;  %v1120_v22 = vadd.f32 %v5193_v5, %v956_v27  ;;  %v3067_v5 = vld [vmem:[%s5391_s3 + $0x580] sm:$0xff]  ;;  %v1131_v20 = vpop.f32.mrf.mxu3 }
 0x285   :  { %2566 = vmatpush.msrb.mxu3 %v3055_v17  ;;  %v3074_v17 = vld [vmem:[%s5391_s3 + $0x5b0] sm:$0xff]  ;;  %v5428_v27 = vld [vmem:[#allocation17_spill] sm:$0xff] }
 0x286   :  { %v795_v35 = vadd.f32 %v5209_v30, %v631_v49  ;;  %v5425_v30 = vld [vmem:[#allocation10_spill] sm:$0xff] }
 0x287   :  { %v1271_v29 = vpop.f32.mrf.mxu0  ;;  %2567 = vmatpush.msrb.mxu3 %v3054_v25 }
 0x288   :  { %v1272_v36 = vadd.f32 %v1271_v29, %v1108_v46  ;;  %v967_v29 = vpop.f32.mrf.mxu2  ;;  %v959_v40 = vadd.f32 %v5214_v16, %v795_v35 }
 0x289   :  { %2568 = vmatpush.msrb.mxu3 %v3053_v52  ;;  %v5325_v52 = vld [vmem:[%s5390_s2] ss:$0 sm:$0xff] }
 0x28a   :  { %v1346_v2 = vmax.f32 %v1272_v36, 0.0  ;;  %v1123_v8 = vadd.f32 %v5223_v15, %v959_v40 }
 0x28b   :  { %2569 = vmatpush.msrb.mxu3 %v3052_v9 }
 0x28c   :  { %3031 = vmatmul.msk.f32.vlgmr.msra.gmra.mxu1 %vm1368_vm1, %v1346_v2  ;;  %v634_v2 = vadd.f32 %v4665_v37, %v5425_v30  ;;  %v3072_v37 = vld [vmem:[%s5391_s3 + $0x5a0] sm:$0xff] }
 0x28d   :  { %2595 = vmatpush.msra.mxu1 %v3060_v28 }
 0x28e   :  { %v798_v51 = vadd.f32 %v5236_v47, %v634_v2  ;;  %v1134_v47 = vpop.f32.mrf.mxu3 }
 0x28f   :  { %v1274_v34 = vpop.f32.mrf.mxu0  ;;  %2596 = vmatpush.msra.mxu1 %v3059_v54 }
 0x290   :  { %v1275_v61 = vadd.f32 %v1274_v34, %v1111_v18  ;;  %v3073_v18 = vld [vmem:[%s5391_s3 + $0x5a8] sm:$0xff]  ;;  %v806_v34 = vpop.f32.mrf.mxu1  ;;  %v962_v25 = vadd.f32 %v5242_v4, %v798_v51  ;;  %v970_v15 = vpop.f32.mrf.mxu2  ;;  %v3079_v4 = vld [vmem:[%s5391_s3 + $0x5d0] sm:$0xff] }
 0x291   :  { %2597 = vmatpush.msra.mxu1 %v3058_v10  ;;  %v3084_v10 = vld [vmem:[%s5391_s3 + $0x5f0] sm:$0xff] }
 0x292   :  { %v1347_v56 = vmax.f32 %v1275_v61, 0.0  ;;  %v3080_v61 = vld [vmem:[%s5391_s3 + $0x5d8] sm:$0xff]  ;;  %v1126_v9 = vadd.f32 %v5251_v6, %v962_v25 }
 0x293   :  { %2598 = vmatpush.msra.mxu1 %v3057_v14  ;;  %v3085_v6 = vld [vmem:[%s5391_s3 + $0x5f8] sm:$0xff] }
 0x294   :  { %3036 = vmatmul.msk.f32.vlgmr.msra.gmra.mxu2 %vm1368_vm1, %v1347_v56  ;;  %v637_v56 = vadd.f32 %v5325_v52, %v5426_v58  ;;  %v5431_v58 = vld [vmem:[#allocation23_spill] sm:$0xff] }
 0x295   :  { %2624 = vmatpush.msra.mxu2 %v3065_v24 }
 0x296   :  { %v801_v53 = vadd.f32 %v800_v38, %v637_v56  ;;  %v1137_v38 = vpop.f32.mrf.mxu3  ;;  %v652_v56 = vadd.f32 %v5325_v52, %v5431_v58 }
 0x297   :  { %v1277_v26 = vpop.f32.mrf.mxu0  ;;  %2625 = vmatpush.msra.mxu2 %v3064_v3 }
 0x298   :  { %v1278_v19 = vadd.f32 %v1277_v26, %v1114_v50  ;;  %v3078_v50 = vld [vmem:[%s5391_s3 + $0x5c8] sm:$0xff]  ;;  %v965_v26 = vadd.f32 %v5267_v44, %v801_v53  ;;  %v973_v59 = vpop.f32.mrf.mxu2 }
 0x299   :  { %2626 = vmatpush.msra.mxu2 %v3063_v33  ;;  %v3083_v44 = vld [vmem:[%s5391_s3 + $0x5e8] sm:$0xff]  ;;  %v3089_v33 = vld [vmem:[%s5391_s3 + $0x610] sm:$0xff] }
 0x29a   :  { %v1348_v23 = vmax.f32 %v1278_v19, 0.0  ;;  %v809_v19 = vpop.f32.mrf.mxu1  ;;  %v1129_v24 = vadd.f32 %v5280_v42, %v965_v26 }
 0x29b   :  { %2627 = vmatpush.msra.mxu2 %v3062_v21 }
 0x29c   :  { %3041 = vmatmul.msk.f32.vlgmr.msra.gmra.mxu3 %vm1368_vm1, %v1348_v23  ;;  %v5427_v23 = vld [vmem:[#allocation14_spill] sm:$0xff] }
 0x29d   :  { %2653 = vmatpush.msra.mxu3 %v3070_v1  ;;  %v640_v14 = vadd.f32 %v5325_v52, %v5427_v23 }
 0x29f   :  { %v1280_v57 = vpop.f32.mrf.mxu0  ;;  %2654 = vmatpush.msra.mxu3 %v3069_v0  ;;  %v804_v13 = vadd.f32 %v803_v39, %v640_v14  ;;  %v3087_v39 = vld [vmem:[%s5391_s3 + $0x600] sm:$0xff] }
 0x2a0   :  { %v1281_v7 = vadd.f32 %v1280_v57, %v1117_v12  ;;  %v976_v1 = vpop.f32.mrf.mxu2 }
 0x2a1   :  { %2655 = vmatpush.msra.mxu3 %v3068_v41  ;;  %v968_v57 = vadd.f32 %v967_v29, %v804_v13  ;;  %v5429_v29 = vld [vmem:[#allocation19_spill] sm:$0xff] }
 0x2a2   :  { %v1349_v62 = vmax.f32 %v1281_v7, 0.0  ;;  %v3090_v7 = vld [vmem:[%s5391_s3 + $0x618] sm:$0xff]  ;;  %v812_v21 = vpop.f32.mrf.mxu1  ;;  %v646_v41 = vadd.f32 %v5325_v52, %v5429_v29 }
 0x2a3   :  { %2656 = vmatpush.msra.mxu3 %v3067_v5  ;;  %v1132_v42 = vadd.f32 %v1131_v20, %v968_v57 }
 0x2a4   :  { %3046 = vmatmul.msk.f32.vlgmr.msrb.gmra.mxu1 %vm1368_vm1, %v1349_v62  ;;  %v643_v62 = vadd.f32 %v5325_v52, %v5428_v27  ;;  %v810_v5 = vadd.f32 %v809_v19, %v646_v41 }
 0x2a5   :  { %2682 = vmatpush.msrb.mxu1 %v3075_v11 }
 0x2a6   :  { %v807_v49 = vadd.f32 %v806_v34, %v643_v62  ;;  %v974_v2 = vadd.f32 %v973_v59, %v810_v5 }
 0x2a7   :  { %v1283_v45 = vpop.f32.mrf.mxu0  ;;  %2683 = vmatpush.msrb.mxu1 %v3074_v17  ;;  %v5430_v17 = vld [vmem:[#allocation21_spill] sm:$0xff] }
 0x2a8   :  { %v1284_v46 = vadd.f32 %v1283_v45, %v1120_v22  ;;  %v3088_v45 = vld [vmem:[%s5391_s3 + $0x608] sm:$0xff]  ;;  %v971_v0 = vadd.f32 %v970_v15, %v807_v49  ;;  %v979_v30 = vpop.f32.mrf.mxu2  ;;  %v649_v51 = vadd.f32 %v5325_v52, %v5430_v17 }
 0x2a9   :  { %2684 = vmatpush.msrb.mxu1 %v3073_v18 }
 0x2aa   :  { %v1350_v36 = vmax.f32 %v1284_v46, 0.0  ;;  %v1140_v46 = vpop.f32.mrf.mxu3  ;;  %v1135_v40 = vadd.f32 %v1134_v47, %v971_v0  ;;  %v815_v20 = vpop.f32.mrf.mxu1  ;;  %v813_v34 = vadd.f32 %v812_v21, %v649_v51 }
 0x2ab   :  { %2685 = vmatpush.msrb.mxu1 %v3072_v37  ;;  %v816_v53 = vadd.f32 %v815_v20, %v652_v56 }
 0x2ac   :  { %3051 = vmatmul.msk.f32.vlgmr.msrb.gmra.mxu2 %vm1368_vm1, %v1350_v36 }
 0x2ad   :  { %2711 = vmatpush.msrb.mxu2 %v3080_v61 }
 0x2af   :  { %2712 = vmatpush.msrb.mxu2 %v3079_v4 }
 0x2b0   :  { %v1286_v16 = vpop.f32.mrf.mxu0  ;;  %v1412_v61 = vpop.f32.mrf.mxu2 }
 0x2b1   :  { %v1287_v55 = vadd.f32 %v1286_v16, %v1123_v8  ;;  %2713 = vmatpush.msrb.mxu2 %v3078_v50  ;;  %v980_v50 = vadd.f32 %v979_v30, %v816_v53 }
 0x2b2   :  { %v1143_v16 = vpop.f32.mrf.mxu3  ;;  %v1389_v15 = vpop.f32.mrf.mxu1 }
 0x2b3   :  { %v1351_v43 = vmax.f32 %v1287_v55, 0.0  ;;  %2714 = vmatpush.msrb.mxu2 %v3077_v31  ;;  %v1138_v55 = vadd.f32 %v1137_v38, %v974_v2  ;;  %v1413_v47 = vadd.f32 %v1412_v61, %v1389_v15 }
 0x2b5   :  { %3056 = vmatmul.msk.f32.vlgmr.msrb.gmra.mxu3 %vm1368_vm1, %v1351_v43  ;;  %v977_v43 = vadd.f32 %v976_v1, %v813_v34 }
 0x2b6   :  { %2740 = vmatpush.msrb.mxu3 %v3085_v6  ;;  %v1144_v6 = vadd.f32 %v1143_v16, %v980_v50 }
 0x2b8   :  { %v1289_v28 = vpop.f32.mrf.mxu0  ;;  %2741 = vmatpush.msrb.mxu3 %v3084_v10  ;;  %v1498_v19 = vpop.f32.mrf.mxu2 }
 0x2b9   :  { %v1290_v60 = vadd.f32 %v1289_v28, %v1126_v9  ;;  %v1141_v9 = vadd.f32 %v1140_v46, %v977_v43 }
 0x2ba   :  { %2742 = vmatpush.msrb.mxu3 %v3083_v44  ;;  %v1440_v28 = vpop.f32.mrf.mxu3  ;;  %v1469_v31 = vpop.f32.mrf.mxu1 }
 0x2bb   :  { %v1352_v54 = vmax.f32 %v1290_v60, 0.0  ;;  %v1443_v26 = vadd.f32 %v1440_v28, %v1413_v47 }
 0x2bc   :  { %2743 = vmatpush.msrb.mxu3 %v3082_v63 }
 0x2bd   :  { %3061 = vmatmul.msk.f32.vlgmr.msra.gmra.mxu1 %vm1368_vm1, %v1352_v54  ;;  %v1472_v10 = vadd.f32 %v1469_v31, %v1443_v26 }
 0x2be   :  { %2769 = vmatpush.msra.mxu1 %v3090_v7 }
 0x2bf   :  { %v1501_v23 = vadd.f32 %v1498_v19, %v1472_v10 }
 0x2c0   :  { %v1292_v48 = vpop.f32.mrf.mxu0  ;;  %2770 = vmatpush.msra.mxu1 %v3089_v33 }
 0x2c1   :  { %v1293_v12 = vadd.f32 %v1292_v48, %v1129_v24 }
 0x2c2   :  { %2771 = vmatpush.msra.mxu1 %v3088_v45  ;;  %v1527_v24 = vpop.f32.mrf.mxu3  ;;  %v1556_v13 = vpop.f32.mrf.mxu1 }
 0x2c3   :  { %v1353_v3 = vmax.f32 %v1293_v12, 0.0  ;;  %v1530_v48 = vadd.f32 %v1527_v24, %v1501_v23  ;;  %v1585_v12 = vpop.f32.mrf.mxu2 }
 0x2c4   :  { %2772 = vmatpush.msra.mxu1 %v3087_v39 }
 0x2c5   :  { %3066 = vmatmul.msk.f32.vlgmr.msra.gmra.mxu2 %vm1368_vm1, %v1353_v3  ;;  %v1559_v38 = vadd.f32 %v1556_v13, %v1530_v48 }
 0x2c7   :  { %v1588_v44 = vadd.f32 %v1585_v12, %v1559_v38 }
 0x2c8   :  { %v1295_v32 = vpop.f32.mrf.mxu0 }
 0x2c9   :  { %v1296_v22 = vadd.f32 %v1295_v32, %v1132_v42 }
 0x2ca   :  { %v1614_v57 = vpop.f32.mrf.mxu3  ;;  %v1643_v63 = vpop.f32.mrf.mxu1 }
 0x2cb   :  { %v1354_v35 = vmax.f32 %v1296_v22, 0.0  ;;  %v1617_v3 = vadd.f32 %v1614_v57, %v1588_v44  ;;  %v1672_v7 = vpop.f32.mrf.mxu2 }
 0x2cd   :  { %3071 = vmatmul.msk.f32.vlgmr.msra.gmra.mxu3 %vm1368_vm1, %v1354_v35  ;;  %v1646_v33 = vadd.f32 %v1643_v63, %v1617_v3 }
 0x2cf   :  { %v1675_v27 = vadd.f32 %v1672_v7, %v1646_v33 }
 0x2d0   :  { %v1298_v36 = vpop.f32.mrf.mxu0 }
 0x2d1   :  { %v1299_v11 = vadd.f32 %v1298_v36, %v1135_v40 }
 0x2d2   :  { %v1701_v62 = vpop.f32.mrf.mxu3  ;;  %v1730_v42 = vpop.f32.mrf.mxu1 }
 0x2d3   :  { %v1355_v8 = vmax.f32 %v1299_v11, 0.0  ;;  %v1704_v21 = vadd.f32 %v1701_v62, %v1675_v27  ;;  %v1759_v1 = vpop.f32.mrf.mxu2 }
 0x2d5   :  { %3076 = vmatmul.msk.f32.vlgmr.msrb.gmra.mxu1 %vm1368_vm1, %v1355_v8  ;;  %v1733_v32 = vadd.f32 %v1730_v42, %v1704_v21 }
 0x2d7   :  { %v1762_v49 = vadd.f32 %v1759_v1, %v1733_v32 }
 0x2d8   :  { %v1301_v18 = vpop.f32.mrf.mxu0 }
 0x2d9   :  { %v1302_v25 = vadd.f32 %v1301_v18, %v1138_v55 }
 0x2da   :  { %v1788_v22 = vpop.f32.mrf.mxu3  ;;  %v1817_v0 = vpop.f32.mrf.mxu1 }
 0x2db   :  { %v1356_v37 = vmax.f32 %v1302_v25, 0.0  ;;  %v1791_v45 = vadd.f32 %v1788_v22, %v1762_v49  ;;  %v1846_v35 = vpop.f32.mrf.mxu2 }
 0x2dd   :  { %3081 = vmatmul.msk.f32.vlgmr.msrb.gmra.mxu2 %vm1368_vm1, %v1356_v37  ;;  %v1820_v39 = vadd.f32 %v1817_v0, %v1791_v45 }
 0x2df   :  { %v1849_v46 = vadd.f32 %v1846_v35, %v1820_v39  ;;  %v3142_v39 = vld [vmem:[%s5392_s4] ss:$0 sm:$0xff] }
 0x2e0   :  { %v1304_v4 = vpop.f32.mrf.mxu0 }
 0x2e1   :  { %v1305_v60 = vadd.f32 %v1304_v4, %v1141_v9 }
 0x2e2   :  { %v1875_v29 = vpop.f32.mrf.mxu3  ;;  %v1904_v40 = vpop.f32.mrf.mxu1 }
 0x2e3   :  { %v1357_v54 = vmax.f32 %v1305_v60, 0.0  ;;  %v1878_v41 = vadd.f32 %v1875_v29, %v1849_v46  ;;  %v1933_v36 = vpop.f32.mrf.mxu2 }
 0x2e5   :  { %3086 = vmatmul.msk.f32.vlgmr.msrb.gmra.mxu3 %vm1368_vm1, %v1357_v54  ;;  %v1907_v5 = vadd.f32 %v1904_v40, %v1878_v41 }
 0x2e7   :  { %v1936_v11 = vadd.f32 %v1933_v36, %v1907_v5 }
 0x2e8   :  { %v1307_v59 = vpop.f32.mrf.mxu0 }
 0x2e9   :  { %v1308_v14 = vadd.f32 %v1307_v59, %v1144_v6 }
 0x2ea   :  { %v1962_v20 = vpop.f32.mrf.mxu3  ;;  %v1991_v2 = vpop.f32.mrf.mxu1 }
 0x2eb   :  { %v1358_v52 = vmax.f32 %v1308_v14, 0.0  ;;  %v1965_v30 = vadd.f32 %v1962_v20, %v1936_v11  ;;  %v2020_v8 = vpop.f32.mrf.mxu2 }
 0x2ed   :  { %3091 = vmatmul.msk.f32.vlgmr.msra.gmra.mxu1 %vm1368_vm1, %v1358_v52  ;;  %v1994_v16 = vadd.f32 %v1991_v2, %v1965_v30 }
 0x2ef   :  { %v2023_v17 = vadd.f32 %v2020_v8, %v1994_v16 }
 0x2f2   :  { %v2049_v51 = vpop.f32.mrf.mxu3  ;;  %v2078_v18 = vpop.f32.mrf.mxu1 }
 0x2f3   :  { %v2052_v55 = vadd.f32 %v2049_v51, %v2023_v17  ;;  %v2107_v34 = vpop.f32.mrf.mxu2 }
 0x2f5   :  { %v2081_v25 = vadd.f32 %v2078_v18, %v2052_v55 }
 0x2f7   :  { %v2110_v37 = vadd.f32 %v2107_v34, %v2081_v25 }
 0x2fa   :  { %v2136_v43 = vpop.f32.mrf.mxu3  ;;  %v2165_v61 = vpop.f32.mrf.mxu1 }
 0x2fb   :  { %v2139_v15 = vadd.f32 %v2136_v43, %v2110_v37  ;;  %v2194_v58 = vpop.f32.mrf.mxu2 }
 0x2fd   :  { %v2168_v56 = vadd.f32 %v2165_v61, %v2139_v15 }
 0x2ff   :  { %v2197_v47 = vadd.f32 %v2194_v58, %v2168_v56 }
 0x302   :  { %v2223_v9 = vpop.f32.mrf.mxu3  ;;  %v2252_v4 = vpop.f32.mrf.mxu1 }
 0x303   :  { %v2226_v28 = vadd.f32 %v2223_v9, %v2197_v47  ;;  %v2281_v53 = vpop.f32.mrf.mxu2 }
 0x305   :  { %v2255_v60 = vadd.f32 %v2252_v4, %v2226_v28 }
 0x307   :  { %v2284_v26 = vadd.f32 %v2281_v53, %v2255_v60 }
 0x30a   :  { %v2310_v50 = vpop.f32.mrf.mxu3  ;;  %v2339_v31 = vpop.f32.mrf.mxu1 }
 0x30b   :  { %v2313_v54 = vadd.f32 %v2310_v50, %v2284_v26  ;;  %v2368_v19 = vpop.f32.mrf.mxu2 }
 0x30d   :  { %v2342_v6 = vadd.f32 %v2339_v31, %v2313_v54 }
 0x30f   :  { %v2371_v59 = vadd.f32 %v2368_v19, %v2342_v6 }
 0x312   :  { %v2397_v10 = vpop.f32.mrf.mxu3  ;;  %v2426_v14 = vpop.f32.mrf.mxu1 }
 0x313   :  { %v2400_v23 = vadd.f32 %v2397_v10, %v2371_v59 }
 0x315   :  { %v2429_v52 = vadd.f32 %v2426_v14, %v2400_v23 }
 0x317   :  { %v2455_v24 = vpop.f32.mrf.mxu2 }
 0x318   :  { %v2458_v13 = vadd.f32 %v2455_v24, %v2429_v52 }
 0x31f   :  { %v2484_v48 = vpop.f32.mrf.mxu3 }
 0x320   :  { %v2487_v12 = vadd.f32 %v2484_v48, %v2458_v13 }
 0x321   :  { %v2513_v38 = vpop.f32.mrf.mxu1 }
 0x322   :  { %v2516_v57 = vadd.f32 %v2513_v38, %v2487_v12 }
 0x32f   :  { %v2542_v44 = vpop.f32.mrf.mxu2 }
 0x330   :  { %v2545_v63 = vadd.f32 %v2542_v44, %v2516_v57 }
 0x338   :  { %v2571_v3 = vpop.f32.mrf.mxu3 }
 0x339   :  { %v2574_v7 = vadd.f32 %v2571_v3, %v2545_v63 }
 0x33a   :  { %v2600_v33 = vpop.f32.mrf.mxu1 }
 0x33b   :  { %v2603_v62 = vadd.f32 %v2600_v33, %v2574_v7 }
 0x348   :  { %v2629_v27 = vpop.f32.mrf.mxu2 }
 0x349   :  { %v2632_v42 = vadd.f32 %v2629_v27, %v2603_v62 }
 0x350   :  { %v2658_v21 = vpop.f32.mrf.mxu3 }
 0x351   :  { %v2661_v1 = vadd.f32 %v2658_v21, %v2632_v42 }
 0x352   :  { %v2687_v32 = vpop.f32.mrf.mxu1 }
 0x353   :  { %v2690_v22 = vadd.f32 %v2687_v32, %v2661_v1 }
 0x360   :  { %v2716_v49 = vpop.f32.mrf.mxu2 }
 0x361   :  { %v2719_v45 = vadd.f32 %v2716_v49, %v2690_v22 }
 0x368   :  { %v2745_v0 = vpop.f32.mrf.mxu3 }
 0x369   :  { %v2748_v35 = vadd.f32 %v2745_v0, %v2719_v45 }
 0x36a   :  { %v2774_v46 = vpop.f32.mrf.mxu1 }
 0x36b   :  { %v2777_v29 = vadd.f32 %v2774_v46, %v2748_v35 }
 0x36d   :  { %v2782_v41 = vadd.f32 %v3142_v39, %v2777_v29 }
 0x36f   :  { %3143 = vtanh.f32 %v2782_v41 }
 0x375   :  { %v3144_v40 = vpop.eup %3143 }
 0x376   :  { %2785 = vst.msk [vmem:[#allocation2] sm:$0x3] %vm2784_vm2, %v3144_v40 }
 0x377   :  { %2796 = dma.vmem_to_hbm [thread:$0]  %s2792_s18, 32, %s2794_s21, [#allocation3]  }
 0x378   :  { %3171 = dma.done.wait [#allocation3], 32  }
 0x379   :  { %3172 = vsyncadd [#allocation3], 4294967264 }
 0x37a   :  { %2801 = vsyncpa [#allocation3], 1 }

</bundles_post_ra>
